<compile_context>
chip_gen: v5e
topology: v5e:2x2
jax: 0.10.0
libtpu: 0.0.40
codegen_flags: <defaults>
</compile_context>

<pallas_src>
import numpy as np
import jax
import jax.numpy as jnp
from jax.experimental import pallas as pl
from jax.experimental.pallas import tpu as pltpu

C_OUT = 3          # output channels of every conv in this net
KS = 3             # 3x3 conv
LANE = 128
SUBLANE = 8
MIB = 1024 * 1024


def _round_up(x, m):
    return (x + m - 1) // m * m


def _cdiv(a, b):
    return (a + b - 1) // b


def _vmem_capacity_bytes():
    """Physical VMEM per TensorCore; conservative fallback if the query fails."""
    try:
        return int(pltpu.get_tpu_info().vmem_capacity_bytes)
    except Exception:
        return 64 * MIB            # v7x per-TC size; safe on every generation


def _any_negative(w):
    """True if any element < 0.  Falls back to the general path when traced."""
    try:
        return bool(np.any(np.asarray(w) < 0.0))
    except Exception:
        return True


def _per_row_bytes(Wp, Wd, use_neg):
    # steady-state f32 bytes per output row:
    #   image + 2 outputs (2-deep BlockSpec pipeline) : 2 * 9 * Wp
    #   depth window scratch (2 DMA slots)            : 2 * Wd
    #   relu(d) [+ relu(-d)] temps                    : (1|2) * Wd
    #   hoisted shifted stencil slabs                 : (9|18) * Wp
    #   accumulators / epilogue temps                 : 6 * Wp
    return 4 * (2 * 9 * Wp
                + (2 + (2 if use_neg else 1)) * Wd
                + ((18 if use_neg else 9) + 6) * Wp)


def _choose_tiles(H, W, use_neg, ceiling_bytes):
    """Pick (TH, n_h, Wp, Wd): lane-dense widths + VMEM-budgeted row tile."""
    Wp = _round_up(W, LANE)            # lane width of image / outputs
    Wd = Wp + 2 * LANE                 # depth window width (left pad + halo, aligned)
    budget = int(ceiling_bytes * 0.85)
    per_row = _per_row_bytes(Wp, Wd, use_neg)
    max_th = max(SUBLANE, min(512, (budget // per_row) // SUBLANE * SUBLANE))

    th = None
    if H % SUBLANE == 0:
        # prefer a tile height that divides H exactly: no H padding, no output crop
        for cand in range(min(max_th, H), SUBLANE - 1, -SUBLANE):
            if H % cand == 0:
                th = cand
                break
    if th is None:
        n_h = _cdiv(H, max_th)
        th = _round_up(_cdiv(H, n_h), SUBLANE)
    n_h = _cdiv(H, th)
    return th, n_h, Wp, Wd


def backscatter_net(image, depth, wb1, wr1, wb2, wr2, b_inf, j_prime,
                    neg_b=None, neg_r=None):
    """Forward pass of BackscatterNet.  Returns (direct, backscatter), NCHW f32.

    neg_b / neg_r: optional static flags: do backscatter_conv1 / residual_conv1
    have any negative weights?  If None, derived from concrete weights; traced
    weights silently fall back to the (exact but slower) general path.
    """
    N, _, H, W = image.shape
    use_neg_b = _any_negative(wb1) if neg_b is None else bool(neg_b)
    use_neg_r = _any_negative(wr1) if neg_r is None else bool(neg_r)
    use_neg = use_neg_b or use_neg_r

    cap = _vmem_capacity_bytes()
    # leave 16 MiB physical headroom; cap at 96 MiB even on 128 MiB chips
    ceiling = max(32 * MIB, min(cap - 16 * MIB, 96 * MIB))
    TH, n_h, Wp, Wd = _choose_tiles(H, W, use_neg, ceiling)
    Hp = n_h * TH

    # right-sized scoped-VMEM limit derived from the actual buffers (+ headroom
    # for compiler-internal scratch), never above the physical ceiling
    need = _per_row_bytes(Wp, Wd, use_neg) * TH + 4 * 4 * SUBLANE * Wd
    vmem_limit = int(min(ceiling, max(need + 8 * MIB, 32 * MIB)))

    # ---- fold the 1x1 convs (+ReLU) into the 3x3 convs (exact) ---------------
    #   relu(w1*d) = max(w1,0)*relu(d) + max(-w1,0)*relu(-d)
    # => conv2(relu(conv1(d)))[c] = sum_ij Wp[c,i,j]*shift_ij(relu(d))
    #                             + sum_ij Wn[c,i,j]*shift_ij(relu(-d))
    w1b = wb1.reshape(C_OUT)
    w1r = wr1.reshape(C_OUT)
    wpb = jnp.einsum('ckij,k->cij', wb2, jnp.maximum(w1b, 0.0)).reshape(-1)
    wpr = jnp.einsum('ckij,k->cij', wr2, jnp.maximum(w1r, 0.0)).reshape(-1)
    wnb = jnp.einsum('ckij,k->cij', wb2, jnp.maximum(-w1b, 0.0)).reshape(-1)
    wnr = jnp.einsum('ckij,k->cij', wr2, jnp.maximum(-w1r, 0.0)).reshape(-1)
    binf = b_inf.reshape(C_OUT)
    jpr = j_prime.reshape(C_OUT)

    # ---- wrapper-side padding (skipped entirely when shapes already fit) -----
    pad_h, pad_w = Hp - H, Wp - W
    if pad_h or pad_w:
        image_in = jnp.pad(image, ((0, 0), (0, 0), (0, pad_h), (0, pad_w)))
    else:
        image_in = image
    # depth keeps the 3x3 conv halo baked into the HBM-side pad:
    #   rows -> [1 zero row | H real rows | Hp+7-H zero rows]
    #   cols -> [128 zero cols | W real cols | zeros up to Wd]
    depth_p = jnp.pad(depth, ((0, 0), (0, 0),
                              (1, Hp + 7 - H), (LANE, Wd - LANE - W)))

    NTAP = C_OUT * KS * KS

    def kernel(image_ref, depth_hbm, wpb_ref, wpr_ref, wnb_ref, wnr_ref,
               binf_ref, jpr_ref, direct_ref, bs_ref, dwin_ref, dma_sem):
        n = pl.program_id(0)
        h = pl.program_id(1)
        slot = h % 2

        def win_copy(hblk, s):
            row0 = pl.multiple_of(hblk * TH, SUBLANE)
            return pltpu.make_async_copy(
                depth_hbm.at[n, 0, pl.ds(row0, TH + SUBLANE), :],
                dwin_ref.at[s], dma_sem.at[s])

        # prime the current slot on the first row-tile of each batch image
        @pl.when(h == 0)
        def _():
            win_copy(h, slot).start()

        # prefetch the next row-tile's window into the other slot so its DMA
        # hides behind this step's compute (double-buffering, within one image)
        if n_h > 1:
            @pl.when(h + 1 < n_h)
            def _():
                win_copy(h + 1, 1 - slot).start()

        # read all SMEM scalars BEFORE the DMA wait (a .wait() breaks sst->sld
        # forwarding; this also lets the scalar unit overlap the stall)
        wpb_s = [wpb_ref[k] for k in range(NTAP)]
        wpr_s = [wpr_ref[k] for k in range(NTAP)]
        wnb_s = [wnb_ref[k] for k in range(NTAP)] if use_neg_b else None
        wnr_s = [wnr_ref[k] for k in range(NTAP)] if use_neg_r else None
        binf_s = [binf_ref[c] for c in range(C_OUT)]
        jpr_s = [jpr_ref[c] for c in range(C_OUT)]

        win_copy(h, slot).wait()

        raw = dwin_ref[slot]                      # (TH+8, Wd) depth window
        dpos = jnp.maximum(raw, 0.0)              # relu(depth)
        dneg = jnp.maximum(-raw, 0.0) if use_neg else None   # relu(-depth)

        def shifts(x):
            # the 9 shifted (TH, Wp) windows of the 3x3 stencil, hoisted so each
            # (mis)aligned slice is issued once and reused by all 3 channels
            return [x[i:i + TH, LANE - 1 + j:LANE - 1 + j + Wp]
                    for i in range(KS) for j in range(KS)]

        wins = shifts(dpos)
        mwins = shifts(dneg) if use_neg else None
        mask = raw[1:TH + 1, LANE:LANE + Wp] > 0.0   # (depth > 0), center tap

        # channel-outermost: only a couple of (TH, Wp) accumulators live at a
        # time; each accumulator is one fused 9(/18)-tap reduction so the chain
        # stays vreg-resident (VALU-bound) instead of spilling between taps.
        for c in range(C_OUT):
            base = c * KS * KS
            acc_b = sum(wpb_s[base + k] * wins[k] for k in range(KS * KS))
            acc_r = sum(wpr_s[base + k] * wins[k] for k in range(KS * KS))
            if use_neg_b:
                acc_b = acc_b + sum(wnb_s[base + k] * mwins[k]
                                    for k in range(KS * KS))
            if use_neg_r:
                acc_r = acc_r + sum(wnr_s[base + k] * mwins[k]
                                    for k in range(KS * KS))
            e_b = jnp.exp(-jnp.maximum(acc_b, 0.0))    # exp(-relu(conv2_b))
            e_r = jnp.exp(-jnp.maximum(acc_r, 0.0))    # exp(-relu(conv2_r))
            bc = binf_s[c] * (1.0 - e_b) + jpr_s[c] * e_r
            bs = 0.5 * (jnp.tanh(0.5 * bc) + 1.0)      # sigmoid via EUP tanh
            bs_ref[0, c] = bs
            img_c = image_ref[0, c]
            direct_ref[0, c] = jnp.where(mask, img_c - bs, img_c)

    smem = pl.BlockSpec(memory_space=pltpu.MemorySpace.SMEM)
    img_spec = pl.BlockSpec((1, C_OUT, TH, Wp), lambda n, h: (n, 0, h, 0))

    grid_spec = pltpu.PrefetchScalarGridSpec(
        num_scalar_prefetch=0,
        grid=(N, n_h),
        in_specs=[
            img_spec,                               # image (auto-pipelined)
            pl.BlockSpec(memory_space=pl.ANY),      # depth stays in HBM; manual DMA
            smem, smem, smem, smem, smem, smem,     # folded taps / B_inf / J_prime
        ],
        out_specs=[img_spec, img_spec],             # direct, backscatter
        scratch_shapes=[
            pltpu.VMEM((2, TH + SUBLANE, Wd), jnp.float32),  # 2-slot depth window
            pltpu.SemaphoreType.DMA((2,)),
        ],
    )

    fn = pl.pallas_call(
        kernel,
        out_shape=(jax.ShapeDtypeStruct((N, C_OUT, Hp, Wp), jnp.float32),
                   jax.ShapeDtypeStruct((N, C_OUT, Hp, Wp), jnp.float32)),
        grid_spec=grid_spec,
        compiler_params=pltpu.CompilerParams(
            # h must stay sequential per image for the cross-step DMA prefetch;
            # the batch axis stays parallel (megacore split across images on v7x).
            dimension_semantics=("parallel", "arbitrary"),
            vmem_limit_bytes=vmem_limit),
    )
    direct_p, bs_p = fn(image_in, depth_p, wpb, wpr, wnb, wnr, binf, jpr)
    if pad_h or pad_w:
        return direct_p[:, :, :H, :W], bs_p[:, :, :H, :W]
    return direct_p, bs_p


def reference(image, depth, wb1, wr1, wb2, wr2, b_inf, j_prime):
    """Pure-JAX reference matching the PyTorch forward exactly."""
    dn = ('NCHW', 'OIHW', 'NCHW')

    def conv(x, w, pad):
        return jax.lax.conv_general_dilated(x, w, window_strides=(1, 1),
                                            padding=pad, dimension_numbers=dn)

    b1 = jax.nn.relu(conv(depth, wb1, 'VALID'))
    r1 = jax.nn.relu(conv(depth, wr1, 'VALID'))
    b2 = jax.nn.relu(conv(b1, wb2, ((1, 1), (1, 1))))
    r2 = jax.nn.relu(conv(r1, wr2, ((1, 1), (1, 1))))
    Bc = b_inf[None] * (1.0 - jnp.exp(-b2)) + j_prime[None] * jnp.exp(-r2)
    backscatter = jax.nn.sigmoid(Bc)
    masked = backscatter * (depth > 0.0).astype(jnp.float32)
    direct = image - masked
    return direct, backscatter


if __name__ == "__main__":
    key = jax.random.PRNGKey(0)
    ks = jax.random.split(key, 9)
    N, H, W = 2, 16, 16

    image = jax.random.uniform(ks[0], (N, 3, H, W), jnp.float32)
    depth = jax.random.uniform(ks[1], (N, 1, H, W), jnp.float32)
    # zero out some depth pixels so the (depth > 0) mask path is exercised
    depth = depth * (jax.random.uniform(ks[2], (N, 1, H, W)) > 0.25).astype(jnp.float32)

    # Parameter init mirroring the module: conv weights ~ U(0,5), B_inf/J_prime ~ U(0,1)
    wb1 = jax.random.uniform(ks[3], (3, 1, 1, 1), jnp.float32, 0.0, 5.0)
    wr1 = jax.random.uniform(ks[4], (3, 1, 1, 1), jnp.float32, 0.0, 5.0)
    wb2 = jax.random.uniform(ks[5], (3, 3, 3, 3), jnp.float32, 0.0, 5.0)
    wr2 = jax.random.uniform(ks[6], (3, 3, 3, 3), jnp.float32, 0.0, 5.0)
    b_inf = jax.random.uniform(ks[7], (3, 1, 1), jnp.float32)
    j_prime = jax.random.uniform(ks[8], (3, 1, 1), jnp.float32)

    # --- main test: module as initialized (non-negative 1x1 weights, fast path)
    direct, backscatter = backscatter_net(image, depth, wb1, wr1, wb2, wr2,
                                          b_inf, j_prime)
    jax.block_until_ready((direct, backscatter))
    d_ref, b_ref = reference(image, depth, wb1, wr1, wb2, wr2, b_inf, j_prime)
    np.testing.assert_allclose(np.asarray(backscatter), np.asarray(b_ref),
                               rtol=1e-5, atol=1e-5)
    np.testing.assert_allclose(np.asarray(direct), np.asarray(d_ref),
                               rtol=1e-5, atol=1e-5)

    # --- general-path test: negative 1x1 weights + negative depth pixels ------
    wb1n = wb1.at[1].set(-wb1[1])
    wr1n = wr1.at[2].set(-wr1[2])
    depth2 = depth - 0.3
    d2, b2 = backscatter_net(image, depth2, wb1n, wr1n, wb2, wr2, b_inf, j_prime)
    jax.block_until_ready((d2, b2))
    d2_ref, b2_ref = reference(image, depth2, wb1n, wr1n, wb2, wr2, b_inf, j_prime)
    np.testing.assert_allclose(np.asarray(b2), np.asarray(b2_ref),
                               rtol=1e-5, atol=1e-5)
    np.testing.assert_allclose(np.asarray(d2), np.asarray(d2_ref),
                               rtol=1e-5, atol=1e-5)

    print("KERNEL_OK")
</pallas_src>

<mosaic_0001>
module attributes {stable_mosaic.version = 11 : i64} {
  func.func @kernel(%arg0: i32, %arg1: i32, %arg2: memref<1x3x16x128xf32, #tpu.memory_space<vmem>>, %arg3: memref<2x1x24x384xf32, #tpu.memory_space<any>>, %arg4: memref<27xf32, #tpu.memory_space<smem>>, %arg5: memref<27xf32, #tpu.memory_space<smem>>, %arg6: memref<27xf32, #tpu.memory_space<smem>>, %arg7: memref<27xf32, #tpu.memory_space<smem>>, %arg8: memref<3xf32, #tpu.memory_space<smem>>, %arg9: memref<3xf32, #tpu.memory_space<smem>>, %arg10: memref<1x3x16x128xf32, #tpu.memory_space<vmem>>, %arg11: memref<1x3x16x128xf32, #tpu.memory_space<vmem>>, %arg12: memref<2x24x384xf32, #tpu.memory_space<vmem>>, %arg13: memref<2x!tpu.dma_semaphore, #tpu.memory_space<semaphore_mem>>) attributes {dimension_semantics = [#tpu.dimension_semantics<parallel>, #tpu.dimension_semantics<arbitrary>], iteration_bounds = array<i64: 2, 1>, scalar_prefetch = 0 : i64, scratch_operands = 2 : i64, tpu.core_type = #tpu.core_type<tc>, window_params = [{transform_indices = @transform_0, window_bounds = array<i64: 1, 3, 16, 128>}, {}, {transform_indices = @transform_2, window_bounds = array<i64: 27>}, {transform_indices = @transform_3, window_bounds = array<i64: 27>}, {transform_indices = @transform_4, window_bounds = array<i64: 27>}, {transform_indices = @transform_5, window_bounds = array<i64: 27>}, {transform_indices = @transform_6, window_bounds = array<i64: 3>}, {transform_indices = @transform_7, window_bounds = array<i64: 3>}, {transform_indices = @transform_8, window_bounds = array<i64: 1, 3, 16, 128>}, {transform_indices = @transform_9, window_bounds = array<i64: 1, 3, 16, 128>}]} {
    %c2_i32 = arith.constant 2 : i32
    %c0_i32 = arith.constant 0 : i32
    %0 = arith.cmpi eq, %c2_i32, %c0_i32 : i32
    %c1_i32 = arith.constant 1 : i32
    %1 = arith.select %0, %c1_i32, %c2_i32 : i32
    %2 = arith.remsi %arg1, %1 : i32
    %c0_i32_0 = arith.constant 0 : i32
    %3 = arith.cmpi ne, %2, %c0_i32_0 : i32
    %c0_i32_1 = arith.constant 0 : i32
    %4 = arith.cmpi slt, %2, %c0_i32_1 : i32
    %c0_i32_2 = arith.constant 0 : i32
    %5 = arith.cmpi slt, %1, %c0_i32_2 : i32
    %6 = arith.xori %4, %5 : i1
    %7 = arith.andi %6, %3 : i1
    %8 = arith.addi %2, %1 : i32
    %9 = arith.select %7, %8, %2 : i32
    %c0_i32_3 = arith.constant 0 : i32
    %10 = arith.cmpi eq, %arg1, %c0_i32_3 : i32
    %11 = arith.extui %10 : i1 to i32
    %c0_i32_4 = arith.constant 0 : i32
    %12 = arith.cmpi ne, %11, %c0_i32_4 : i32
    scf.if %12 {
      %c16_i32_111 = arith.constant 16 : i32
      %368 = arith.muli %arg1, %c16_i32_111 : i32
      %369 = tpu.assume_multiple %368, 8 : i32
      %c0_i32_112 = arith.constant 0 : i32
      %c0_i32_113 = arith.constant 0 : i32
      %370 = tpu.memref_slice %arg3[%arg0, %c0_i32_112, %369, %c0_i32_113] : memref<2x1x24x384xf32, #tpu.memory_space<any>> -> memref<1x1x24x384xf32, #tpu.memory_space<any>>
      %371 = tpu.memref_squeeze %370 : memref<1x1x24x384xf32, #tpu.memory_space<any>> -> memref<24x384xf32, #tpu.memory_space<any>>
      %c0_i32_114 = arith.constant 0 : i32
      %c0_i32_115 = arith.constant 0 : i32
      %372 = tpu.memref_slice %arg12[%9, %c0_i32_114, %c0_i32_115] : memref<2x24x384xf32, #tpu.memory_space<vmem>> -> memref<1x24x384xf32, #tpu.memory_space<vmem>>
      %373 = tpu.memref_squeeze %372 : memref<1x24x384xf32, #tpu.memory_space<vmem>> -> memref<24x384xf32, #tpu.memory_space<vmem>>
      %374 = tpu.memref_slice %arg13[%9] : memref<2x!tpu.dma_semaphore, #tpu.memory_space<semaphore_mem>> -> memref<1x!tpu.dma_semaphore, #tpu.memory_space<semaphore_mem>>
      %375 = tpu.memref_squeeze %374 : memref<1x!tpu.dma_semaphore, #tpu.memory_space<semaphore_mem>> -> memref<!tpu.dma_semaphore, #tpu.memory_space<semaphore_mem>>
      tpu.enqueue_dma source(%371 : memref<24x384xf32, #tpu.memory_space<any>>) target(%373 : memref<24x384xf32, #tpu.memory_space<vmem>>) target_semaphore(%375 : memref<!tpu.dma_semaphore, #tpu.memory_space<semaphore_mem>>)
    } else {
    }
    %c0 = arith.constant 0 : index
    %13 = memref.load %arg4[%c0] : memref<27xf32, #tpu.memory_space<smem>>
    %c1 = arith.constant 1 : index
    %14 = memref.load %arg4[%c1] : memref<27xf32, #tpu.memory_space<smem>>
    %c2 = arith.constant 2 : index
    %15 = memref.load %arg4[%c2] : memref<27xf32, #tpu.memory_space<smem>>
    %c3 = arith.constant 3 : index
    %16 = memref.load %arg4[%c3] : memref<27xf32, #tpu.memory_space<smem>>
    %c4 = arith.constant 4 : index
    %17 = memref.load %arg4[%c4] : memref<27xf32, #tpu.memory_space<smem>>
    %c5 = arith.constant 5 : index
    %18 = memref.load %arg4[%c5] : memref<27xf32, #tpu.memory_space<smem>>
    %c6 = arith.constant 6 : index
    %19 = memref.load %arg4[%c6] : memref<27xf32, #tpu.memory_space<smem>>
    %c7 = arith.constant 7 : index
    %20 = memref.load %arg4[%c7] : memref<27xf32, #tpu.memory_space<smem>>
    %c8 = arith.constant 8 : index
    %21 = memref.load %arg4[%c8] : memref<27xf32, #tpu.memory_space<smem>>
    %c9 = arith.constant 9 : index
    %22 = memref.load %arg4[%c9] : memref<27xf32, #tpu.memory_space<smem>>
    %c10 = arith.constant 10 : index
    %23 = memref.load %arg4[%c10] : memref<27xf32, #tpu.memory_space<smem>>
    %c11 = arith.constant 11 : index
    %24 = memref.load %arg4[%c11] : memref<27xf32, #tpu.memory_space<smem>>
    %c12 = arith.constant 12 : index
    %25 = memref.load %arg4[%c12] : memref<27xf32, #tpu.memory_space<smem>>
    %c13 = arith.constant 13 : index
    %26 = memref.load %arg4[%c13] : memref<27xf32, #tpu.memory_space<smem>>
    %c14 = arith.constant 14 : index
    %27 = memref.load %arg4[%c14] : memref<27xf32, #tpu.memory_space<smem>>
    %c15 = arith.constant 15 : index
    %28 = memref.load %arg4[%c15] : memref<27xf32, #tpu.memory_space<smem>>
    %c16 = arith.constant 16 : index
    %29 = memref.load %arg4[%c16] : memref<27xf32, #tpu.memory_space<smem>>
    %c17 = arith.constant 17 : index
    %30 = memref.load %arg4[%c17] : memref<27xf32, #tpu.memory_space<smem>>
    %c18 = arith.constant 18 : index
    %31 = memref.load %arg4[%c18] : memref<27xf32, #tpu.memory_space<smem>>
    %c19 = arith.constant 19 : index
    %32 = memref.load %arg4[%c19] : memref<27xf32, #tpu.memory_space<smem>>
    %c20 = arith.constant 20 : index
    %33 = memref.load %arg4[%c20] : memref<27xf32, #tpu.memory_space<smem>>
    %c21 = arith.constant 21 : index
    %34 = memref.load %arg4[%c21] : memref<27xf32, #tpu.memory_space<smem>>
    %c22 = arith.constant 22 : index
    %35 = memref.load %arg4[%c22] : memref<27xf32, #tpu.memory_space<smem>>
    %c23 = arith.constant 23 : index
    %36 = memref.load %arg4[%c23] : memref<27xf32, #tpu.memory_space<smem>>
    %c24 = arith.constant 24 : index
    %37 = memref.load %arg4[%c24] : memref<27xf32, #tpu.memory_space<smem>>
    %c25 = arith.constant 25 : index
    %38 = memref.load %arg4[%c25] : memref<27xf32, #tpu.memory_space<smem>>
    %c26 = arith.constant 26 : index
    %39 = memref.load %arg4[%c26] : memref<27xf32, #tpu.memory_space<smem>>
    %c0_5 = arith.constant 0 : index
    %40 = memref.load %arg5[%c0_5] : memref<27xf32, #tpu.memory_space<smem>>
    %c1_6 = arith.constant 1 : index
    %41 = memref.load %arg5[%c1_6] : memref<27xf32, #tpu.memory_space<smem>>
    %c2_7 = arith.constant 2 : index
    %42 = memref.load %arg5[%c2_7] : memref<27xf32, #tpu.memory_space<smem>>
    %c3_8 = arith.constant 3 : index
    %43 = memref.load %arg5[%c3_8] : memref<27xf32, #tpu.memory_space<smem>>
    %c4_9 = arith.constant 4 : index
    %44 = memref.load %arg5[%c4_9] : memref<27xf32, #tpu.memory_space<smem>>
    %c5_10 = arith.constant 5 : index
    %45 = memref.load %arg5[%c5_10] : memref<27xf32, #tpu.memory_space<smem>>
    %c6_11 = arith.constant 6 : index
    %46 = memref.load %arg5[%c6_11] : memref<27xf32, #tpu.memory_space<smem>>
    %c7_12 = arith.constant 7 : index
    %47 = memref.load %arg5[%c7_12] : memref<27xf32, #tpu.memory_space<smem>>
    %c8_13 = arith.constant 8 : index
    %48 = memref.load %arg5[%c8_13] : memref<27xf32, #tpu.memory_space<smem>>
    %c9_14 = arith.constant 9 : index
    %49 = memref.load %arg5[%c9_14] : memref<27xf32, #tpu.memory_space<smem>>
    %c10_15 = arith.constant 10 : index
    %50 = memref.load %arg5[%c10_15] : memref<27xf32, #tpu.memory_space<smem>>
    %c11_16 = arith.constant 11 : index
    %51 = memref.load %arg5[%c11_16] : memref<27xf32, #tpu.memory_space<smem>>
    %c12_17 = arith.constant 12 : index
    %52 = memref.load %arg5[%c12_17] : memref<27xf32, #tpu.memory_space<smem>>
    %c13_18 = arith.constant 13 : index
    %53 = memref.load %arg5[%c13_18] : memref<27xf32, #tpu.memory_space<smem>>
    %c14_19 = arith.constant 14 : index
    %54 = memref.load %arg5[%c14_19] : memref<27xf32, #tpu.memory_space<smem>>
    %c15_20 = arith.constant 15 : index
    %55 = memref.load %arg5[%c15_20] : memref<27xf32, #tpu.memory_space<smem>>
    %c16_21 = arith.constant 16 : index
    %56 = memref.load %arg5[%c16_21] : memref<27xf32, #tpu.memory_space<smem>>
    %c17_22 = arith.constant 17 : index
    %57 = memref.load %arg5[%c17_22] : memref<27xf32, #tpu.memory_space<smem>>
    %c18_23 = arith.constant 18 : index
    %58 = memref.load %arg5[%c18_23] : memref<27xf32, #tpu.memory_space<smem>>
    %c19_24 = arith.constant 19 : index
    %59 = memref.load %arg5[%c19_24] : memref<27xf32, #tpu.memory_space<smem>>
    %c20_25 = arith.constant 20 : index
    %60 = memref.load %arg5[%c20_25] : memref<27xf32, #tpu.memory_space<smem>>
    %c21_26 = arith.constant 21 : index
    %61 = memref.load %arg5[%c21_26] : memref<27xf32, #tpu.memory_space<smem>>
    %c22_27 = arith.constant 22 : index
    %62 = memref.load %arg5[%c22_27] : memref<27xf32, #tpu.memory_space<smem>>
    %c23_28 = arith.constant 23 : index
    %63 = memref.load %arg5[%c23_28] : memref<27xf32, #tpu.memory_space<smem>>
    %c24_29 = arith.constant 24 : index
    %64 = memref.load %arg5[%c24_29] : memref<27xf32, #tpu.memory_space<smem>>
    %c25_30 = arith.constant 25 : index
    %65 = memref.load %arg5[%c25_30] : memref<27xf32, #tpu.memory_space<smem>>
    %c26_31 = arith.constant 26 : index
    %66 = memref.load %arg5[%c26_31] : memref<27xf32, #tpu.memory_space<smem>>
    %c0_32 = arith.constant 0 : index
    %67 = memref.load %arg8[%c0_32] : memref<3xf32, #tpu.memory_space<smem>>
    %c1_33 = arith.constant 1 : index
    %68 = memref.load %arg8[%c1_33] : memref<3xf32, #tpu.memory_space<smem>>
    %c2_34 = arith.constant 2 : index
    %69 = memref.load %arg8[%c2_34] : memref<3xf32, #tpu.memory_space<smem>>
    %c0_35 = arith.constant 0 : index
    %70 = memref.load %arg9[%c0_35] : memref<3xf32, #tpu.memory_space<smem>>
    %c1_36 = arith.constant 1 : index
    %71 = memref.load %arg9[%c1_36] : memref<3xf32, #tpu.memory_space<smem>>
    %c2_37 = arith.constant 2 : index
    %72 = memref.load %arg9[%c2_37] : memref<3xf32, #tpu.memory_space<smem>>
    %c16_i32 = arith.constant 16 : i32
    %73 = arith.muli %arg1, %c16_i32 : i32
    %74 = tpu.assume_multiple %73, 8 : i32
    %c0_i32_38 = arith.constant 0 : i32
    %c0_i32_39 = arith.constant 0 : i32
    %75 = tpu.memref_slice %arg3[%arg0, %c0_i32_38, %74, %c0_i32_39] : memref<2x1x24x384xf32, #tpu.memory_space<any>> -> memref<1x1x24x384xf32, #tpu.memory_space<any>>
    %76 = tpu.memref_squeeze %75 : memref<1x1x24x384xf32, #tpu.memory_space<any>> -> memref<24x384xf32, #tpu.memory_space<any>>
    %c0_i32_40 = arith.constant 0 : i32
    %c0_i32_41 = arith.constant 0 : i32
    %77 = tpu.memref_slice %arg12[%9, %c0_i32_40, %c0_i32_41] : memref<2x24x384xf32, #tpu.memory_space<vmem>> -> memref<1x24x384xf32, #tpu.memory_space<vmem>>
    %78 = tpu.memref_squeeze %77 : memref<1x24x384xf32, #tpu.memory_space<vmem>> -> memref<24x384xf32, #tpu.memory_space<vmem>>
    %79 = tpu.memref_slice %arg13[%9] : memref<2x!tpu.dma_semaphore, #tpu.memory_space<semaphore_mem>> -> memref<1x!tpu.dma_semaphore, #tpu.memory_space<semaphore_mem>>
    %80 = tpu.memref_squeeze %79 : memref<1x!tpu.dma_semaphore, #tpu.memory_space<semaphore_mem>> -> memref<!tpu.dma_semaphore, #tpu.memory_space<semaphore_mem>>
    tpu.wait_dma2 semaphore(%80 : memref<!tpu.dma_semaphore, #tpu.memory_space<semaphore_mem>>) src(%76 : memref<24x384xf32, #tpu.memory_space<any>>) dst(%78 : memref<24x384xf32, #tpu.memory_space<vmem>>)
    %81 = arith.index_cast %9 : i32 to index
    %c0_42 = arith.constant 0 : index
    %c0_43 = arith.constant 0 : index
    %82 = vector.load %arg12[%81, %c0_42, %c0_43] : memref<2x24x384xf32, #tpu.memory_space<vmem>>, vector<1x24x384xf32>
    %83 = vector.shape_cast %82 : vector<1x24x384xf32> to vector<24x384xf32>
    %cst = arith.constant 0.000000e+00 : f32
    %84 = vector.broadcast %cst : f32 to vector<24x384xf32>
    %85 = arith.maximumf %83, %84 : vector<24x384xf32>
    %86 = vector.extract_strided_slice %85 {offsets = [0, 127], sizes = [16, 128], strides = [1, 1]} : vector<24x384xf32> to vector<16x128xf32>
    %87 = vector.extract_strided_slice %85 {offsets = [0, 128], sizes = [16, 128], strides = [1, 1]} : vector<24x384xf32> to vector<16x128xf32>
    %88 = vector.extract_strided_slice %85 {offsets = [0, 129], sizes = [16, 128], strides = [1, 1]} : vector<24x384xf32> to vector<16x128xf32>
    %89 = vector.extract_strided_slice %85 {offsets = [1, 127], sizes = [16, 128], strides = [1, 1]} : vector<24x384xf32> to vector<16x128xf32>
    %90 = vector.extract_strided_slice %85 {offsets = [1, 128], sizes = [16, 128], strides = [1, 1]} : vector<24x384xf32> to vector<16x128xf32>
    %91 = vector.extract_strided_slice %85 {offsets = [1, 129], sizes = [16, 128], strides = [1, 1]} : vector<24x384xf32> to vector<16x128xf32>
    %92 = vector.extract_strided_slice %85 {offsets = [2, 127], sizes = [16, 128], strides = [1, 1]} : vector<24x384xf32> to vector<16x128xf32>
    %93 = vector.extract_strided_slice %85 {offsets = [2, 128], sizes = [16, 128], strides = [1, 1]} : vector<24x384xf32> to vector<16x128xf32>
    %94 = vector.extract_strided_slice %85 {offsets = [2, 129], sizes = [16, 128], strides = [1, 1]} : vector<24x384xf32> to vector<16x128xf32>
    %95 = vector.extract_strided_slice %83 {offsets = [1, 128], sizes = [16, 128], strides = [1, 1]} : vector<24x384xf32> to vector<16x128xf32>
    %cst_44 = arith.constant 0.000000e+00 : f32
    %96 = vector.broadcast %cst_44 : f32 to vector<16x128xf32>
    %97 = arith.cmpf ogt, %95, %96 : vector<16x128xf32>
    %98 = vector.broadcast %13 : f32 to vector<16x128xf32>
    %99 = arith.mulf %98, %86 : vector<16x128xf32>
    %cst_45 = arith.constant 0.000000e+00 : f32
    %100 = vector.broadcast %cst_45 : f32 to vector<16x128xf32>
    %101 = arith.addf %100, %99 : vector<16x128xf32>
    %102 = vector.broadcast %14 : f32 to vector<16x128xf32>
    %103 = arith.mulf %102, %87 : vector<16x128xf32>
    %104 = arith.addf %101, %103 : vector<16x128xf32>
    %105 = vector.broadcast %15 : f32 to vector<16x128xf32>
    %106 = arith.mulf %105, %88 : vector<16x128xf32>
    %107 = arith.addf %104, %106 : vector<16x128xf32>
    %108 = vector.broadcast %16 : f32 to vector<16x128xf32>
    %109 = arith.mulf %108, %89 : vector<16x128xf32>
    %110 = arith.addf %107, %109 : vector<16x128xf32>
    %111 = vector.broadcast %17 : f32 to vector<16x128xf32>
    %112 = arith.mulf %111, %90 : vector<16x128xf32>
    %113 = arith.addf %110, %112 : vector<16x128xf32>
    %114 = vector.broadcast %18 : f32 to vector<16x128xf32>
    %115 = arith.mulf %114, %91 : vector<16x128xf32>
    %116 = arith.addf %113, %115 : vector<16x128xf32>
    %117 = vector.broadcast %19 : f32 to vector<16x128xf32>
    %118 = arith.mulf %117, %92 : vector<16x128xf32>
    %119 = arith.addf %116, %118 : vector<16x128xf32>
    %120 = vector.broadcast %20 : f32 to vector<16x128xf32>
    %121 = arith.mulf %120, %93 : vector<16x128xf32>
    %122 = arith.addf %119, %121 : vector<16x128xf32>
    %123 = vector.broadcast %21 : f32 to vector<16x128xf32>
    %124 = arith.mulf %123, %94 : vector<16x128xf32>
    %125 = arith.addf %122, %124 : vector<16x128xf32>
    %126 = vector.broadcast %40 : f32 to vector<16x128xf32>
    %127 = arith.mulf %126, %86 : vector<16x128xf32>
    %cst_46 = arith.constant 0.000000e+00 : f32
    %128 = vector.broadcast %cst_46 : f32 to vector<16x128xf32>
    %129 = arith.addf %128, %127 : vector<16x128xf32>
    %130 = vector.broadcast %41 : f32 to vector<16x128xf32>
    %131 = arith.mulf %130, %87 : vector<16x128xf32>
    %132 = arith.addf %129, %131 : vector<16x128xf32>
    %133 = vector.broadcast %42 : f32 to vector<16x128xf32>
    %134 = arith.mulf %133, %88 : vector<16x128xf32>
    %135 = arith.addf %132, %134 : vector<16x128xf32>
    %136 = vector.broadcast %43 : f32 to vector<16x128xf32>
    %137 = arith.mulf %136, %89 : vector<16x128xf32>
    %138 = arith.addf %135, %137 : vector<16x128xf32>
    %139 = vector.broadcast %44 : f32 to vector<16x128xf32>
    %140 = arith.mulf %139, %90 : vector<16x128xf32>
    %141 = arith.addf %138, %140 : vector<16x128xf32>
    %142 = vector.broadcast %45 : f32 to vector<16x128xf32>
    %143 = arith.mulf %142, %91 : vector<16x128xf32>
    %144 = arith.addf %141, %143 : vector<16x128xf32>
    %145 = vector.broadcast %46 : f32 to vector<16x128xf32>
    %146 = arith.mulf %145, %92 : vector<16x128xf32>
    %147 = arith.addf %144, %146 : vector<16x128xf32>
    %148 = vector.broadcast %47 : f32 to vector<16x128xf32>
    %149 = arith.mulf %148, %93 : vector<16x128xf32>
    %150 = arith.addf %147, %149 : vector<16x128xf32>
    %151 = vector.broadcast %48 : f32 to vector<16x128xf32>
    %152 = arith.mulf %151, %94 : vector<16x128xf32>
    %153 = arith.addf %150, %152 : vector<16x128xf32>
    %cst_47 = arith.constant 0.000000e+00 : f32
    %154 = vector.broadcast %cst_47 : f32 to vector<16x128xf32>
    %155 = arith.maximumf %125, %154 : vector<16x128xf32>
    %cst_48 = arith.constant 0.000000e+00 : f32
    %156 = vector.broadcast %cst_48 : f32 to vector<16x128xf32>
    %157 = arith.subf %156, %155 : vector<16x128xf32>
    %158 = math.exp %157 : vector<16x128xf32>
    %cst_49 = arith.constant 0.000000e+00 : f32
    %159 = vector.broadcast %cst_49 : f32 to vector<16x128xf32>
    %160 = arith.maximumf %153, %159 : vector<16x128xf32>
    %cst_50 = arith.constant 0.000000e+00 : f32
    %161 = vector.broadcast %cst_50 : f32 to vector<16x128xf32>
    %162 = arith.subf %161, %160 : vector<16x128xf32>
    %163 = math.exp %162 : vector<16x128xf32>
    %cst_51 = arith.constant 1.000000e+00 : f32
    %164 = vector.broadcast %cst_51 : f32 to vector<16x128xf32>
    %165 = arith.subf %164, %158 : vector<16x128xf32>
    %166 = vector.broadcast %67 : f32 to vector<16x128xf32>
    %167 = arith.mulf %166, %165 : vector<16x128xf32>
    %168 = vector.broadcast %70 : f32 to vector<16x128xf32>
    %169 = arith.mulf %168, %163 : vector<16x128xf32>
    %170 = arith.addf %167, %169 : vector<16x128xf32>
    %cst_52 = arith.constant 5.000000e-01 : f32
    %171 = vector.broadcast %cst_52 : f32 to vector<16x128xf32>
    %172 = arith.mulf %171, %170 : vector<16x128xf32>
    %173 = math.tanh %172 : vector<16x128xf32>
    %cst_53 = arith.constant 1.000000e+00 : f32
    %174 = vector.broadcast %cst_53 : f32 to vector<16x128xf32>
    %175 = arith.addf %173, %174 : vector<16x128xf32>
    %cst_54 = arith.constant 5.000000e-01 : f32
    %176 = vector.broadcast %cst_54 : f32 to vector<16x128xf32>
    %177 = arith.mulf %176, %175 : vector<16x128xf32>
    %c0_55 = arith.constant 0 : index
    %c0_56 = arith.constant 0 : index
    %c0_57 = arith.constant 0 : index
    %c0_58 = arith.constant 0 : index
    %178 = vector.load %arg11[%c0_55, %c0_56, %c0_57, %c0_58] : memref<1x3x16x128xf32, #tpu.memory_space<vmem>>, vector<1x1x16x128xf32>
    %179 = vector.shape_cast %178 : vector<1x1x16x128xf32> to vector<16x128xf32>
    %180 = vector.shape_cast %177 : vector<16x128xf32> to vector<1x1x16x128xf32>
    tpu.vector_store %arg11[%c0_55, %c0_56, %c0_57, %c0_58], %180 {strides = array<i32>} : memref<1x3x16x128xf32, #tpu.memory_space<vmem>>, vector<1x1x16x128xf32>,
    %c0_59 = arith.constant 0 : index
    %c0_60 = arith.constant 0 : index
    %c0_61 = arith.constant 0 : index
    %c0_62 = arith.constant 0 : index
    %181 = vector.load %arg2[%c0_59, %c0_60, %c0_61, %c0_62] : memref<1x3x16x128xf32, #tpu.memory_space<vmem>>, vector<1x1x16x128xf32>
    %182 = vector.shape_cast %181 : vector<1x1x16x128xf32> to vector<16x128xf32>
    %183 = arith.subf %182, %177 : vector<16x128xf32>
    %184 = arith.select %97, %183, %182 : vector<16x128xi1>, vector<16x128xf32>
    %c0_63 = arith.constant 0 : index
    %c0_64 = arith.constant 0 : index
    %c0_65 = arith.constant 0 : index
    %c0_66 = arith.constant 0 : index
    %185 = vector.load %arg10[%c0_63, %c0_64, %c0_65, %c0_66] : memref<1x3x16x128xf32, #tpu.memory_space<vmem>>, vector<1x1x16x128xf32>
    %186 = vector.shape_cast %185 : vector<1x1x16x128xf32> to vector<16x128xf32>
    %187 = vector.shape_cast %184 : vector<16x128xf32> to vector<1x1x16x128xf32>
    tpu.vector_store %arg10[%c0_63, %c0_64, %c0_65, %c0_66], %187 {strides = array<i32>} : memref<1x3x16x128xf32, #tpu.memory_space<vmem>>, vector<1x1x16x128xf32>,
    %188 = vector.broadcast %22 : f32 to vector<16x128xf32>
    %189 = arith.mulf %188, %86 : vector<16x128xf32>
    %cst_67 = arith.constant 0.000000e+00 : f32
    %190 = vector.broadcast %cst_67 : f32 to vector<16x128xf32>
    %191 = arith.addf %190, %189 : vector<16x128xf32>
    %192 = vector.broadcast %23 : f32 to vector<16x128xf32>
    %193 = arith.mulf %192, %87 : vector<16x128xf32>
    %194 = arith.addf %191, %193 : vector<16x128xf32>
    %195 = vector.broadcast %24 : f32 to vector<16x128xf32>
    %196 = arith.mulf %195, %88 : vector<16x128xf32>
    %197 = arith.addf %194, %196 : vector<16x128xf32>
    %198 = vector.broadcast %25 : f32 to vector<16x128xf32>
    %199 = arith.mulf %198, %89 : vector<16x128xf32>
    %200 = arith.addf %197, %199 : vector<16x128xf32>
    %201 = vector.broadcast %26 : f32 to vector<16x128xf32>
    %202 = arith.mulf %201, %90 : vector<16x128xf32>
    %203 = arith.addf %200, %202 : vector<16x128xf32>
    %204 = vector.broadcast %27 : f32 to vector<16x128xf32>
    %205 = arith.mulf %204, %91 : vector<16x128xf32>
    %206 = arith.addf %203, %205 : vector<16x128xf32>
    %207 = vector.broadcast %28 : f32 to vector<16x128xf32>
    %208 = arith.mulf %207, %92 : vector<16x128xf32>
    %209 = arith.addf %206, %208 : vector<16x128xf32>
    %210 = vector.broadcast %29 : f32 to vector<16x128xf32>
    %211 = arith.mulf %210, %93 : vector<16x128xf32>
    %212 = arith.addf %209, %211 : vector<16x128xf32>
    %213 = vector.broadcast %30 : f32 to vector<16x128xf32>
    %214 = arith.mulf %213, %94 : vector<16x128xf32>
    %215 = arith.addf %212, %214 : vector<16x128xf32>
    %216 = vector.broadcast %49 : f32 to vector<16x128xf32>
    %217 = arith.mulf %216, %86 : vector<16x128xf32>
    %cst_68 = arith.constant 0.000000e+00 : f32
    %218 = vector.broadcast %cst_68 : f32 to vector<16x128xf32>
    %219 = arith.addf %218, %217 : vector<16x128xf32>
    %220 = vector.broadcast %50 : f32 to vector<16x128xf32>
    %221 = arith.mulf %220, %87 : vector<16x128xf32>
    %222 = arith.addf %219, %221 : vector<16x128xf32>
    %223 = vector.broadcast %51 : f32 to vector<16x128xf32>
    %224 = arith.mulf %223, %88 : vector<16x128xf32>
    %225 = arith.addf %222, %224 : vector<16x128xf32>
    %226 = vector.broadcast %52 : f32 to vector<16x128xf32>
    %227 = arith.mulf %226, %89 : vector<16x128xf32>
    %228 = arith.addf %225, %227 : vector<16x128xf32>
    %229 = vector.broadcast %53 : f32 to vector<16x128xf32>
    %230 = arith.mulf %229, %90 : vector<16x128xf32>
    %231 = arith.addf %228, %230 : vector<16x128xf32>
    %232 = vector.broadcast %54 : f32 to vector<16x128xf32>
    %233 = arith.mulf %232, %91 : vector<16x128xf32>
    %234 = arith.addf %231, %233 : vector<16x128xf32>
    %235 = vector.broadcast %55 : f32 to vector<16x128xf32>
    %236 = arith.mulf %235, %92 : vector<16x128xf32>
    %237 = arith.addf %234, %236 : vector<16x128xf32>
    %238 = vector.broadcast %56 : f32 to vector<16x128xf32>
    %239 = arith.mulf %238, %93 : vector<16x128xf32>
    %240 = arith.addf %237, %239 : vector<16x128xf32>
    %241 = vector.broadcast %57 : f32 to vector<16x128xf32>
    %242 = arith.mulf %241, %94 : vector<16x128xf32>
    %243 = arith.addf %240, %242 : vector<16x128xf32>
    %cst_69 = arith.constant 0.000000e+00 : f32
    %244 = vector.broadcast %cst_69 : f32 to vector<16x128xf32>
    %245 = arith.maximumf %215, %244 : vector<16x128xf32>
    %cst_70 = arith.constant 0.000000e+00 : f32
    %246 = vector.broadcast %cst_70 : f32 to vector<16x128xf32>
    %247 = arith.subf %246, %245 : vector<16x128xf32>
    %248 = math.exp %247 : vector<16x128xf32>
    %cst_71 = arith.constant 0.000000e+00 : f32
    %249 = vector.broadcast %cst_71 : f32 to vector<16x128xf32>
    %250 = arith.maximumf %243, %249 : vector<16x128xf32>
    %cst_72 = arith.constant 0.000000e+00 : f32
    %251 = vector.broadcast %cst_72 : f32 to vector<16x128xf32>
    %252 = arith.subf %251, %250 : vector<16x128xf32>
    %253 = math.exp %252 : vector<16x128xf32>
    %cst_73 = arith.constant 1.000000e+00 : f32
    %254 = vector.broadcast %cst_73 : f32 to vector<16x128xf32>
    %255 = arith.subf %254, %248 : vector<16x128xf32>
    %256 = vector.broadcast %68 : f32 to vector<16x128xf32>
    %257 = arith.mulf %256, %255 : vector<16x128xf32>
    %258 = vector.broadcast %71 : f32 to vector<16x128xf32>
    %259 = arith.mulf %258, %253 : vector<16x128xf32>
    %260 = arith.addf %257, %259 : vector<16x128xf32>
    %cst_74 = arith.constant 5.000000e-01 : f32
    %261 = vector.broadcast %cst_74 : f32 to vector<16x128xf32>
    %262 = arith.mulf %261, %260 : vector<16x128xf32>
    %263 = math.tanh %262 : vector<16x128xf32>
    %cst_75 = arith.constant 1.000000e+00 : f32
    %264 = vector.broadcast %cst_75 : f32 to vector<16x128xf32>
    %265 = arith.addf %263, %264 : vector<16x128xf32>
    %cst_76 = arith.constant 5.000000e-01 : f32
    %266 = vector.broadcast %cst_76 : f32 to vector<16x128xf32>
    %267 = arith.mulf %266, %265 : vector<16x128xf32>
    %c0_77 = arith.constant 0 : index
    %c1_78 = arith.constant 1 : index
    %c0_79 = arith.constant 0 : index
    %c0_80 = arith.constant 0 : index
    %268 = vector.load %arg11[%c0_77, %c1_78, %c0_79, %c0_80] : memref<1x3x16x128xf32, #tpu.memory_space<vmem>>, vector<1x1x16x128xf32>
    %269 = vector.shape_cast %268 : vector<1x1x16x128xf32> to vector<16x128xf32>
    %270 = vector.shape_cast %267 : vector<16x128xf32> to vector<1x1x16x128xf32>
    tpu.vector_store %arg11[%c0_77, %c1_78, %c0_79, %c0_80], %270 {strides = array<i32>} : memref<1x3x16x128xf32, #tpu.memory_space<vmem>>, vector<1x1x16x128xf32>,
    %c0_81 = arith.constant 0 : index
    %c1_82 = arith.constant 1 : index
    %c0_83 = arith.constant 0 : index
    %c0_84 = arith.constant 0 : index
    %271 = vector.load %arg2[%c0_81, %c1_82, %c0_83, %c0_84] : memref<1x3x16x128xf32, #tpu.memory_space<vmem>>, vector<1x1x16x128xf32>
    %272 = vector.shape_cast %271 : vector<1x1x16x128xf32> to vector<16x128xf32>
    %273 = arith.subf %272, %267 : vector<16x128xf32>
    %274 = arith.select %97, %273, %272 : vector<16x128xi1>, vector<16x128xf32>
    %c0_85 = arith.constant 0 : index
    %c1_86 = arith.constant 1 : index
    %c0_87 = arith.constant 0 : index
    %c0_88 = arith.constant 0 : index
    %275 = vector.load %arg10[%c0_85, %c1_86, %c0_87, %c0_88] : memref<1x3x16x128xf32, #tpu.memory_space<vmem>>, vector<1x1x16x128xf32>
    %276 = vector.shape_cast %275 : vector<1x1x16x128xf32> to vector<16x128xf32>
    %277 = vector.shape_cast %274 : vector<16x128xf32> to vector<1x1x16x128xf32>
    tpu.vector_store %arg10[%c0_85, %c1_86, %c0_87, %c0_88], %277 {strides = array<i32>} : memref<1x3x16x128xf32, #tpu.memory_space<vmem>>, vector<1x1x16x128xf32>,
    %278 = vector.broadcast %31 : f32 to vector<16x128xf32>
    %279 = arith.mulf %278, %86 : vector<16x128xf32>
    %cst_89 = arith.constant 0.000000e+00 : f32
    %280 = vector.broadcast %cst_89 : f32 to vector<16x128xf32>
    %281 = arith.addf %280, %279 : vector<16x128xf32>
    %282 = vector.broadcast %32 : f32 to vector<16x128xf32>
    %283 = arith.mulf %282, %87 : vector<16x128xf32>
    %284 = arith.addf %281, %283 : vector<16x128xf32>
    %285 = vector.broadcast %33 : f32 to vector<16x128xf32>
    %286 = arith.mulf %285, %88 : vector<16x128xf32>
    %287 = arith.addf %284, %286 : vector<16x128xf32>
    %288 = vector.broadcast %34 : f32 to vector<16x128xf32>
    %289 = arith.mulf %288, %89 : vector<16x128xf32>
    %290 = arith.addf %287, %289 : vector<16x128xf32>
    %291 = vector.broadcast %35 : f32 to vector<16x128xf32>
    %292 = arith.mulf %291, %90 : vector<16x128xf32>
    %293 = arith.addf %290, %292 : vector<16x128xf32>
    %294 = vector.broadcast %36 : f32 to vector<16x128xf32>
    %295 = arith.mulf %294, %91 : vector<16x128xf32>
    %296 = arith.addf %293, %295 : vector<16x128xf32>
    %297 = vector.broadcast %37 : f32 to vector<16x128xf32>
    %298 = arith.mulf %297, %92 : vector<16x128xf32>
    %299 = arith.addf %296, %298 : vector<16x128xf32>
    %300 = vector.broadcast %38 : f32 to vector<16x128xf32>
    %301 = arith.mulf %300, %93 : vector<16x128xf32>
    %302 = arith.addf %299, %301 : vector<16x128xf32>
    %303 = vector.broadcast %39 : f32 to vector<16x128xf32>
    %304 = arith.mulf %303, %94 : vector<16x128xf32>
    %305 = arith.addf %302, %304 : vector<16x128xf32>
    %306 = vector.broadcast %58 : f32 to vector<16x128xf32>
    %307 = arith.mulf %306, %86 : vector<16x128xf32>
    %cst_90 = arith.constant 0.000000e+00 : f32
    %308 = vector.broadcast %cst_90 : f32 to vector<16x128xf32>
    %309 = arith.addf %308, %307 : vector<16x128xf32>
    %310 = vector.broadcast %59 : f32 to vector<16x128xf32>
    %311 = arith.mulf %310, %87 : vector<16x128xf32>
    %312 = arith.addf %309, %311 : vector<16x128xf32>
    %313 = vector.broadcast %60 : f32 to vector<16x128xf32>
    %314 = arith.mulf %313, %88 : vector<16x128xf32>
    %315 = arith.addf %312, %314 : vector<16x128xf32>
    %316 = vector.broadcast %61 : f32 to vector<16x128xf32>
    %317 = arith.mulf %316, %89 : vector<16x128xf32>
    %318 = arith.addf %315, %317 : vector<16x128xf32>
    %319 = vector.broadcast %62 : f32 to vector<16x128xf32>
    %320 = arith.mulf %319, %90 : vector<16x128xf32>
    %321 = arith.addf %318, %320 : vector<16x128xf32>
    %322 = vector.broadcast %63 : f32 to vector<16x128xf32>
    %323 = arith.mulf %322, %91 : vector<16x128xf32>
    %324 = arith.addf %321, %323 : vector<16x128xf32>
    %325 = vector.broadcast %64 : f32 to vector<16x128xf32>
    %326 = arith.mulf %325, %92 : vector<16x128xf32>
    %327 = arith.addf %324, %326 : vector<16x128xf32>
    %328 = vector.broadcast %65 : f32 to vector<16x128xf32>
    %329 = arith.mulf %328, %93 : vector<16x128xf32>
    %330 = arith.addf %327, %329 : vector<16x128xf32>
    %331 = vector.broadcast %66 : f32 to vector<16x128xf32>
    %332 = arith.mulf %331, %94 : vector<16x128xf32>
    %333 = arith.addf %330, %332 : vector<16x128xf32>
    %cst_91 = arith.constant 0.000000e+00 : f32
    %334 = vector.broadcast %cst_91 : f32 to vector<16x128xf32>
    %335 = arith.maximumf %305, %334 : vector<16x128xf32>
    %cst_92 = arith.constant 0.000000e+00 : f32
    %336 = vector.broadcast %cst_92 : f32 to vector<16x128xf32>
    %337 = arith.subf %336, %335 : vector<16x128xf32>
    %338 = math.exp %337 : vector<16x128xf32>
    %cst_93 = arith.constant 0.000000e+00 : f32
    %339 = vector.broadcast %cst_93 : f32 to vector<16x128xf32>
    %340 = arith.maximumf %333, %339 : vector<16x128xf32>
    %cst_94 = arith.constant 0.000000e+00 : f32
    %341 = vector.broadcast %cst_94 : f32 to vector<16x128xf32>
    %342 = arith.subf %341, %340 : vector<16x128xf32>
    %343 = math.exp %342 : vector<16x128xf32>
    %cst_95 = arith.constant 1.000000e+00 : f32
    %344 = vector.broadcast %cst_95 : f32 to vector<16x128xf32>
    %345 = arith.subf %344, %338 : vector<16x128xf32>
    %346 = vector.broadcast %69 : f32 to vector<16x128xf32>
    %347 = arith.mulf %346, %345 : vector<16x128xf32>
    %348 = vector.broadcast %72 : f32 to vector<16x128xf32>
    %349 = arith.mulf %348, %343 : vector<16x128xf32>
    %350 = arith.addf %347, %349 : vector<16x128xf32>
    %cst_96 = arith.constant 5.000000e-01 : f32
    %351 = vector.broadcast %cst_96 : f32 to vector<16x128xf32>
    %352 = arith.mulf %351, %350 : vector<16x128xf32>
    %353 = math.tanh %352 : vector<16x128xf32>
    %cst_97 = arith.constant 1.000000e+00 : f32
    %354 = vector.broadcast %cst_97 : f32 to vector<16x128xf32>
    %355 = arith.addf %353, %354 : vector<16x128xf32>
    %cst_98 = arith.constant 5.000000e-01 : f32
    %356 = vector.broadcast %cst_98 : f32 to vector<16x128xf32>
    %357 = arith.mulf %356, %355 : vector<16x128xf32>
    %c0_99 = arith.constant 0 : index
    %c2_100 = arith.constant 2 : index
    %c0_101 = arith.constant 0 : index
    %c0_102 = arith.constant 0 : index
    %358 = vector.load %arg11[%c0_99, %c2_100, %c0_101, %c0_102] : memref<1x3x16x128xf32, #tpu.memory_space<vmem>>, vector<1x1x16x128xf32>
    %359 = vector.shape_cast %358 : vector<1x1x16x128xf32> to vector<16x128xf32>
    %360 = vector.shape_cast %357 : vector<16x128xf32> to vector<1x1x16x128xf32>
    tpu.vector_store %arg11[%c0_99, %c2_100, %c0_101, %c0_102], %360 {strides = array<i32>} : memref<1x3x16x128xf32, #tpu.memory_space<vmem>>, vector<1x1x16x128xf32>,
    %c0_103 = arith.constant 0 : index
    %c2_104 = arith.constant 2 : index
    %c0_105 = arith.constant 0 : index
    %c0_106 = arith.constant 0 : index
    %361 = vector.load %arg2[%c0_103, %c2_104, %c0_105, %c0_106] : memref<1x3x16x128xf32, #tpu.memory_space<vmem>>, vector<1x1x16x128xf32>
    %362 = vector.shape_cast %361 : vector<1x1x16x128xf32> to vector<16x128xf32>
    %363 = arith.subf %362, %357 : vector<16x128xf32>
    %364 = arith.select %97, %363, %362 : vector<16x128xi1>, vector<16x128xf32>
    %c0_107 = arith.constant 0 : index
    %c2_108 = arith.constant 2 : index
    %c0_109 = arith.constant 0 : index
    %c0_110 = arith.constant 0 : index
    %365 = vector.load %arg10[%c0_107, %c2_108, %c0_109, %c0_110] : memref<1x3x16x128xf32, #tpu.memory_space<vmem>>, vector<1x1x16x128xf32>
    %366 = vector.shape_cast %365 : vector<1x1x16x128xf32> to vector<16x128xf32>
    %367 = vector.shape_cast %364 : vector<16x128xf32> to vector<1x1x16x128xf32>
    tpu.vector_store %arg10[%c0_107, %c2_108, %c0_109, %c0_110], %367 {strides = array<i32>} : memref<1x3x16x128xf32, #tpu.memory_space<vmem>>, vector<1x1x16x128xf32>,
    return
  }
  func.func @transform_0(%arg0: i32, %arg1: i32) -> (i32, i32, i32, i32) {
    %c0_i32 = arith.constant 0 : i32
    %c0_i32_0 = arith.constant 0 : i32
    %c0_i32_1 = arith.constant 0 : i32
    return %arg0, %c0_i32, %arg1, %c0_i32_0 : i32, i32, i32, i32
  }
  func.func @transform_2(%arg0: i32, %arg1: i32) -> i32 {
    %c0_i32 = arith.constant 0 : i32
    %c0_i32_0 = arith.constant 0 : i32
    return %c0_i32 : i32
  }
  func.func @transform_3(%arg0: i32, %arg1: i32) -> i32 {
    %c0_i32 = arith.constant 0 : i32
    %c0_i32_0 = arith.constant 0 : i32
    return %c0_i32 : i32
  }
  func.func @transform_4(%arg0: i32, %arg1: i32) -> i32 {
    %c0_i32 = arith.constant 0 : i32
    %c0_i32_0 = arith.constant 0 : i32
    return %c0_i32 : i32
  }
  func.func @transform_5(%arg0: i32, %arg1: i32) -> i32 {
    %c0_i32 = arith.constant 0 : i32
    %c0_i32_0 = arith.constant 0 : i32
    return %c0_i32 : i32
  }
  func.func @transform_6(%arg0: i32, %arg1: i32) -> i32 {
    %c0_i32 = arith.constant 0 : i32
    %c0_i32_0 = arith.constant 0 : i32
    return %c0_i32 : i32
  }
  func.func @transform_7(%arg0: i32, %arg1: i32) -> i32 {
    %c0_i32 = arith.constant 0 : i32
    %c0_i32_0 = arith.constant 0 : i32
    return %c0_i32 : i32
  }
  func.func @transform_8(%arg0: i32, %arg1: i32) -> (i32, i32, i32, i32) {
    %c0_i32 = arith.constant 0 : i32
    %c0_i32_0 = arith.constant 0 : i32
    %c0_i32_1 = arith.constant 0 : i32
    return %arg0, %c0_i32, %arg1, %c0_i32_0 : i32, i32, i32, i32
  }
  func.func @transform_9(%arg0: i32, %arg1: i32) -> (i32, i32, i32, i32) {
    %c0_i32 = arith.constant 0 : i32
    %c0_i32_0 = arith.constant 0 : i32
    %c0_i32_1 = arith.constant 0 : i32
    return %arg0, %c0_i32, %arg1, %c0_i32_0 : i32, i32, i32, i32
  }
}

</mosaic_0001>

<bundles_post_ra>
// kernel: tpu_custom_call.1
= control target key start
LH: loop header
LB: loop body
LE: loop exit
PB: predicated region body
PF: predicated region fallthrough
CT: control target
= control target key end

     0   :  { %s4818_s0 = inlined_call_operand.hbm [shape: f32[2,3,16,128], index: 0, kind: input, shape index: {}]   ;;  %s4819_s1 = inlined_call_operand.hbm [shape: f32[2,1,24,384], index: 1, kind: input, shape index: {}]   ;;  %s4820_s2 = inlined_call_operand.vmem [shape: f32[27], index: 2, kind: input, shape index: {}]   ;;  %s4821_s3 = inlined_call_operand.vmem [shape: f32[27], index: 3, kind: input, shape index: {}]   ;;  %s4822_s4 = inlined_call_operand.vmem [shape: f32[27], index: 4, kind: input, shape index: {}]   ;;  %s4823_s5 = inlined_call_operand.vmem [shape: f32[27], index: 5, kind: input, shape index: {}]   ;;  %s4824_s6 = inlined_call_operand.vmem [shape: f32[3], index: 6, kind: input, shape index: {}]   ;;  %s4825_s7 = inlined_call_operand.vmem [shape: f32[3], index: 7, kind: input, shape index: {}]   ;;  %s4826_s8 = inlined_call_operand.hbm [shape: f32[2,3,16,128], index: 8, kind: output, shape index: {0}]   ;;  %s4827_s9 = inlined_call_operand.hbm [shape: f32[2,3,16,128], index: 9, kind: output, shape index: {1}]  }
   0x1   :  { %4844 = sst [smem:[#allocation76_spill]] %s4818_s0 }
   0x2   :  { %4845 = sst [smem:[#allocation77_spill]] %s4819_s1 }
   0x3   :  { %4846 = sst [smem:[#allocation78_spill]] %s4820_s2 }
   0x4   :  { %4847 = sst [smem:[#allocation79_spill]] %s4821_s3 }
   0x5   :  { %4848 = sst [smem:[#allocation80_spill]] %s4822_s4 }
   0x6   :  { %4849 = sst [smem:[#allocation81_spill]] %s4823_s5 }
   0x7   :  { %4850 = sst [smem:[#allocation82_spill]] %s4824_s6 }
   0x8   :  { %4851 = sst [smem:[#allocation83_spill]] %s4825_s7 }
   0x9   :  { %4852 = sst [smem:[#allocation84_spill]] %s4826_s8 }
   0xa   :  { %4853 = sst [smem:[#allocation85_spill]] %s4827_s9 }
   0xb   :  { %15 = vsyncpa [#allocation5], 0 }
   0xc   :  { %17 = vsyncpa [#allocation5 + $0x1], 0 }
   0xd   :  { %18 = vsyncpa [#allocation7], 0 }
   0xe   :  { %19 = vsyncpa [#allocation10], 0 }
   0xf   :  { %20 = vsyncpa [#allocation13], 0 }
  0x10   :  { %21 = vsyncpa [#allocation16], 0 }
  0x11   :  { %22 = vsyncpa [#allocation6], 0 }
  0x12   :  { %24 = vsyncpa [#allocation6 + $0x1], 0 }
  0x13   :  { %25 = vsyncpa [#allocation19], 0 }
  0x14   :  { %27 = vsyncpa [#allocation19 + $0x1], 0  ;;  %s3247_s30 = smov 0   ;;  %s3249_s10 = smov 0  }
  0x15   :  { %s3251_s11 = smov 0   ;;  %s3253_s12 = smov 0  }
  0x16   :  { %s3255_s13 = smov 0   ;;  %s3257_s14 = smov 0  }
  0x17 LB: > { %4854 = sst [smem:[#allocation32_spill]] %s3161_s30  ;;  %s2593_s18 = sadd.s32 4294967295, %s3181_s14   ;;  %s3181_s14 = sphi %s3257_s14, %s33_s14   ;;  %s3177_s13 = sphi %s3255_s13, %s4958_s13   ;;  %s3173_s12 = sphi %s3253_s12, %s4957_s12   ;;  %s3169_s11 = sphi %s3251_s11, %s4956_s11   ;;  %s3165_s10 = sphi %s3249_s10, %s4955_s10   ;;  %s3161_s30 = sphi %s3247_s30, %s4954_s30  }
  0x18   : > { %4855 = sst [smem:[#allocation33_spill]] %s3165_s10  ;;  %p2595_p0 = scmp.ge.s32.totalorder %s3181_s14, 1 }
  0x19   : > { %4856 = sst [smem:[#allocation34_spill]] %s3169_s11  ;;  %p3284_p1 = scmp.eq.s32.totalorder %s2593_s18, 0 }
  0x1a   : > { %4857 = sst [smem:[#allocation35_spill]] %s3173_s12  ;;  %p260_p2 = scmp.lt.s32.totalorder %s3181_s14, 3 }
  0x1b   : > { %4858 = sst [smem:[#allocation36_spill]] %s3177_s13  ;;  %p2602_p4 = scmp.ge.s32.totalorder %s3181_s14, 2 }
  0x1c   : > { %4859 = sst [smem:[#allocation37_spill]] %s3181_s14  ;;  %p3289_p3 = pnand %p2595_p0, %p260_p2 }
  0x1d   : > { %s4860_s3 = sld [smem:[#allocation79_spill]]  ;;  %s3183_s16 = smov [#allocation9]  }
  0x1e   : > { %s4863_s5 = sld [smem:[#allocation81_spill]]  ;;  %p2724_p5 = pneg %p3289_p3 }
  0x1f   : > { %s4864_s2 = sld [smem:[#allocation78_spill]]  ;;  %s3184_s21 = smov [#allocation12]  }
  0x20   : > { %p3304_p6 = pnand %p2724_p5, %p3284_p1  ;;  %s4866_s4 = sld [smem:[#allocation80_spill]] }
  0x21   : > { %s3185_s22 = smov [#allocation8]   ;;  %s3186_s24 = smov [#allocation11]  }
  0x22   : > { %s4867_s6 = sld [smem:[#allocation82_spill]]  ;;  %p61_p8 = scmp.ne.s32.totalorder %s3169_s11, %s3165_s10 }
  0x23   : > { %s282_s17 = sshll.u32 %s4860_s3, 4  ;;  %s4868_s7 = sld [smem:[#allocation83_spill]]  ;;  %s283_s17 = int_to_ptr.vmem [resolvable:$true] %s282_s17 }
  0x24   : > { %s302_s23 = sshll.u32 %s4863_s5, 4  ;;  %p62_p9 = scmp.eq.s32.totalorder %s3181_s14, 0  ;;  %s303_s23 = int_to_ptr.vmem [resolvable:$true] %s302_s23 }
  0x25   : > { %s272_s26 = sshll.u32 %s4864_s2, 4  ;;  %p67_p11 = scmp.ne.s32.totalorder %s3165_s10, %s3161_s30  ;;  %s273_s26 = int_to_ptr.vmem [resolvable:$true] %s272_s26 }
  0x26   : > { %s292_s15 = sshll.u32 %s4866_s4, 4  ;;  %p3337_p10 = por %p62_p9, %p61_p8  ;;  %s293_s15 = int_to_ptr.vmem [resolvable:$true] %s292_s15 }
  0x27   : > { %2730 = dma.vmem_to_smem (!%p3304_p6), %s283_s17, 16, %s3183_s16, [#allocation10]  }
  0x28   : > { %2736 = dma.vmem_to_smem (!%p3304_p6), %s303_s23, 16, %s3184_s21, [#allocation13]  }
  0x29   : > { %2727 = dma.vmem_to_smem (!%p3304_p6), %s273_s26, 16, %s3185_s22, [#allocation7]  }
  0x2a   : > { %2733 = dma.vmem_to_smem (!%p3304_p6), %s293_s15, 16, %s3186_s24, [#allocation10]  }
  0x2b   : > { %s312_s17 = sshll.u32 %s4867_s6, 4  ;;  %s322_s16 = sshll.u32 %s4868_s7, 4  ;;  %s313_s17 = int_to_ptr.vmem [resolvable:$true] %s312_s17  ;;  %s323_s16 = int_to_ptr.vmem [resolvable:$true] %s322_s16 }
  0x2c   : > { %s3187_s26 = smov [#allocation14]   ;;  %s3188_s21 = smov [#allocation15]  }
  0x2d   : > { %2739 = dma.vmem_to_smem (!%p3304_p6), %s313_s17, 16, %s3187_s26, [#allocation13]  }
  0x2e   : > { %2742 = dma.vmem_to_smem (!%p3304_p6), %s323_s16, 16, %s3188_s21, [#allocation16]  }
  0x2f   : > { %s2594_s15 = sadd.s32 4294967294, %s3181_s14   ;;  %s45_s22 = sadd.s32 1, %s3177_s13 }
  0x30   : > { %p47_p7 = scmp.ge.s32.totalorder %s45_s22, 2  ;;  %s54_s24 = sadd.s32 1, %s3169_s11 }
  0x31   : > { %p219_p12 = scmp.eq.s32.totalorder %s2593_s18, 1  ;;  %p3349_p0 = por %p3284_p1, %p67_p11 }
  0x32   : > { %s4960_s22 = smov (%p47_p7, %s45_s22), 0  ;;  %p225_p5 = scmp.eq.s32.totalorder %s2594_s15, 1 }
  0x33   : > { %4869 = sst [smem:[#allocation38_spill]] %s4960_s22  ;;  %s49_s27 = ssub.s32 %s3177_s13, %s4960_s22 }
  0x34   : > { %p52_p13 = scmp.eq.s32.totalorder %s49_s27, 0  ;;  %p3353_p2 = por %p219_p12, %p61_p8 }
  0x35   : > { %p3360_p6 = por %p225_p5, %p67_p11  ;;  %p2760_p7 = scmp.lt.s32.totalorder %s3181_s14, 2 }
  0x36   : > { %s4872_s17 = scalar_select %p3353_p2, 1, 0 }
  0x37   : > { %s3358_s29 = scalar_select %p52_p13, %s3169_s11, %s54_s24  }
  0x38   : > { %4873 = sst [smem:[#allocation39_spill]] %s4872_s17  ;;  %s333_s16 = sand.u32 1, %s3169_s11  }
  0x39   : > { %4874 = sst [smem:[#allocation40_spill]] %s3358_s29  ;;  %s2690_s18 = smul.u32 48, %s3177_s13 }
  0x3a   : > { %s4875_s23 = scalar_select %p3360_p6, 1, 0 }
  0x3b   : > { %s2689_s26 = smul.u32 48, %s333_s16  ;;  %s4877_s0 = sld [smem:[#allocation76_spill]] }
  0x3c   : > { %4876 = sst [smem:[#allocation41_spill]] %s4875_s23  ;;  %p2744_p8 = pnand %p2760_p7, %p3337_p10 }
  0x3d   : > { %s337_s4 = scalar_lea.vmem [#allocation4], %s2689_s26  ;;  %s334_s24 = scalar_lea.sflag [#allocation5], %s333_s16 }
  0x3e   : > { %s347_s15 = sshll.u32 %s337_s4, 4  ;;  %s3189_s5 = smov 128   ;;  %s348_s15 = int_to_ptr.vmem [resolvable:$true] %s347_s15 }
  0x3f   : > { %s3190_s6 = smov 8   ;;  %359 = sbr.rel (%p3289_p3) target bundleno = 837 (0x345), region = 48 }
  0x41   : > { %s344_s2 = scalar_lea.hbm %s4877_s0, %s2690_s18 }
  0x42   : > { %s345_s3 = sshll.u32 %s344_s2, 4  ;;  %s346_s3 = int_to_ptr.hbm [resolvable:$true] %s345_s3 }
  0x43   : > { %2746 = dma.hbm_to_vmem [thread:$0]  (!%p2744_p8), %s346_s3, 768, %s348_s15, %s334_s24, %s3189_s5, %s3189_s5, %s3190_s6  }
  0x44   : > { %s3375_s7 = sand.u32 1, %s3165_s10  }
  0x45   : > { %4878 = sst [smem:[#allocation42_spill]] %s3375_s7  ;;  %s3378_s25 = smul.u32 48, %s3375_s7 }
  0x46   : > { %s362_s2 = scalar_lea.sflag [#allocation5], %s3375_s7 }
  0x47   : > { %s3382_s18 = scalar_lea.vmem [#allocation4], %s3378_s25 }
  0x48   : > { %4879 = sst [smem:[#allocation43_spill]] %s3382_s18 }
  0x49   : > { %3130 = dma.done.wait (%p3349_p0), %s362_s2, 768  }
  0x4a   : > { %3132 = vsyncadd (%p3349_p0), %s362_s2, 4294966528 }
  0x4b   : > { %3134 = dma.done.wait (%p3284_p1), [#allocation7], 16  }
  0x4c   : > { %3136 = vsyncadd (%p3284_p1), [#allocation7], 4294967280 }
  0x4d   : > { %3138 = dma.done.wait (%p3284_p1), [#allocation10], 32  }
  0x4e   : > { %3140 = vsyncadd (%p3284_p1), [#allocation10], 4294967264 }
  0x4f   : > { %3142 = dma.done.wait (%p3284_p1), [#allocation13], 32  }
  0x50   : > { %3144 = vsyncadd (%p3284_p1), [#allocation13], 4294967264 }
  0x51   : > { %3146 = dma.done.wait (%p3284_p1), [#allocation16], 16  }
  0x52   : > { %3148 = vsyncadd (%p3284_p1), [#allocation16], 4294967280 }
  0x53   : > { %401 = sfence }
  0x54   : > { %s2688_s3 = smul.u32 72, %s3173_s12  ;;  %s3191_s4 = smov [#allocation2]  }
  0x55   : > { %s475_s5 = sshll.u32 %s3191_s4, 4  ;;  %s3405_s6 = sld [smem:[#allocation8]]  ;;  %s476_s5 = int_to_ptr.vmem [resolvable:$true] %s475_s5 }
  0x56   : > { %s4880_s1 = sld [smem:[#allocation77_spill]] }
  0x57   : > { %s3410_s21 = sld [smem:[#allocation8 + $0x1]] }
  0x58   : > { %s3412_s27 = sld [smem:[#allocation8 + $0x2]] }
  0x5c   : > { %s461_s16 = scalar_lea.hbm %s4880_s1, %s2688_s3  ;;  %s3029_s4 = scalar_lea.hbm %s4880_s1, 144 }
  0x5d   : > { %s473_s26 = sshll.u32 %s461_s16, 4  ;;  %s474_s26 = int_to_ptr.hbm [resolvable:$true] %s473_s26 }
  0x5e   : > { %s3025_s19 = sshra.s32 %s474_s26, 4  ;;  %s3026_s19 = int_to_ptr.hbm [resolvable:$true] %s3025_s19 }
  0x5f   : > { %s3027_s15 = scalar_lea.hbm %s3026_s19, 72  ;;  %p3030_p3 = scmp.lt.s32.totalorder %s3026_s19, %s4880_s1 }
  0x60   : > { %p3028_p1 = scmp.ne.s32.totalorder %s3026_s19, %s3027_s15  ;;  %p3031_p9 = scmp.lt.s32.totalorder %s3029_s4, %s3027_s15 }
  0x62   : > { %p3032_p10 = por %p3031_p9, %p3030_p3 }
  0x64   : > { %p3033_p11 = pnand %p3032_p10, %p3028_p1 }
  0x66   : > { %3036 = shalt.err (!%p3033_p11)  }
  0x67   : > { %478 = dma.hbm_to_vmem [thread:$0]  %s474_s26, 1152, %s476_s5, [#allocation3] }
  0x68   : > { %s3420_s3 = sld [smem:[#allocation8 + $0x3]] }
  0x69   : > { %s3422_s20 = sld [smem:[#allocation8 + $0x4]] }
  0x6a   : > { %s3424_s28 = sld [smem:[#allocation8 + $0x5]] }
  0x6b   : > { %s3426_s16 = sld [smem:[#allocation8 + $0x6]] }
  0x6c   : > { %s3428_s13 = sld [smem:[#allocation8 + $0x7]] }
  0x6d   : > { %s3430_s24 = sld [smem:[#allocation8 + $0x8]] }
  0x6e   : > { %s3432_s2 = sld [smem:[#allocation8 + $0x9]] }
  0x6f   : > { %s3434_s0 = sld [smem:[#allocation8 + $0xa]] }
  0x70   : > { %s3436_s22 = sld [smem:[#allocation8 + $0xb]] }
  0x71   : > { %4881 = sst [smem:[#allocation44_spill]] %s3426_s16 }
  0x72   : > { %s3438_s19 = sld [smem:[#allocation8 + $0xc]] }
  0x73   : > { %s3440_s5 = sld [smem:[#allocation8 + $0xd]] }
  0x74   : > { %4882 = sst [smem:[#allocation45_spill]] %s3432_s2 }
  0x75   : > { %s3442_s26 = sld [smem:[#allocation8 + $0xe]] }
  0x76   : > { %s3444_s15 = sld [smem:[#allocation8 + $0xf]] }
  0x77   : > { %s3446_s4 = sld [smem:[#allocation8 + $0x10]] }
  0x78   : > { %4883 = sst [smem:[#allocation46_spill]] %s3438_s19 }
  0x79   : > { %s3448_s1 = sld [smem:[#allocation8 + $0x11]] }
  0x7a   : > { %s3450_s29 = sld [smem:[#allocation8 + $0x12]] }
  0x7b   : > { %s3452_s11 = sld [smem:[#allocation8 + $0x13]] }
  0x7c   : > { %4884 = sst [smem:[#allocation47_spill]] %s3444_s15 }
  0x7d   : > { %s3454_s10 = sld [smem:[#allocation8 + $0x14]] }
  0x7e   : > { %s3456_s14 = sld [smem:[#allocation8 + $0x15]] }
  0x7f   : > { %4885 = sst [smem:[#allocation48_spill]] %s3448_s1 }
  0x80   : > { %4886 = sst [smem:[#allocation49_spill]] %s3450_s29 }
  0x81   : > { %4887 = sst [smem:[#allocation50_spill]] %s3452_s11 }
  0x82   : > { %s3458_s23 = sld [smem:[#allocation8 + $0x16]] }
  0x83   : > { %4888 = sst [smem:[#allocation51_spill]] %s3454_s10 }
  0x84   : > { %4889 = sst [smem:[#allocation52_spill]] %s3456_s14 }
  0x85   : > { %s3460_s30 = sld [smem:[#allocation8 + $0x17]] }
  0x86   : > { %s3462_s17 = sld [smem:[#allocation8 + $0x18]] }
  0x87   : > { %s3464_s8 = sld [smem:[#allocation8 + $0x19]] }
  0x88   : > { %4890 = sst [smem:[#allocation53_spill]] %s3458_s23 }
  0x89   : > { %s3466_s9 = sld [smem:[#allocation8 + $0x1a]] }
  0x8a   : > { %s3468_s7 = sld [smem:[#allocation9]] }
  0x8b   : > { %4891 = sst [smem:[#allocation54_spill]] %s3460_s30 }
  0x8c   : > { %4892 = sst [smem:[#allocation55_spill]] %s3462_s17 }
  0x8d   : > { %4893 = sst [smem:[#allocation56_spill]] %s3464_s8 }
  0x8e   : > { %s3470_s12 = sld [smem:[#allocation9 + $0x1]] }
  0x8f   : > { %4894 = sst [smem:[#allocation57_spill]] %s3466_s9 }
  0x90   : > { %4895 = sst [smem:[#allocation58_spill]] %s3468_s7 }
  0x91   : > { %s3472_s29 = sld [smem:[#allocation9 + $0x2]] }
  0x92   : > { %s3474_s18 = sld [smem:[#allocation9 + $0x3]] }
  0x93   : > { %s3476_s10 = sld [smem:[#allocation9 + $0x4]] }
  0x94   : > { %s3478_s14 = sld [smem:[#allocation9 + $0x5]] }
  0x95   : > { %s3480_s23 = sld [smem:[#allocation9 + $0x6]] }
  0x96   : > { %s3482_s30 = sld [smem:[#allocation9 + $0x7]] }
  0x97   : > { %s3484_s17 = sld [smem:[#allocation9 + $0x8]] }
  0x98   : > { %4896 = sst [smem:[#allocation59_spill]] %s3474_s18 }
  0x99   : > { %s3486_s8 = sld [smem:[#allocation9 + $0x9]] }
  0x9a   : > { %s3488_s9 = sld [smem:[#allocation9 + $0xa]] }
  0x9b   : > { %4897 = sst [smem:[#allocation60_spill]] %s3480_s23 }
  0x9c   : > { %s3490_s11 = sld [smem:[#allocation9 + $0xb]] }
  0x9d   : > { %s3492_s15 = sld [smem:[#allocation9 + $0xc]] }
  0x9e   : > { %s3494_s19 = sld [smem:[#allocation9 + $0xd]] }
  0x9f   : > { %4898 = sst [smem:[#allocation61_spill]] %s3486_s8 }
  0xa0   : > { %4899 = sst [smem:[#allocation62_spill]] %s3488_s9 }
  0xa1   : > { %s3496_s2 = sld [smem:[#allocation9 + $0xe]] }
  0xa2   : > { %4900 = sst [smem:[#allocation63_spill]] %s3490_s11 }
  0xa3   : > { %4901 = sst [smem:[#allocation64_spill]] %s3492_s15 }
  0xa4   : > { %4902 = sst [smem:[#allocation65_spill]] %s3494_s19 }
  0xa5   : > { %s3498_s18 = sld [smem:[#allocation9 + $0xf]] }
  0xa6   : > { %s3500_s7 = sld [smem:[#allocation9 + $0x10]] }
  0xa7   : > { %4903 = sst [smem:[#allocation66_spill]] %s3496_s2 }
  0xa8   : > { %s3502_s23 = sld [smem:[#allocation9 + $0x11]] }
  0xa9   : > { %s3504_s16 = sld [smem:[#allocation9 + $0x12]] }
  0xaa   : > { %s3506_s8 = sld [smem:[#allocation9 + $0x13]] }
  0xab   : > { %4904 = sst [smem:[#allocation67_spill]] %s3498_s18 }
  0xac   : > { %4905 = sst [smem:[#allocation68_spill]] %s3500_s7 }
  0xad   : > { %s3508_s9 = sld [smem:[#allocation9 + $0x14]] }
  0xae   : > { %4906 = sst [smem:[#allocation69_spill]] %s3502_s23 }
  0xaf   : > { %4907 = sst [smem:[#allocation70_spill]] %s3504_s16 }
  0xb0   : > { %4908 = sst [smem:[#allocation71_spill]] %s3506_s8 }
  0xb1   : > { %s3510_s11 = sld [smem:[#allocation9 + $0x15]] }
  0xb2   : > { %s3512_s15 = sld [smem:[#allocation9 + $0x16]] }
  0xb3   : > { %4909 = sst [smem:[#allocation72_spill]] %s3508_s9 }
  0xb4   : > { %s3514_s19 = sld [smem:[#allocation9 + $0x17]] }
  0xb5   : > { %s3516_s2 = sld [smem:[#allocation9 + $0x18]] }
  0xb6   : > { %s3518_s18 = sld [smem:[#allocation9 + $0x19]] }
  0xb7   : > { %4910 = sst [smem:[#allocation73_spill]] %s3510_s11 }
  0xb8   : > { %4911 = sst [smem:[#allocation74_spill]] %s3512_s15  ;;  %s3535_s15 = scalar_lea.vmem [#allocation17], %s3378_s25 }
  0xb9   : > { %s3520_s7 = sld [smem:[#allocation9 + $0x1a]] }
  0xba   : > { %4912 = sst [smem:[#allocation75_spill]] %s3514_s19  ;;  %s3538_s19 = scalar_lea.vmem [#allocation18], %s3378_s25 }
  0xbb   : > { %s3522_s23 = sld [smem:[#allocation14]] }
  0xbc   : > { %s3524_s16 = sld [smem:[#allocation14 + $0x1]] }
  0xbd   : > { %s3526_s1 = sld [smem:[#allocation14 + $0x2]] }
  0xbe   : > { %s3528_s8 = sld [smem:[#allocation15]] }
  0xbf   : > { %s3530_s9 = sld [smem:[#allocation15 + $0x1]] }
  0xc0   : > { %s3532_s11 = sld [smem:[#allocation15 + $0x2]] }
  0xc1   : > { %3149 = dma.done.wait [#allocation3], 1152 }
  0xc2   : > { %3150 = vsyncadd [#allocation3], 4294966144  ;;  %v549_v0 = vld [vmem:[#allocation2 + $0x8] sm:$0xff]  ;;  %v593_v1 = vstv %s3412_s27  ;;  %v552_v2 = vld [vmem:[#allocation2 + $0x20] sm:$0xff]  ;;  %v578_v3 = vstv %s3410_s21  ;;  %s3192_s25 = smov 126   ;;  %s3193_s27 = smov 127   ;;  %v653_v14 = vstv %s3422_s20  ;;  %v675_v18 = vstv %s3424_s28 }
  0xc3   : > { %v3542_v4 = vmax.f32 %v549_v0, 0.0  ;;  %v3544_v5 = vmax.f32 %v552_v2, 0.0  ;;  %v550_v6 = vld [vmem:[#allocation2 + $0x10] sm:$0xff]  ;;  %v555_v9 = vld [vmem:[#allocation2 + $0x38] sm:$0xff]  ;;  %v553_v12 = vld [vmem:[#allocation2 + $0x28] sm:$0xff]  ;;  %vm634_vm0 = vcmask 1046528   ;;  %v748_v42 = vstv %s3428_s13 }
  0xc4   : > { %v3551_v11 = vmax.f32 %v550_v6, 0.0  ;;  %v3553_v13 = vmax.f32 %v555_v9, 0.0  ;;  %v3557_v15 = vmax.f32 %v553_v12, 0.0  ;;  %v556_v25 = vld [vmem:[#allocation2 + $0x40] sm:$0xff]  ;;  %v770_v45 = vstv %s3430_s24  ;;  %s4916_s13 = sld [smem:[#allocation58_spill]] }
  0xc5   : > { %v594_v7 = vmul.f32 %v593_v1, %v3542_v4  ;;  %v579_v8 = vmul.f32 %v578_v3, %v3542_v4  ;;  %v596_v10 = vmul.f32 %v593_v1, %v3544_v5  ;;  %v580_v16 = vmul.f32 %v578_v3, %v3544_v5  ;;  %s4921_s21 = sld [smem:[#allocation45_spill]] }
  0xc6   : > { %v595_v17 = vmul.f32 %v593_v1, %v3551_v11  ;;  %v655_v19 = vmul.f32 %v653_v14, %v3544_v5  ;;  %v656_v20 = vmul.f32 %v653_v14, %v3553_v13  ;;  %v654_v21 = vmul.f32 %v653_v14, %v3542_v4  ;;  %s4924_s20 = sld [smem:[#allocation68_spill]] }
  0xc7   : > { %602 = vrot.lane.b32.xlu1 %v594_v7, %s3192_s25  ;;  %583 = vrot.lane.b32.xlu0 %v579_v8, %s3193_s27  ;;  %v597_v22 = vmul.f32 %v593_v1, %v3557_v15  ;;  %v676_v23 = vmul.f32 %v675_v18, %v3542_v4  ;;  %v678_v24 = vmul.f32 %v675_v18, %v3544_v5  ;;  %v3571_v30 = vmax.f32 %v556_v25, 0.0  ;;  %s4925_s28 = sld [smem:[#allocation69_spill]] }
  0xc8   : > { %606 = vrot.lane.b32.xlu2 %v596_v10, %s3192_s25  ;;  %v661_v26 = vrot.slane %v655_v19, 1  ;;  %v663_v27 = vrot.slane %v656_v20, 1  ;;  %v660_v28 = vrot.slane %v654_v21, 1  ;;  %v680_v31 = vmul.f32 %v675_v18, %v3553_v13  ;;  %s4926_s24 = sld [smem:[#allocation47_spill]] }
  0xc9   : > { %v688_v29 = vrot.slane %v676_v23, 1  ;;  %v689_v32 = vrot.slane %v678_v24, 1  ;;  %v677_v35 = vmul.f32 %v675_v18, %v3551_v11  ;;  %v679_v36 = vmul.f32 %v675_v18, %v3557_v15 }
  0xca   : > { %v664_v33 = vsel %vm634_vm0, %v661_v26, %v663_v27  ;;  %v662_v34 = vsel %vm634_vm0, %v660_v28, %v661_v26  ;;  %v681_v38 = vmul.f32 %v675_v18, %v3571_v30  ;;  %v694_v39 = vrot.slane %v680_v31, 1 }
  0xcb   : > { %v690_v37 = vsel %vm634_vm0, %v688_v29, %v689_v32  ;;  %v691_v40 = vrot.slane %v677_v35, 1  ;;  %v692_v41 = vrot.slane %v679_v36, 1  ;;  %v750_v44 = vmul.f32 %v748_v42, %v3544_v5 }
  0xcc   : > { %v696_v43 = vrot.slane %v681_v38, 1  ;;  %v695_v46 = vsel %vm634_vm0, %v689_v32, %v694_v39  ;;  %v751_v48 = vmul.f32 %v748_v42, %v3553_v13  ;;  %v749_v49 = vmul.f32 %v748_v42, %v3542_v4 }
  0xcd   : > { %v693_v47 = vsel %vm634_vm0, %v691_v40, %v692_v41  ;;  %v771_v51 = vmul.f32 %v770_v45, %v3542_v4  ;;  %v773_v52 = vmul.f32 %v770_v45, %v3544_v5  ;;  %v756_v53 = vrot.slane %v750_v44, 2 }
  0xce   : > { %v697_v50 = vsel %vm634_vm0, %v692_v41, %v696_v43  ;;  %v758_v54 = vrot.slane %v751_v48, 2  ;;  %v755_v55 = vrot.slane %v749_v49, 2  ;;  %vm729_vm1 = vcmask 1045504  }
  0xcf   : > { %604 = vrot.lane.b32.xlu1 %v595_v17, %s3192_s25  ;;  %585 = vrot.lane.b32.xlu0 %v580_v16, %s3193_s27  ;;  %v783_v56 = vrot.slane %v771_v51, 2  ;;  %v775_v57 = vmul.f32 %v770_v45, %v3553_v13  ;;  %v784_v58 = vrot.slane %v773_v52, 2  ;;  %v772_v61 = vmul.f32 %v770_v45, %v3551_v11 }
  0xd0   : > { %608 = vrot.lane.b32.xlu2 %v597_v22, %s3192_s25  ;;  %v759_v59 = vsel %vm729_vm1, %v756_v53, %v758_v54  ;;  %v757_v60 = vsel %vm729_vm1, %v755_v55, %v756_v53  ;;  %v774_v62 = vmul.f32 %v770_v45, %v3557_v15  ;;  %v776_v0 = vmul.f32 %v770_v45, %v3571_v30 }
  0xd1   : > { %v785_v63 = vsel %vm729_vm1, %v783_v56, %v784_v58  ;;  %v789_v1 = vrot.slane %v775_v57, 2  ;;  %v786_v2 = vrot.slane %v772_v61, 2  ;;  %v820_v10 = vstv %s3470_s12  ;;  %s4915_s12 = sld [smem:[#allocation62_spill]] }
  0xd2   : > { %v787_v3 = vrot.slane %v774_v62, 2  ;;  %v791_v6 = vrot.slane %v776_v0, 2  ;;  %v822_v12 = vmul.f32 %v820_v10, %v3544_v5  ;;  %v821_v14 = vmul.f32 %v820_v10, %v3542_v4 }
  0xd3   : > { %v790_v7 = vsel %vm729_vm1, %v784_v58, %v789_v1  ;;  %v835_v16 = vstv %s3472_s29  ;;  %v893_v18 = vstv %s3476_s10  ;;  %v915_v24 = vstv %s3478_s14  ;;  %s4914_s10 = sld [smem:[#allocation44_spill]] }
  0xd4   : > { %v788_v8 = vsel %vm729_vm1, %v786_v2, %v787_v3  ;;  %v792_v9 = vsel %vm729_vm1, %v787_v3, %v791_v6  ;;  %v836_v17 = vmul.f32 %v835_v16, %v3542_v4  ;;  %v838_v19 = vmul.f32 %v835_v16, %v3544_v5  ;;  %s4917_s14 = sld [smem:[#allocation59_spill]] }
  0xd5   : > { %v837_v20 = vmul.f32 %v835_v16, %v3551_v11  ;;  %v895_v21 = vmul.f32 %v893_v18, %v3544_v5  ;;  %v896_v22 = vmul.f32 %v893_v18, %v3553_v13  ;;  %v894_v23 = vmul.f32 %v893_v18, %v3542_v4  ;;  %s4919_s29 = sld [smem:[#allocation60_spill]] }
  0xd6   : > { %v839_v25 = vmul.f32 %v835_v16, %v3557_v15  ;;  %v916_v26 = vmul.f32 %v915_v24, %v3542_v4  ;;  %v918_v29 = vmul.f32 %v915_v24, %v3544_v5  ;;  %v920_v36 = vmul.f32 %v915_v24, %v3553_v13 }
  0xd7   : > { %667 = vrot.lane.b32.xlu1 %v664_v33, %s3193_s27  ;;  %665 = vrot.lane.b32.xlu0 %v662_v34, %s3193_s27  ;;  %v901_v27 = vrot.slane %v895_v21, 1  ;;  %v903_v28 = vrot.slane %v896_v22, 1  ;;  %v900_v31 = vrot.slane %v894_v23, 1  ;;  %v919_v38 = vmul.f32 %v915_v24, %v3557_v15 }
  0xd8   : > { %698 = vrot.lane.b32.xlu2 %v690_v37, %s3192_s25  ;;  %v928_v32 = vrot.slane %v916_v26, 1  ;;  %v929_v34 = vrot.slane %v918_v29, 1  ;;  %v917_v37 = vmul.f32 %v915_v24, %v3551_v11  ;;  %v921_v40 = vmul.f32 %v915_v24, %v3571_v30 }
  0xd9   : > { %v904_v33 = vsel %vm634_vm0, %v901_v27, %v903_v28  ;;  %v902_v35 = vsel %vm634_vm0, %v900_v31, %v901_v27  ;;  %v934_v41 = vrot.slane %v920_v36, 1  ;;  %v932_v43 = vrot.slane %v919_v38, 1  ;;  %v551_v28 = vld [vmem:[#allocation2 + $0x18] sm:$0xff] }
  0xda   : > { %v930_v39 = vsel %vm634_vm0, %v928_v32, %v929_v34  ;;  %v931_v42 = vrot.slane %v917_v37, 1  ;;  %v987_v44 = vstv %s3482_s30  ;;  %v936_v45 = vrot.slane %v921_v40, 1  ;;  %s4913_s30 = sld [smem:[#allocation48_spill]] }
  0xdb   : > { %v935_v48 = vsel %vm634_vm0, %v929_v34, %v934_v41  ;;  %v1009_v51 = vstv %s3484_s17  ;;  %vm610_vm2 = vcmask 1031168   ;;  %v1171_v18 = vstv %s3434_s0  ;;  %s4918_s17 = sld [smem:[#allocation63_spill]] }
  0xdc   : > { %v933_v49 = vsel %vm634_vm0, %v931_v42, %v932_v43  ;;  %v937_v52 = vsel %vm634_vm0, %v932_v43, %v936_v45  ;;  %v1010_v53 = vmul.f32 %v1009_v51, %v3542_v4  ;;  %v1012_v56 = vmul.f32 %v1009_v51, %v3544_v5  ;;  %s4927_s0 = sld [smem:[#allocation50_spill]] }
  0xdd   : > { %v1014_v62 = vmul.f32 %v1009_v51, %v3553_v13  ;;  %v1013_v0 = vmul.f32 %v1009_v51, %v3557_v15  ;;  %v1015_v2 = vmul.f32 %v1009_v51, %v3571_v30  ;;  %v3679_v21 = vstv %s3436_s22  ;;  %s4928_s22 = sld [smem:[#allocation51_spill]] }
  0xde   : > { %v1022_v58 = vrot.slane %v1010_v53, 2  ;;  %v1187_v22 = vmul.f32 %v3679_v21, %v3542_v4  ;;  %v569_v24 = vstv %s3405_s6  ;;  %v1190_v29 = vmul.f32 %v3679_v21, %v3557_v15  ;;  %s4920_s6 = sld [smem:[#allocation65_spill]] }
  0xdf   : > { %702 = vrot.lane.b32.xlu1 %v695_v46, %s3192_s25  ;;  %700 = vrot.lane.b32.xlu0 %v693_v47, %s3192_s25  ;;  %v989_v46 = vmul.f32 %v987_v44, %v3544_v5  ;;  %v990_v47 = vmul.f32 %v987_v44, %v3553_v13  ;;  %v1028_v3 = vrot.slane %v1014_v62, 2  ;;  %v3697_v34 = vstv %s3440_s5  ;;  %s4929_s5 = sld [smem:[#allocation71_spill]] }
  0xe0   : > { %704 = vrot.lane.b32.xlu2 %v697_v50, %s3192_s25  ;;  %v988_v50 = vmul.f32 %v987_v44, %v3542_v4  ;;  %v3702_v36 = vstv %s3420_s3  ;;  %v1245_v37 = vmul.f32 %v3697_v34, %v3542_v4  ;;  %v3708_v38 = vmul.f32 %v3697_v34, %v3544_v5  ;;  %s3194_s3 = smov 1  }
  0xe1   : > { %v995_v54 = vrot.slane %v989_v46, 2  ;;  %v997_v55 = vrot.slane %v990_v47, 2  ;;  %v625_v41 = vmul.f32 %v3702_v36, %v3544_v5  ;;  %v623_v42 = vmul.f32 %v3702_v36, %v3542_v4 }
  0xe2   : > { %v994_v57 = vrot.slane %v988_v50, 2  ;;  %v627_v43 = vmul.f32 %v3702_v36, %v3553_v13  ;;  %v1251_v44 = vrot.slane %v1245_v37, 1  ;;  %v1252_v45 = vrot.slane %v3708_v38, 1 }
  0xe3   : > { %v3721_v46 = vstv %s3442_s26  ;;  %s4930_s26 = sld [smem:[#allocation72_spill]]  ;;  %vm1128_vm3 = vcmask 7168   ;;  %vm1141_vm5 = vcmask 1040384  }
  0xe4   : > { %v996_v61 = vsel %vm729_vm1, %v994_v57, %v995_v54  ;;  %v1267_v50 = vmul.f32 %v3721_v46, %v3542_v4 }
  0xe6   : > { %v1279_v53 = vrot.slane %v1267_v50, 1 }
  0xe7   : > { %762 = vrot.lane.b32.xlu1 %v759_v59, %s3193_s27  ;;  %760 = vrot.lane.b32.xlu0 %v757_v60, %s3193_s27  ;;  %v998_v59 = vsel %vm729_vm1, %v995_v54, %v997_v55  ;;  %v1023_v60 = vrot.slane %v1012_v56, 2 }
  0xe8   : > { %793 = vrot.lane.b32.xlu2 %v785_v63, %s3192_s25  ;;  %v1011_v63 = vmul.f32 %v1009_v51, %v3551_v11  ;;  %v3731_v51 = vmul.f32 %v3721_v46, %v3544_v5 }
  0xe9   : > { %v1024_v1 = vsel %vm729_vm1, %v1022_v58, %v1023_v60  ;;  %v639_v58 = vrot.slane %v625_v41, 1 }
  0xea   : > { %v1025_v6 = vrot.slane %v1011_v63, 2  ;;  %v1280_v54 = vrot.slane %v3731_v51, 1 }
  0xef   : > { %797 = vrot.lane.b32.xlu1 %v790_v7, %s3192_s25  ;;  %795 = vrot.lane.b32.xlu0 %v788_v8, %s3192_s25  ;;  %v1026_v7 = vrot.slane %v1013_v0, 2  ;;  %v1030_v8 = vrot.slane %v1015_v2, 2  ;;  %v1281_v0 = vsel %vm634_vm0, %v1279_v53, %v1280_v54  ;;  %v1189_v53 = vmul.f32 %v3679_v21, %v3544_v5 }
  0xf0   : > { %799 = vrot.lane.b32.xlu2 %v792_v9, %s3192_s25  ;;  %v1029_v9 = vsel %vm729_vm1, %v1023_v60, %v1028_v3  ;;  %v638_v60 = vrot.slane %v623_v42, 1 }
  0xf1   : > { %v1027_v10 = vsel %vm729_vm1, %v1025_v6, %v1026_v7  ;;  %v1268_v6 = vmul.f32 %v3721_v46, %v3551_v11 }
  0xf7   : > { %827 = vrot.lane.b32.xlu1 %v822_v12, %s3193_s27  ;;  %825 = vrot.lane.b32.xlu0 %v821_v14, %s3193_s27  ;;  %v1031_v12 = vsel %vm729_vm1, %v1026_v7, %v1030_v8  ;;  %v1270_v7 = vmul.f32 %v3721_v46, %v3557_v15 }
  0xf8   : > { %844 = vrot.lane.b32.xlu2 %v836_v17, %s3192_s25 }
  0xff   : > { %848 = vrot.lane.b32.xlu1 %v838_v19, %s3192_s25  ;;  %846 = vrot.lane.b32.xlu0 %v837_v20, %s3192_s25  ;;  %v1172_v19 = vmul.f32 %v1171_v18, %v3542_v4  ;;  %v548_v20 = vld [vmem:[#allocation2] sm:$0xff] }
 0x100   : > { %850 = vrot.lane.b32.xlu2 %v839_v25, %s3192_s25  ;;  %v3683_v23 = vmax.f32 %v548_v20, 0.0  ;;  %v1188_v25 = vmul.f32 %v3679_v21, %v3551_v11 }
 0x102   : > { %v570_v27 = vmul.f32 %v569_v24, %v3683_v23 }
 0x107   : > { %907 = vrot.lane.b32.xlu1 %v904_v33, %s3193_s27  ;;  %905 = vrot.lane.b32.xlu0 %v902_v35, %s3193_s27  ;;  %v3699_v35 = vmax.f32 %v551_v28, 0.0 }
 0x108   : > { %938 = vrot.lane.b32.xlu2 %v930_v39, %s3192_s25  ;;  %v571_v39 = vmul.f32 %v569_v24, %v3542_v4 }
 0x109   : > { %v572_v47 = vmul.f32 %v569_v24, %v3699_v35  ;;  %v624_v38 = vmul.f32 %v3702_v36, %v3699_v35 }
 0x10f   : > { %942 = vrot.lane.b32.xlu1 %v935_v48, %s3192_s25  ;;  %940 = vrot.lane.b32.xlu0 %v933_v49, %s3192_s25  ;;  %v573_v48 = vmul.f32 %v569_v24, %v3544_v5 }
 0x110   : > { %944 = vrot.lane.b32.xlu2 %v937_v52, %s3192_s25  ;;  %v1253_v52 = vsel %vm634_vm0, %v1251_v44, %v1252_v45 }
 0x117   : > { %1001 = vrot.lane.b32.xlu1 %v998_v59, %s3193_s27  ;;  %999 = vrot.lane.b32.xlu0 %v996_v61, %s3193_s27  ;;  %v643_v59 = vrot.slane %v627_v43, 1 }
 0x118   : > { %1032 = vrot.lane.b32.xlu2 %v1024_v1, %s3192_s25 }
 0x119   : > { %v644_v8 = vsel %vm634_vm0, %v639_v58, %v643_v59 }
 0x11f   : > { %1036 = vrot.lane.b32.xlu1 %v1029_v9, %s3192_s25  ;;  %1034 = vrot.lane.b32.xlu0 %v1027_v10, %s3192_s25  ;;  %v640_v9 = vsel %vm634_vm0, %v638_v60, %v639_v58  ;;  %v1282_v10 = vrot.slane %v1268_v6, 1 }
 0x120   : > { %1038 = vrot.lane.b32.xlu2 %v1031_v12, %s3192_s25  ;;  %v1283_v12 = vrot.slane %v1270_v7, 1 }
 0x122   : > { %v607_v14 = vpop.permute.xlu2 %606  ;;  %v1284_v20 = vsel %vm634_vm0, %v1282_v10, %v1283_v12  ;;  %v554_v10 = vld [vmem:[#allocation2 + $0x30] sm:$0xff] }
 0x127   : > { %1176 = vrot.lane.b32.xlu1 %v1172_v19, %s3193_s27  ;;  %1195 = vrot.lane.b32.xlu0 %v1187_v22, %s3192_s25 }
 0x12a   : > { %v609_v16 = vpop.permute.xlu2 %608 }
 0x12b   : > { %v612_v17 = vsel %vm610_vm2, %v607_v14, %v609_v16  ;;  %v1272_v16 = vmul.f32 %v3721_v46, %v3571_v30 }
 0x12f   : > { %1197 = vrot.lane.b32.xlu1 %v1188_v25, %s3192_s25  ;;  %1201 = vrot.lane.b32.xlu0 %v1190_v29, %s3192_s25  ;;  %v1173_v25 = vmul.f32 %v1171_v18, %v3544_v5 }
 0x131   : > { %1178 = vrot.lane.b32.xlu2 %v1173_v25, %s3193_s27 }
 0x132   : > { %v3689_v26 = vpop.permute.xlu2 %698 }
 0x137   : > { %1256 = vrot.lane.b32.xlu1 %v1253_v52, %s3193_s27  ;;  %1289 = vrot.lane.b32.xlu0 %v1281_v0, %s3192_s25 }
 0x139   : > { %v603_v31 = vpop.permute.xlu1 %602  ;;  %v584_v32 = vpop.permute.xlu0 %583  ;;  %1199 = vrot.lane.b32.xlu2 %v1189_v53, %s3192_s25 }
 0x13a   : > { %v589_v33 = vadd.f32 %v584_v32, %v570_v27  ;;  %v3725_v49 = vpop.permute.xlu2 %704  ;;  %v590_v55 = vadd.f32 %v584_v32, %v571_v39  ;;  %v1287_v27 = vrot.slane %v1272_v16, 1  ;;  %v1338_v32 = vstv %s3446_s4  ;;  %s4931_s4 = sld [smem:[#allocation53_spill]] }
 0x13b   : > { %v3774_v37 = vmul.f32 %v1338_v32, %v3544_v5  ;;  %v3777_v39 = vstv %s4913_s30  ;;  %v3828_v16 = vmax.f32 %v554_v10, 0.0  ;;  %v811_v10 = vstv %s4916_s13  ;;  %s4932_s30 = sld [smem:[#allocation54_spill]] }
 0x13c   : > { %v3711_v40 = vadd.f32 %v603_v31, %v589_v33  ;;  %v1339_v33 = vmul.f32 %v1338_v32, %v3542_v4  ;;  %v1361_v18 = vmul.f32 %v3777_v39, %v3542_v4  ;;  %v3783_v41 = vmul.f32 %v3777_v39, %v3544_v5  ;;  %s4935_s13 = sld [smem:[#allocation56_spill]] }
 0x13d   : > { %v1346_v43 = vrot.slane %v3774_v37, 2  ;;  %v1362_v21 = vmul.f32 %v3777_v39, %v3551_v11  ;;  %v1364_v59 = vmul.f32 %v3777_v39, %v3557_v15  ;;  %v1341_v37 = vmul.f32 %v1338_v32, %v3553_v13 }
 0x13e   : > { %v1345_v42 = vrot.slane %v1339_v33, 2  ;;  %v1373_v44 = vrot.slane %v1361_v18, 2 }
 0x13f   : > { %1291 = vrot.lane.b32.xlu1 %v1284_v20, %s3192_s25  ;;  %v1376_v60 = vrot.slane %v1362_v21, 2  ;;  %v1348_v51 = vrot.slane %v1341_v37, 2 }
 0x140   : > { %v1347_v52 = vsel %vm729_vm1, %v1345_v42, %v1346_v43 }
 0x141   : > { %v605_v56 = vpop.permute.xlu1 %604  ;;  %v586_v57 = vpop.permute.xlu0 %585  ;;  %v1349_v21 = vsel %vm729_vm1, %v1346_v43, %v1348_v51 }
 0x142   : > { %v611_v61 = vsel %vm610_vm2, %v603_v31, %v605_v56  ;;  %v591_v62 = vadd.f32 %v586_v57, %v572_v47  ;;  %v592_v63 = vadd.f32 %v586_v57, %v573_v48  ;;  %v1288_v31 = vsel %vm634_vm0, %v1283_v12, %v1287_v27 }
 0x143   : > { %v618_v1 = vadd.f32 %v611_v61, %v590_v55  ;;  %1295 = vrot.lane.b32.xlu0 %v1288_v31, %s3192_s25  ;;  %v1374_v47 = vrot.slane %v3783_v41, 2  ;;  %v1377_v61 = vrot.slane %v1364_v59, 2  ;;  %v1271_v12 = vmul.f32 %v3721_v46, %v3553_v13 }
 0x144   : > { %v3743_v2 = vadd.f32 %v607_v14, %v591_v62  ;;  %v620_v3 = vadd.f32 %v612_v17, %v592_v63  ;;  %v3753_v17 = vpop.permute.xlu2 %793  ;;  %v1247_v62 = vmul.f32 %v3697_v34, %v3553_v13  ;;  %v1366_v63 = vmul.f32 %v3777_v39, %v3571_v30 }
 0x145   : > { %v650_v19 = vadd.f32 %v640_v9, %v618_v1  ;;  %v1375_v57 = vsel %vm729_vm1, %v1373_v44, %v1374_v47  ;;  %v1378_v0 = vsel %vm729_vm1, %v1376_v60, %v1377_v61  ;;  %v626_v46 = vmul.f32 %v3702_v36, %v3828_v16 }
 0x146   : > { %v652_v14 = vadd.f32 %v644_v8, %v620_v3  ;;  %v1254_v6 = vrot.slane %v1247_v62, 1  ;;  %v1381_v7 = vrot.slane %v1366_v63, 2  ;;  %v636_v27 = vrot.slane %v624_v38, 1 }
 0x147   : > { %1350 = vrot.lane.b32.xlu1 %v1347_v52, %s3193_s27  ;;  %v716_v31 = vstv %s4914_s10  ;;  %v641_v18 = vrot.slane %v626_v46, 1  ;;  %s4933_s10 = sld [smem:[#allocation74_spill]] }
 0x148   : > { %v1255_v8 = vsel %vm634_vm0, %v1252_v45, %v1254_v6  ;;  %v1382_v9 = vsel %vm729_vm1, %v1377_v61, %v1381_v7  ;;  %v622_v45 = vmul.f32 %v3702_v36, %v3683_v23  ;;  %v719_v44 = vmul.f32 %v716_v31, %v3699_v35 }
 0x149   : > { %v3756_v22 = vpop.permute.xlu1 %667  ;;  %v3758_v24 = vpop.permute.xlu0 %665  ;;  %1258 = vrot.lane.b32.xlu2 %v1255_v8, %s3193_s27  ;;  %v717_v36 = vmul.f32 %v716_v31, %v3683_v23  ;;  %v722_v32 = vmul.f32 %v716_v31, %v3553_v13  ;;  %v642_v59 = vsel %vm634_vm0, %v636_v27, %v641_v18  ;;  %v1410_v8 = vstv %s4915_s12  ;;  %s4934_s12 = sld [smem:[#allocation75_spill]] }
 0x14a   : > { %v3765_v28 = vadd.f32 %v3756_v22, %v652_v14  ;;  %v672_v29 = vadd.f32 %v3758_v24, %v650_v19  ;;  %v1285_v14 = vrot.slane %v1271_v12, 1  ;;  %v731_v60 = vrot.slane %v719_v44, 2 }
 0x14b   : > { %1383 = vrot.lane.b32.xlu0 %v1375_v57, %s3192_s25  ;;  %v738_v6 = vrot.slane %v722_v32, 2  ;;  %v1411_v43 = vmul.f32 %v1410_v8, %v3542_v4  ;;  %v813_v44 = vmul.f32 %v811_v10, %v3542_v4 }
 0x14c   : > { %v3794_v56 = vpop.permute.xlu2 %799  ;;  %v1286_v25 = vsel %vm634_vm0, %v1280_v54, %v1285_v14  ;;  %v720_v54 = vmul.f32 %v716_v31, %v3544_v5 }
 0x14e   : > { %v734_v62 = vrot.slane %v720_v54, 2 }
 0x14f   : > { %1385 = vrot.lane.b32.xlu1 %v1378_v0, %s3192_s25  ;;  %v730_v0 = vrot.slane %v717_v36, 2 }
 0x151   : > { %v3787_v48 = vpop.permute.xlu1 %702  ;;  %v701_v50 = vpop.permute.xlu0 %700  ;;  %1293 = vrot.lane.b32.xlu2 %v1286_v25, %s3192_s25  ;;  %v732_v25 = vsel %vm729_vm1, %v730_v0, %v731_v60 }
 0x152   : > { %v706_v55 = vsel %vm610_vm2, %v3689_v26, %v701_v50  ;;  %v721_v50 = vmul.f32 %v716_v31, %v3828_v16  ;;  %v707_v37 = vsel %vm610_vm2, %v3787_v48, %v3725_v49 }
 0x153   : > { %v3800_v58 = vadd.f32 %v706_v55, %v672_v29  ;;  %1389 = vrot.lane.b32.xlu0 %v1382_v9, %s3192_s25  ;;  %v635_v29 = vrot.slane %v622_v45, 1  ;;  %v718_v55 = vmul.f32 %v716_v31, %v3542_v4  ;;  %v1365_v9 = vmul.f32 %v3777_v39, %v3553_v13 }
 0x154   : > { %v3822_v34 = vpop.permute.xlu2 %844  ;;  %v736_v63 = vrot.slane %v721_v50, 2  ;;  %v651_v45 = vadd.f32 %v642_v59, %v3743_v2  ;;  %v739_v39 = vsel %vm729_vm1, %v734_v62, %v738_v6  ;;  %v812_v31 = vmul.f32 %v811_v10, %v3683_v23 }
 0x155   : > { %v637_v42 = vsel %vm634_vm0, %v635_v29, %v636_v27  ;;  %v733_v7 = vrot.slane %v718_v55, 2  ;;  %v1379_v38 = vrot.slane %v1365_v9, 2  ;;  %v3899_v50 = vstv %s4918_s17  ;;  %s4937_s17 = sld [smem:[#allocation64_spill]] }
 0x156   : > { %v649_v57 = vadd.f32 %v637_v42, %v3711_v40  ;;  %v862_v40 = vstv %s4917_s14  ;;  %v737_v14 = vsel %vm729_vm1, %v731_v60, %v736_v63  ;;  %v1426_v32 = vmul.f32 %v3899_v50, %v3542_v4  ;;  %s4936_s14 = sld [smem:[#allocation61_spill]] }
 0x157   : > { %1415 = vrot.lane.b32.xlu1 %v1411_v43, %s3193_s27  ;;  %v735_v29 = vsel %vm729_vm1, %v733_v7, %v734_v62  ;;  %v865_v2 = vmul.f32 %v862_v40, %v3699_v35  ;;  %v867_v18 = vmul.f32 %v862_v40, %v3828_v16  ;;  %v863_v42 = vmul.f32 %v862_v40, %v3683_v23 }
 0x158   : > { %v671_v61 = vadd.f32 %v3758_v24, %v649_v57  ;;  %v3893_v51 = vmul.f32 %v862_v40, %v3544_v5  ;;  %v1380_v54 = vsel %vm729_vm1, %v1374_v47, %v1379_v38  ;;  %v3903_v49 = vmul.f32 %v862_v40, %v3553_v13 }
 0x159   : > { %v3813_v1 = vpop.permute.xlu1 %762  ;;  %v3815_v3 = vpop.permute.xlu0 %760  ;;  %1352 = vrot.lane.b32.xlu2 %v1349_v21, %s3193_s27  ;;  %v715_v55 = vadd.f32 %v707_v37, %v3765_v28  ;;  %v876_v41 = vrot.slane %v865_v2, 1  ;;  %v956_v21 = vstv %s4919_s29  ;;  %v881_v59 = vrot.slane %v867_v18, 1  ;;  %s4938_s29 = sld [smem:[#allocation57_spill]] }
 0x15a   : > { %v712_v24 = vadd.f32 %v3689_v26, %v671_v61  ;;  %v673_v26 = vadd.f32 %v3756_v22, %v651_v45  ;;  %v875_v60 = vrot.slane %v863_v42, 1  ;;  %v814_v61 = vmul.f32 %v811_v10, %v3699_v35 }
 0x15b   : > { %1434 = vrot.lane.b32.xlu0 %v1426_v32, %s3192_s25  ;;  %v815_v62 = vmul.f32 %v811_v10, %v3544_v5  ;;  %v879_v63 = vrot.slane %v3893_v51, 1  ;;  %v864_v28 = vmul.f32 %v862_v40, %v3542_v4  ;;  %v883_v6 = vrot.slane %v3903_v49, 1 }
 0x15c   : > { %v3845_v33 = vpop.permute.xlu2 %850  ;;  %v714_v22 = vadd.f32 %v3787_v48, %v673_v26  ;;  %v744_v36 = vadd.f32 %v732_v25, %v712_v24  ;;  %v1427_v48 = vmul.f32 %v3899_v50, %v3551_v11  ;;  %v3925_v43 = vmul.f32 %v956_v21, %v3699_v35 }
 0x15d   : > { %v1412_v38 = vmul.f32 %v1410_v8, %v3544_v5  ;;  %v747_v10 = vadd.f32 %v739_v39, %v715_v55  ;;  %v745_v45 = vadd.f32 %v735_v29, %v3800_v58  ;;  %v957_v24 = vmul.f32 %v956_v21, %v3683_v23 }
 0x15e   : > { %v766_v47 = vadd.f32 %v3815_v3, %v744_v36  ;;  %v746_v0 = vadd.f32 %v737_v14, %v714_v22  ;;  %v882_v25 = vsel %vm634_vm0, %v876_v41, %v881_v59  ;;  %v1483_v26 = vstv %s4920_s6  ;;  %s4939_s6 = sld [smem:[#allocation67_spill]] }
 0x15f   : > { %1436 = vrot.lane.b32.xlu1 %v1427_v48, %s3192_s25  ;;  %v878_v37 = vrot.slane %v864_v28, 1  ;;  %v1429_v18 = vmul.f32 %v3899_v50, %v3557_v15  ;;  %v1484_v8 = vmul.f32 %v1483_v26, %v3542_v4  ;;  %v3940_v58 = vmul.f32 %v1483_v26, %v3544_v5 }
 0x160   : > { %v807_v14 = vadd.f32 %v3753_v17, %v766_v47  ;;  %v768_v39 = vadd.f32 %v3813_v1, %v746_v0  ;;  %v769_v29 = vadd.f32 %v3813_v1, %v747_v10  ;;  %v767_v42 = vadd.f32 %v3815_v3, %v745_v45 }
 0x161   : > { %v3834_v19 = vpop.permute.xlu1 %797  ;;  %v3836_v20 = vpop.permute.xlu0 %795  ;;  %1387 = vrot.lane.b32.xlu2 %v1380_v54, %s3192_s25  ;;  %v970_v51 = vrot.slane %v3925_v43, 2  ;;  %v969_v22 = vrot.slane %v957_v24, 2  ;;  %v1490_v36 = vrot.slane %v1484_v8, 1  ;;  %v1491_v49 = vrot.slane %v3940_v58, 1 }
 0x162   : > { %v1050_v32 = vmax.f32 %v807_v14, 0.0  ;;  %v884_v10 = vsel %vm634_vm0, %v879_v63, %v883_v6 }
 0x163   : > { %1440 = vrot.lane.b32.xlu0 %v1429_v18, %s3192_s25  ;;  %v1492_v59 = vsel %vm634_vm0, %v1490_v36, %v1491_v49 }
 0x164   : > { %v3870_v12 = vpop.permute.xlu2 %938 }
 0x167   : > { %1495 = vrot.lane.b32.xlu1 %v1492_v59, %s3193_s27 }
 0x169   : > { %v3853_v52 = vpop.permute.xlu1 %827  ;;  %v3855_v53 = vpop.permute.xlu0 %825  ;;  %1417 = vrot.lane.b32.xlu2 %v1412_v38, %s3193_s27 }
 0x16a   : > { %v831_v57 = vadd.f32 %v3855_v53, %v812_v31  ;;  %v877_v31 = vsel %vm634_vm0, %v875_v60, %v876_v41  ;;  %v833_v55 = vadd.f32 %v3853_v52, %v814_v61  ;;  %v961_v41 = vmul.f32 %v956_v21, %v3828_v16 }
 0x16b   : > { %v802_v60 = vsel %vm610_vm2, %v3834_v19, %v3794_v56  ;;  %v834_v48 = vadd.f32 %v3853_v52, %v815_v62  ;;  %v832_v61 = vadd.f32 %v3855_v53, %v813_v44  ;;  %v1486_v56 = vmul.f32 %v1483_v26, %v3553_v13 }
 0x16c   : > { %v858_v40 = vadd.f32 %v3822_v34, %v831_v57  ;;  %v945_v2 = vpop.permute.xlu2 %944  ;;  %v960_v57 = vmul.f32 %v956_v21, %v3544_v5  ;;  %v962_v53 = vmul.f32 %v956_v21, %v3553_v13  ;;  %v958_v44 = vmul.f32 %v956_v21, %v3542_v4 }
 0x16d   : > { %v975_v21 = vrot.slane %v961_v41, 2  ;;  %v1493_v26 = vrot.slane %v1486_v56, 1 }
 0x16e   : > { %v889_v54 = vadd.f32 %v877_v31, %v858_v40  ;;  %v973_v24 = vrot.slane %v960_v57, 2 }
 0x171   : > { %v3876_v46 = vpop.permute.xlu1 %848  ;;  %v3878_v27 = vpop.permute.xlu0 %846 }
 0x172   : > { %v853_v1 = vsel %vm610_vm2, %v3876_v46, %v3845_v33  ;;  %v852_v3 = vsel %vm610_vm2, %v3822_v34, %v3878_v27  ;;  %v1428_v33 = vmul.f32 %v3899_v50, %v3544_v5  ;;  %v809_v34 = vadd.f32 %v3834_v19, %v768_v39 }
 0x173   : > { %v801_v27 = vsel %vm610_vm2, %v3753_v17, %v3836_v20  ;;  %v860_v38 = vadd.f32 %v3876_v46, %v833_v55  ;;  %v861_v52 = vadd.f32 %v853_v1, %v834_v48  ;;  %v859_v62 = vadd.f32 %v852_v3, %v832_v61 }
 0x174   : > { %v880_v50 = vsel %vm634_vm0, %v878_v37, %v879_v63  ;;  %v971_v17 = vsel %vm729_vm1, %v969_v22, %v970_v51  ;;  %v1054_v20 = vsub.f32 0.0, %v1050_v32  ;;  %v810_v46 = vadd.f32 %v802_v60, %v769_v29  ;;  %v1033_v40 = vpop.permute.xlu2 %1032  ;;  %1438 = vrot.lane.b32.xlu2 %v1428_v33, %s3192_s25 }
 0x175   : > { %v808_v45 = vadd.f32 %v801_v27, %v767_v42  ;;  %v1052_v14 = vmax.f32 %v809_v34, 0.0  ;;  %v891_v31 = vadd.f32 %v882_v25, %v860_v38  ;;  %v892_v6 = vadd.f32 %v884_v10, %v861_v52 }
 0x176   : > { %v890_v18 = vadd.f32 %v880_v50, %v859_v62  ;;  %v977_v63 = vrot.slane %v962_v53, 2  ;;  %v972_v37 = vrot.slane %v958_v44, 2  ;;  %v1053_v42 = vmax.f32 %v810_v46, 0.0 }
 0x177   : > { %v1058_v55 = vmul.f32 1.442695, %v1054_v20  ;;  %v1494_v1 = vsel %vm634_vm0, %v1491_v49, %v1493_v26  ;;  %v1056_v3 = vsub.f32 0.0, %v1052_v14 }
 0x178   : > { %v978_v59 = vsel %vm729_vm1, %v973_v24, %v977_v63 }
 0x179   : > { %v3920_v7 = vpop.permute.xlu1 %907  ;;  %v3922_v9 = vpop.permute.xlu0 %905  ;;  %2830 = vpow2.f32 %v1058_v55  ;;  %v1062_v49 = vmul.f32 1.442695, %v1056_v3 }
 0x17a   : > { %v911_v47 = vadd.f32 %v3922_v9, %v889_v54  ;;  %v913_v8 = vadd.f32 %v3920_v7, %v891_v31  ;;  %v1051_v54 = vmax.f32 %v808_v45, 0.0  ;;  %v914_v22 = vadd.f32 %v3920_v7, %v892_v6 }
 0x17b   : > { %v912_v25 = vadd.f32 %v3922_v9, %v890_v18  ;;  %v974_v7 = vsel %vm729_vm1, %v972_v37, %v973_v24  ;;  %v1057_v9 = vsub.f32 0.0, %v1053_v42  ;;  %2832 = vpow2.f32 %v1062_v49 }
 0x17c   : > { %v952_v19 = vadd.f32 %v3870_v12, %v911_v47  ;;  %v1055_v48 = vsub.f32 0.0, %v1051_v54  ;;  %1497 = vrot.lane.b32.xlu2 %v1494_v1, %s3193_s27  ;;  %v1039_v34 = vpop.permute.xlu2 %1038  ;;  %v1086_v18 = vstv %s3522_s23  ;;  %v1091_v37 = vstv %s3528_s8  ;;  %s4922_s8 = sld [smem:[#allocation66_spill]] }
 0x17d   : > { %v1064_v38 = vmul.f32 1.442695, %v1057_v9  ;;  %s4923_s23 = sld [smem:[#allocation46_spill]] }
 0x17e   : > { %v983_v29 = vadd.f32 %v971_v17, %v952_v19 }
 0x17f   : > { %v2831_v46 = vpop.eup %2830 }
 0x181   : > { %v943_v28 = vpop.permute.xlu1 %942  ;;  %v941_v0 = vpop.permute.xlu0 %940 }
 0x182   : > { %v947_v58 = vsel %vm610_vm2, %v943_v28, %v945_v2  ;;  %v946_v39 = vsel %vm610_vm2, %v3870_v12, %v941_v0  ;;  %v954_v57 = vadd.f32 %v943_v28, %v913_v8  ;;  %v976_v12 = vsel %vm729_vm1, %v970_v51, %v975_v21 }
 0x183   : > { %v955_v47 = vadd.f32 %v947_v58, %v914_v22  ;;  %v953_v2 = vadd.f32 %v946_v39, %v912_v25  ;;  %v1060_v51 = vmul.f32 1.442695, %v1055_v48  ;;  %v1082_v21 = vsub.f32 1.0, %v2831_v46 }
 0x184   : > { %v985_v61 = vadd.f32 %v976_v12, %v954_v57  ;;  %v1162_v25 = vstv %s4921_s21 }
 0x185   : > { %v986_v0 = vadd.f32 %v978_v59, %v955_v47  ;;  %v984_v33 = vadd.f32 %v974_v7, %v953_v2  ;;  %v1087_v42 = vmul.f32 %v1086_v18, %v1082_v21  ;;  %v1163_v57 = vmul.f32 %v1162_v25, %v3683_v23 }
 0x189   : > { %v1002_v36 = vpop.permute.xlu1 %1001  ;;  %v1000_v32 = vpop.permute.xlu0 %999 }
 0x18a   : > { %v1005_v41 = vadd.f32 %v1000_v32, %v983_v29  ;;  %v1007_v27 = vadd.f32 %v1002_v36, %v985_v61  ;;  %v1008_v56 = vadd.f32 %v1002_v36, %v986_v0  ;;  %v1006_v52 = vadd.f32 %v1000_v32, %v984_v33 }
 0x18b   : > { %v1164_v0 = vmul.f32 %v1162_v25, %v3542_v4 }
 0x18c   : > { %v1046_v60 = vadd.f32 %v1033_v40, %v1005_v41 }
 0x18e   : > { %v1066_v28 = vmax.f32 %v1046_v60, 0.0 }
 0x190   : > { %v1070_v43 = vsub.f32 0.0, %v1066_v28 }
 0x191   : > { %v1037_v62 = vpop.permute.xlu1 %1036  ;;  %v1035_v53 = vpop.permute.xlu0 %1034 }
 0x192   : > { %v1074_v44 = vmul.f32 1.442695, %v1070_v43  ;;  %v1041_v10 = vsel %vm610_vm2, %v1037_v62, %v1039_v34  ;;  %v1048_v50 = vadd.f32 %v1037_v62, %v1007_v27  ;;  %v1040_v19 = vsel %vm610_vm2, %v1033_v40, %v1035_v53  ;;  %v2833_v40 = vpop.eup %2832 }
 0x193   : > { %v1049_v17 = vadd.f32 %v1041_v10, %v1008_v56  ;;  %v1047_v20 = vadd.f32 %v1040_v19, %v1006_v52  ;;  %v1084_v36 = vsub.f32 1.0, %v2833_v40  ;;  %v1165_v52 = vmul.f32 %v1162_v25, %v3699_v35 }
 0x194   : > { %2834 = vpow2.f32 %v1074_v44  ;;  %v1068_v45 = vmax.f32 %v1048_v50, 0.0  ;;  %v1166_v10 = vmul.f32 %v1162_v25, %v3544_v5  ;;  %v4006_v19 = vstv %s4922_s8 }
 0x195   : > { %2836 = vpow2.f32 %v1064_v38  ;;  %v1069_v24 = vmax.f32 %v1049_v17, 0.0  ;;  %v1067_v14 = vmax.f32 %v1047_v20, 0.0  ;;  %v1089_v2 = vmul.f32 %v1086_v18, %v1084_v36  ;;  %v1179_v38 = vpop.permute.xlu2 %1178 }
 0x196   : > { %2838 = vpow2.f32 %v1060_v51  ;;  %v1072_v31 = vsub.f32 0.0, %v1068_v45  ;;  %v1184_v46 = vadd.f32 %v1179_v38, %v1165_v52  ;;  %v1510_v21 = vmul.f32 %v4006_v19, %v3553_v13 }
 0x197   : > { %v1073_v26 = vsub.f32 0.0, %v1069_v24  ;;  %v1071_v6 = vsub.f32 0.0, %v1067_v14  ;;  %v1185_v24 = vadd.f32 %v1179_v38, %v1166_v10 }
 0x198   : > { %v1078_v63 = vmul.f32 1.442695, %v1072_v31  ;;  %v1508_v31 = vmul.f32 %v4006_v19, %v3544_v5 }
 0x199   : > { %v1080_v8 = vmul.f32 1.442695, %v1073_v26  ;;  %v1076_v58 = vmul.f32 1.442695, %v1071_v6  ;;  %v1177_v59 = vpop.permute.xlu1 %1176  ;;  %v1196_v34 = vpop.permute.xlu0 %1195  ;;  %v1507_v26 = vmul.f32 %v4006_v19, %v3551_v11 }
 0x19a   : > { %v2835_v39 = vpop.eup %2834  ;;  %2840 = vpow2.f32 %v1078_v63  ;;  %v1182_v48 = vadd.f32 %v1177_v59, %v1163_v57  ;;  %v1183_v44 = vadd.f32 %v1177_v59, %v1164_v0  ;;  %v1506_v59 = vmul.f32 %v4006_v19, %v3542_v4 }
 0x19b   : > { %v2837_v29 = vpop.eup %2836  ;;  %2842 = vpow2.f32 %v1080_v8  ;;  %v1092_v54 = vmul.f32 %v2835_v39, %v1091_v37 }
 0x19c   : > { %v2839_v22 = vpop.eup %2838  ;;  %2844 = vpow2.f32 %v1076_v58  ;;  %v1085_v55 = vsub.f32 1.0, %v2837_v29  ;;  %v1209_v51 = vadd.f32 %v1196_v34, %v1182_v48 }
 0x19d   : > { %v1096_v32 = vadd.f32 %v1092_v54, %v1087_v42  ;;  %v1083_v41 = vsub.f32 1.0, %v2839_v22  ;;  %v1200_v40 = vpop.permute.xlu2 %1199 }
 0x19e   : > { %v1090_v60 = vmul.f32 %v1086_v18, %v1085_v55  ;;  %v1211_v54 = vadd.f32 %v1200_v40, %v1184_v46 }
 0x19f   : > { %v1100_v1 = vmul.f32 0.5, %v1096_v32  ;;  %v1088_v61 = vmul.f32 %v1086_v18, %v1083_v41  ;;  %v1213_v18 = vstv %s4923_s23  ;;  %s4948_s23 = sld [smem:[#allocation85_spill]] }
 0x1a0   : > { %v2841_v3 = vpop.eup %2840  ;;  %v1215_v8 = vmul.f32 %v1213_v18, %v3542_v4  ;;  %v1216_v58 = vmul.f32 %v1213_v18, %v3699_v35  ;;  %v1217_v39 = vmul.f32 %v1213_v18, %v3544_v5  ;;  %v1214_v25 = vmul.f32 %v1213_v18, %v3683_v23 }
 0x1a1   : > { %v2843_v47 = vpop.eup %2842  ;;  %2846 = vtanh.f32 %v1100_v1  ;;  %v1094_v12 = vmul.f32 %v2841_v3, %v1091_v37  ;;  %v1198_v17 = vpop.permute.xlu1 %1197  ;;  %v1219_v38 = vmul.f32 %v1213_v18, %v3553_v13 }
 0x1a2   : > { %v2845_v7 = vpop.eup %2844  ;;  %v1095_v9 = vmul.f32 %v2843_v47, %v1091_v37  ;;  %v1203_v45 = vsel %vm610_vm2, %v1196_v34, %v1198_v17  ;;  %v1202_v6 = vpop.permute.xlu0 %1201  ;;  %v1227_v57 = vrot.slane %v1216_v58, 1  ;;  %v1229_v41 = vrot.slane %v1215_v8, 1 }
 0x1a3   : > { %v1098_v28 = vadd.f32 %v1094_v12, %v1089_v2  ;;  %v1093_v49 = vmul.f32 %v2845_v7, %v1091_v37  ;;  %v1210_v14 = vadd.f32 %v1203_v45, %v1183_v44  ;;  %v4019_v37 = vmul.f32 %v4006_v19, %v3557_v15 }
 0x1a4   : > { %v1099_v33 = vadd.f32 %v1095_v9, %v1090_v60  ;;  %v1204_v22 = vsel %vm610_vm2, %v1200_v40, %v1202_v6  ;;  %v1230_v47 = vrot.slane %v1217_v39, 1  ;;  %v1226_v2 = vrot.slane %v1214_v25, 1 }
 0x1a5   : > { %v1102_v27 = vmul.f32 0.5, %v1098_v28  ;;  %v1097_v43 = vadd.f32 %v1093_v49, %v1088_v61  ;;  %v1212_v55 = vadd.f32 %v1204_v22, %v1185_v24  ;;  %v1519_v60 = vrot.slane %v1508_v31, 1  ;;  %v1259_v17 = vpop.permute.xlu2 %1258 }
 0x1a6   : > { %v1103_v56 = vmul.f32 0.5, %v1099_v33  ;;  %v1231_v9 = vsel %vm634_vm0, %v1229_v41, %v1230_v47  ;;  %v1228_v61 = vsel %vm634_vm0, %v1226_v2, %v1227_v57  ;;  %v1524_v28 = vrot.slane %v1510_v21, 1 }
 0x1a7   : > { %v2847_v62 = vpop.eup %2846  ;;  %2848 = vtanh.f32 %v1102_v27  ;;  %v1101_v53 = vmul.f32 0.5, %v1097_v43  ;;  %v1577_v49 = vstv %s4924_s20  ;;  %v1240_v0 = vadd.f32 %v1228_v61, %v1209_v51  ;;  %s2383_s20 = sshll.u32 %s3538_s19, 4  ;;  %s2384_s20 = int_to_ptr.vmem [resolvable:$true] %s2383_s20 }
 0x1a8   : > { %v1108_v50 = vadd.f32 1.0, %v2847_v62  ;;  %2850 = vtanh.f32 %v1103_v56  ;;  %v1241_v33 = vadd.f32 %v1231_v9, %v1210_v14  ;;  %v1521_v34 = vrot.slane %v1507_v26, 1 }
 0x1a9   : > { %2852 = vtanh.f32 %v1101_v53  ;;  %v1257_v48 = vpop.permute.xlu1 %1256  ;;  %v1522_v27 = vrot.slane %v4019_v37, 1  ;;  %v1218_v43 = vmul.f32 %v1213_v18, %v3828_v16  ;;  %v1518_v56 = vrot.slane %v1506_v59, 1 }
 0x1aa   : > { %v1112_v20 = vmul.f32 0.5, %v1108_v50  ;;  %v1262_v52 = vadd.f32 %v1257_v48, %v1240_v0  ;;  %v1263_v62 = vadd.f32 %v1257_v48, %v1241_v33  ;;  %v1290_v53 = vpop.permute.xlu0 %1289  ;;  %v1579_v44 = vmul.f32 %v1577_v49, %v3544_v5 }
 0x1ab   : > { %v1580_v51 = vmul.f32 %v1577_v49, %v3553_v13  ;;  %v1232_v10 = vrot.slane %v1218_v43, 1  ;;  %v1234_v50 = vrot.slane %v1219_v38, 1  ;;  %v1523_v45 = vsel %vm634_vm0, %v1521_v34, %v1522_v27 }
 0x1ac   : > { %1120 = vrot.lane.b32.xlu0 %v1112_v20, %s3194_s3  ;;  %v1525_v20 = vsel %vm634_vm0, %v1519_v60, %v1524_v28  ;;  %v4040_v46 = vadd.f32 %v1290_v53, %v1262_v52  ;;  %v1578_v24 = vmul.f32 %v1577_v49, %v3542_v4  ;;  %v1520_v21 = vsel %vm634_vm0, %v1518_v56, %v1519_v60 }
 0x1ad   : > { %v2849_v63 = vpop.eup %2848  ;;  %v1233_v14 = vsel %vm634_vm0, %v1227_v57, %v1232_v10  ;;  %v1235_v31 = vsel %vm634_vm0, %v1230_v47, %v1234_v50  ;;  %v1511_v26 = vmul.f32 %v4006_v19, %v3571_v30  ;;  %v1587_v37 = vrot.slane %v1580_v51, 2 }
 0x1ae   : > { %v2851_v29 = vpop.eup %2850  ;;  %v1110_v42 = vadd.f32 1.0, %v2849_v63  ;;  %v1242_v6 = vadd.f32 %v1233_v14, %v1211_v54  ;;  %v1243_v18 = vadd.f32 %v1235_v31, %v1212_v55  ;;  %v1585_v63 = vrot.slane %v1579_v44, 2 }
 0x1af   : > { %v2853_v36 = vpop.eup %2852  ;;  %v1111_v32 = vadd.f32 1.0, %v2851_v29  ;;  %v1599_v40 = vstv %s4925_s28  ;;  %v1584_v29 = vrot.slane %v1578_v24, 2  ;;  %v1526_v22 = vrot.slane %v1511_v26, 1 }
 0x1b0   : > { %v1114_v1 = vmul.f32 0.5, %v1110_v42  ;;  %v1109_v3 = vadd.f32 1.0, %v2853_v36  ;;  %v1264_v8 = vadd.f32 %v1259_v17, %v1242_v6  ;;  %v1265_v58 = vadd.f32 %v1259_v17, %v1243_v18  ;;  %v1294_v36 = vpop.permute.xlu2 %1293 }
 0x1b1   : > { %v1115_v12 = vmul.f32 0.5, %v1111_v32  ;;  %v1292_v39 = vpop.permute.xlu1 %1291  ;;  %v1588_v54 = vsel %vm729_vm1, %v1585_v63, %v1587_v37  ;;  %v1602_v25 = vmul.f32 %v1599_v40, %v3544_v5  ;;  %v1604_v55 = vmul.f32 %v1599_v40, %v3553_v13 }
 0x1b2   : > { %1124 = vrot.lane.b32.xlu2 %v1114_v1, %s3194_s3  ;;  %v1113_v7 = vmul.f32 0.5, %v1109_v3  ;;  %v1297_v42 = vsel %vm610_vm2, %v1290_v53, %v1292_v39  ;;  %v4059_v57 = vadd.f32 %v1294_v36, %v1264_v8  ;;  %v4063_v1 = vstv %s4926_s24 }
 0x1b3   : > { %v4054_v19 = vadd.f32 %v1297_v42, %v1263_v62  ;;  %v1586_v3 = vsel %vm729_vm1, %v1584_v29, %v1585_v63  ;;  %v1527_v2 = vsel %vm634_vm0, %v1522_v27, %v1526_v22  ;;  %v1603_v59 = vmul.f32 %v1599_v40, %v3557_v15 }
 0x1b4   : > { %1122 = vrot.lane.b32.xlu1 %v1113_v7, %s3194_s3  ;;  %1126 = vrot.lane.b32.xlu0 %v1115_v12, %s3194_s3  ;;  %v1601_v12 = vmul.f32 %v1599_v40, %v3551_v11  ;;  %v1600_v7 = vmul.f32 %v1599_v40, %v3542_v4  ;;  %v4073_v60 = vmul.f32 %v4063_v1, %v3544_v5  ;;  %v1613_v9 = vrot.slane %v1602_v25, 2 }
 0x1b5   : > { %v1296_v32 = vpop.permute.xlu0 %1295  ;;  %v1618_v48 = vrot.slane %v1604_v55, 2  ;;  %v1313_v61 = vmul.f32 %v4063_v1, %v3553_v13  ;;  %v1616_v49 = vrot.slane %v1603_v59, 2  ;;  %v1605_v53 = vmul.f32 %v1599_v40, %v3571_v30 }
 0x1b6   : > { %v1298_v41 = vsel %vm610_vm2, %v1294_v36, %v1296_v32  ;;  %v1615_v28 = vrot.slane %v1601_v12, 2  ;;  %v1612_v0 = vrot.slane %v1600_v7, 2  ;;  %v1324_v33 = vrot.slane %v4073_v60, 2 }
 0x1b7   : > { %v1306_v47 = vadd.f32 %v1298_v41, %v1265_v58  ;;  %v1328_v34 = vrot.slane %v1313_v61, 2  ;;  %v1619_v38 = vsel %vm729_vm1, %v1613_v9, %v1618_v48  ;;  %v1762_v51 = vstv %s4927_s0 }
 0x1b8   : > { %v4080_v27 = vpop.permute.xlu2 %1352  ;;  %v1617_v52 = vsel %vm729_vm1, %v1615_v28, %v1616_v49  ;;  %v1614_v62 = vsel %vm729_vm1, %v1612_v0, %v1613_v9  ;;  %v1620_v50 = vrot.slane %v1605_v53, 2  ;;  %v1764_v17 = vmul.f32 %v1762_v51, %v3544_v5 }
 0x1b9   : > { %v1329_v56 = vsel %vm729_vm1, %v1324_v33, %v1328_v34  ;;  %v1763_v24 = vmul.f32 %v1762_v51, %v3542_v4  ;;  %v1777_v26 = vstv %s4928_s22  ;;  %v2001_v37 = vstv %s4929_s5  ;;  %s4949_s22 = sld [smem:[#allocation84_spill]] }
 0x1ba   : > { %1532 = vrot.lane.b32.xlu2 %v1525_v20, %s3192_s25  ;;  %v1337_v44 = vadd.f32 %v1329_v56, %v1306_v47  ;;  %v1621_v31 = vsel %vm729_vm1, %v1616_v49, %v1620_v50  ;;  %v1780_v6 = vmul.f32 %v1777_v26, %v3544_v5  ;;  %v1779_v18 = vmul.f32 %v1777_v26, %v3551_v11 }
 0x1bb   : > { %v1778_v63 = vmul.f32 %v1777_v26, %v3542_v4  ;;  %v2003_v40 = vmul.f32 %v2001_v37, %v3544_v5  ;;  %v2002_v8 = vmul.f32 %v2001_v37, %v3542_v4  ;;  %v1781_v58 = vmul.f32 %v1777_v26, %v3557_v15 }
 0x1bc   : > { %1530 = vrot.lane.b32.xlu1 %v1523_v45, %s3192_s25  ;;  %1528 = vrot.lane.b32.xlu0 %v1520_v21, %s3192_s25  ;;  %v1359_v10 = vadd.f32 %v4080_v27, %v1337_v44  ;;  %v2016_v39 = vstv %s4930_s26  ;;  %v1835_v29 = vstv %s4931_s4  ;;  %v1312_v37 = vmul.f32 %v4063_v1, %v3828_v16  ;;  %s2364_s4 = sshll.u32 %s3535_s15, 4  ;;  %s2365_s4 = int_to_ptr.vmem [resolvable:$true] %s2364_s4 }
 0x1bd   : > { %v4082_v43 = vpop.permute.xlu0 %1383  ;;  %v2019_v42 = vmul.f32 %v2016_v39, %v3544_v5  ;;  %v1837_v22 = vmul.f32 %v1835_v29, %v3544_v5  ;;  %v2018_v25 = vmul.f32 %v2016_v39, %v3551_v11  ;;  %v2017_v36 = vmul.f32 %v2016_v39, %v3542_v4 }
 0x1be   : > { %v1836_v32 = vmul.f32 %v1835_v29, %v3542_v4  ;;  %v2020_v9 = vmul.f32 %v2016_v39, %v3557_v15  ;;  %v4170_v39 = vmul.f32 %v4063_v1, %v3699_v35 }
 0x1bf   : > { %v1843_v55 = vrot.slane %v1837_v22, 1 }
 0x1c0   : > { %v4097_v45 = vpop.permute.xlu2 %1387  ;;  %v1842_v47 = vrot.slane %v1836_v32, 1 }
 0x1c2   : > { %1591 = vrot.lane.b32.xlu2 %v1588_v54, %s3193_s27  ;;  %v1838_v54 = vmul.f32 %v1835_v29, %v3553_v13  ;;  %v1844_v48 = vsel %vm634_vm0, %v1842_v47, %v1843_v55  ;;  %v1321_v47 = vrot.slane %v4170_v39, 2 }
 0x1c4   : > { %1589 = vrot.lane.b32.xlu1 %v1586_v3, %s3193_s27  ;;  %1534 = vrot.lane.b32.xlu0 %v1527_v2, %s3192_s25  ;;  %v1845_v41 = vrot.slane %v1838_v54, 1  ;;  %v1857_v3 = vstv %s4932_s30 }
 0x1c5   : > { %v1390_v20 = vpop.permute.xlu0 %1389  ;;  %v1860_v59 = vmul.f32 %v1857_v3, %v3544_v5  ;;  %v1862_v7 = vmul.f32 %v1857_v3, %v3553_v13  ;;  %v1859_v61 = vmul.f32 %v1857_v3, %v3551_v11  ;;  %v1861_v28 = vmul.f32 %v1857_v3, %v3557_v15 }
 0x1c6   : > { %v1392_v14 = vsel %vm610_vm2, %v4097_v45, %v1390_v20  ;;  %v1846_v12 = vsel %vm634_vm0, %v1843_v55, %v1845_v41  ;;  %v1858_v49 = vmul.f32 %v1857_v3, %v3542_v4 }
 0x1c7   : > { %v4103_v21 = vadd.f32 %v1392_v14, %v1359_v10  ;;  %v1871_v0 = vrot.slane %v1860_v59, 1  ;;  %v1876_v34 = vrot.slane %v1862_v7, 1  ;;  %v1873_v56 = vrot.slane %v1859_v61, 1  ;;  %v4151_v10 = vpop.permute.xlu1 %1350 }
 0x1c8   : > { %v4134_v2 = vpop.permute.xlu2 %1417  ;;  %v1863_v14 = vmul.f32 %v1857_v3, %v3571_v30  ;;  %v4187_v59 = vstv %s4936_s14 }
 0x1c9   : > { %v1877_v53 = vsel %vm634_vm0, %v1871_v0, %v1876_v34 }
 0x1ca   : > { %1626 = vrot.lane.b32.xlu2 %v1619_v38, %s3192_s25  ;;  %v2074_v38 = vstv %s4933_s10 }
 0x1cb   : > { %v2076_v44 = vmul.f32 %v2074_v38, %v3544_v5  ;;  %v2077_v51 = vmul.f32 %v2074_v38, %v3553_v13 }
 0x1cc   : > { %1624 = vrot.lane.b32.xlu1 %v1617_v52, %s3192_s25  ;;  %1622 = vrot.lane.b32.xlu0 %v1614_v62, %s3192_s25  ;;  %v1874_v52 = vrot.slane %v1861_v28, 1  ;;  %v1870_v62 = vrot.slane %v1858_v49, 1  ;;  %v1404_v28 = vmul.f32 %v4187_v59, %v3699_v35  ;;  %v4195_v49 = vstv %s4937_s17 }
 0x1cd   : > { %v2084_v26 = vrot.slane %v2077_v51, 1 }
 0x1ce   : > { %v1875_v20 = vsel %vm634_vm0, %v1873_v56, %v1874_v52  ;;  %v1457_v56 = vmul.f32 %v4195_v49, %v3828_v16 }
 0x1cf   : > { %v4177_v32 = vpop.permute.xlu1 %1385 }
 0x1d0   : > { %v4153_v50 = vpop.permute.xlu2 %1438 }
 0x1d2   : > { %1769 = vrot.lane.b32.xlu2 %v1764_v17, %s3193_s27  ;;  %v2075_v17 = vmul.f32 %v2074_v38, %v3542_v4 }
 0x1d4   : > { %1767 = vrot.lane.b32.xlu1 %v1763_v24, %s3193_s27  ;;  %1628 = vrot.lane.b32.xlu0 %v1621_v31, %s3192_s25  ;;  %v1872_v24 = vsel %vm634_vm0, %v1870_v62, %v1871_v0  ;;  %v2082_v31 = vrot.slane %v2076_v44, 1 }
 0x1d8   : > { %v4180_v55 = vpop.permute.xlu2 %1497 }
 0x1da   : > { %1790 = vrot.lane.b32.xlu2 %v1780_v6, %s3192_s25  ;;  %v2081_v6 = vrot.slane %v2075_v17, 1  ;;  %v4207_v17 = vpop.permute.xlu1 %1415 }
 0x1dc   : > { %1788 = vrot.lane.b32.xlu1 %v1779_v18, %s3192_s25  ;;  %1786 = vrot.lane.b32.xlu0 %v1778_v63, %s3192_s25  ;;  %v2096_v18 = vstv %s4934_s12  ;;  %v1878_v63 = vrot.slane %v1863_v14, 1  ;;  %v2083_v29 = vsel %vm634_vm0, %v2081_v6, %v2082_v31  ;;  %v4215_v6 = vpop.permute.xlu0 %1434 }
 0x1dd   : > { %v2098_v22 = vmul.f32 %v2096_v18, %v3551_v11  ;;  %v2100_v54 = vmul.f32 %v2096_v18, %v3557_v15  ;;  %v2102_v62 = vmul.f32 %v2096_v18, %v3571_v30 }
 0x1df   : > { %v2112_v7 = vrot.slane %v2098_v22, 1 }
 0x1e2   : > { %2008 = vrot.lane.b32.xlu2 %v2003_v40, %s3193_s27  ;;  %v2085_v40 = vsel %vm634_vm0, %v2082_v31, %v2084_v26  ;;  %v1471_v26 = vrot.slane %v1457_v56, 1 }
 0x1e4   : > { %2006 = vrot.lane.b32.xlu1 %v2002_v8, %s3193_s27  ;;  %1792 = vrot.lane.b32.xlu0 %v1781_v58, %s3192_s25  ;;  %v2099_v8 = vmul.f32 %v2096_v18, %v3544_v5  ;;  %v2101_v58 = vmul.f32 %v2096_v18, %v3553_v13 }
 0x1e6   : > { %v2110_v41 = vrot.slane %v2099_v8, 1  ;;  %v2115_v3 = vrot.slane %v2101_v58, 1  ;;  %v1308_v8 = vmul.f32 %v4063_v1, %v3683_v23 }
 0x1e8   : > { %v2116_v0 = vsel %vm634_vm0, %v2110_v41, %v2115_v3 }
 0x1ea   : > { %2029 = vrot.lane.b32.xlu2 %v2019_v42, %s3192_s25  ;;  %v1879_v42 = vsel %vm634_vm0, %v1874_v52, %v1878_v63  ;;  %v2117_v63 = vrot.slane %v2102_v62, 1  ;;  %v2168_v62 = vstv %s3518_s18  ;;  %s4941_s18 = sld [smem:[#allocation49_spill]] }
 0x1ec   : > { %2027 = vrot.lane.b32.xlu1 %v2018_v25, %s3192_s25  ;;  %2025 = vrot.lane.b32.xlu0 %v2017_v36, %s3192_s25  ;;  %v2097_v25 = vmul.f32 %v2096_v18, %v3542_v4  ;;  %v1326_v36 = vrot.slane %v1312_v37, 2  ;;  %v1951_v37 = vstv %s4938_s29  ;;  %s3069_s29 = scalar_lea.hbm %s4948_s23, 96 }
 0x1ed   : > { %v4239_v3 = vmul.f32 %v1951_v37, %v3557_v15 }
 0x1ee   : > { %v1327_v61 = vsel %vm729_vm1, %v1321_v47, %v1326_v36 }
 0x1ef   : > { %v1336_v51 = vadd.f32 %v1327_v61, %v4059_v57  ;;  %v1320_v61 = vrot.slane %v1308_v8, 2  ;;  %v2171_v8 = vmul.f32 %v2168_v62, %v3553_v13 }
 0x1f1   : > { %v1358_v58 = vadd.f32 %v4080_v27, %v1336_v51  ;;  %v1953_v27 = vmul.f32 %v1951_v37, %v3551_v11 }
 0x1f2   : > { %1849 = vrot.lane.b32.xlu2 %v1846_v12, %s3193_s27  ;;  %v1929_v12 = vstv %s4935_s13 }
 0x1f3   : > { %v1931_v34 = vmul.f32 %v1929_v12, %v3544_v5  ;;  %v1932_v38 = vmul.f32 %v1929_v12, %v3553_v13  ;;  %v1930_v52 = vmul.f32 %v1929_v12, %v3542_v4  ;;  %v4242_v12 = vstv %s4939_s6 }
 0x1f4   : > { %1847 = vrot.lane.b32.xlu1 %v1844_v48, %s3193_s27  ;;  %2031 = vrot.lane.b32.xlu0 %v2020_v9, %s3192_s25  ;;  %v2113_v9 = vrot.slane %v2100_v54, 1  ;;  %v2109_v48 = vrot.slane %v2097_v25, 1  ;;  %v1954_v54 = vmul.f32 %v1951_v37, %v3544_v5  ;;  %v1956_v25 = vmul.f32 %v1951_v37, %v3553_v13 }
 0x1f5   : > { %v1937_v14 = vrot.slane %v1931_v34, 2  ;;  %v1939_v31 = vrot.slane %v1932_v38, 2  ;;  %v1936_v57 = vrot.slane %v1930_v52, 2  ;;  %v4255_v52 = vmul.f32 %v4242_v12, %v3699_v35 }
 0x1f6   : > { %v2111_v44 = vsel %vm634_vm0, %v2109_v48, %v2110_v41  ;;  %v1965_v34 = vrot.slane %v1954_v54, 2  ;;  %v1970_v38 = vrot.slane %v1956_v25, 2 }
 0x1f7   : > { %v1940_v22 = vsel %vm729_vm1, %v1937_v14, %v1939_v31  ;;  %v1938_v41 = vsel %vm729_vm1, %v1936_v57, %v1937_v14  ;;  %v1322_v14 = vsel %vm729_vm1, %v1320_v61, %v1321_v47  ;;  %v1560_v60 = vrot.slane %v4255_v52, 2 }
 0x1f8   : > { %v1334_v39 = vadd.f32 %v1322_v14, %v4040_v46  ;;  %v4313_v14 = vsel %vm610_vm2, %v4082_v43, %v4177_v32  ;;  %v1643_v52 = vmax.f32 %v4103_v21, 0.0 }
 0x1fa   : > { %1884 = vrot.lane.b32.xlu2 %v1877_v53, %s3192_s25  ;;  %v2114_v53 = vsel %vm634_vm0, %v2112_v7, %v2113_v9  ;;  %v1952_v7 = vmul.f32 %v1951_v37, %v3542_v4 }
 0x1fc   : > { %1882 = vrot.lane.b32.xlu1 %v1875_v20, %s3192_s25  ;;  %1880 = vrot.lane.b32.xlu0 %v1872_v24, %s3192_s25  ;;  %v4211_v20 = vmul.f32 %v4195_v49, %v3699_v35  ;;  %v1423_v24 = vadd.f32 %v4134_v2, %v1404_v28  ;;  %v1399_v28 = vadd.f32 %v4097_v45, %v1358_v58  ;;  %v1964_v51 = vrot.slane %v1952_v7, 2 }
 0x1fd   : > { %v1551_v45 = vmul.f32 %v4242_v12, %v3828_v16  ;;  %v4295_v7 = vadd.f32 %v4151_v10, %v1334_v39  ;;  %v4348_v39 = vmul.f32 %v4195_v49, %v3553_v13 }
 0x1fe   : > { %v1642_v31 = vmax.f32 %v1399_v28, 0.0  ;;  %v1403_v28 = vmul.f32 %v4187_v59, %v3542_v4 }
 0x1ff   : > { %v1565_v58 = vrot.slane %v1551_v45, 2 }
 0x200   : > { %v1646_v25 = vsub.f32 0.0, %v1642_v31  ;;  %v4317_v31 = vmul.f32 %v4187_v59, %v3544_v5 }
 0x201   : > { %v1566_v46 = vsel %vm729_vm1, %v1560_v60, %v1565_v58 }
 0x202   : > { %2088 = vrot.lane.b32.xlu2 %v2085_v40, %s3193_s27  ;;  %v1309_v40 = vmul.f32 %v4063_v1, %v3542_v4  ;;  %v2118_v1 = vsel %vm634_vm0, %v2113_v9, %v2117_v63  ;;  %v4247_v9 = vpop.permute.xlu1 %1436  ;;  %v1971_v63 = vsel %vm729_vm1, %v1965_v34, %v1970_v38  ;;  %v1652_v61 = vmul.f32 1.442695, %v1646_v25 }
 0x204   : > { %2086 = vrot.lane.b32.xlu1 %v2083_v29, %s3193_s27  ;;  %1886 = vrot.lane.b32.xlu0 %v1879_v42, %s3192_s25  ;;  %v1466_v29 = vrot.slane %v4211_v20, 1  ;;  %v1450_v42 = vadd.f32 %v4153_v50, %v1423_v24  ;;  %v1323_v48 = vrot.slane %v1309_v40, 2  ;;  %v2170_v40 = vmul.f32 %v2168_v62, %v3544_v5 }
 0x205   : > { %2854 = vpow2.f32 %v1652_v61 }
 0x206   : > { %v1472_v36 = vsel %vm634_vm0, %v1466_v29, %v1471_v26  ;;  %v1325_v24 = vsel %vm729_vm1, %v1323_v48, %v1324_v33  ;;  %v4267_v26 = vpop.permute.xlu0 %1440  ;;  %v2169_v33 = vmul.f32 %v2168_v62, %v3542_v4 }
 0x207   : > { %v1335_v54 = vadd.f32 %v1325_v24, %v4054_v19 }
 0x208   : > { %v2175_v19 = vrot.slane %v2169_v33, 2 }
 0x209   : > { %v4306_v62 = vadd.f32 %v4151_v10, %v1335_v54 }
 0x20a   : > { %2123 = vrot.lane.b32.xlu2 %v2116_v0, %s3192_s25  ;;  %v1481_v0 = vadd.f32 %v1472_v36, %v1450_v42  ;;  %v1966_v42 = vsel %vm729_vm1, %v1964_v51, %v1965_v34  ;;  %v1402_v36 = vmul.f32 %v4187_v59, %v3683_v23  ;;  %v4332_v59 = vadd.f32 %v4207_v17, %v1403_v28 }
 0x20c   : > { %2121 = vrot.lane.b32.xlu1 %v2114_v53, %s3192_s25  ;;  %v4218_v18 = vpop.permute.xlu2 %1124  ;;  %2119 = vrot.lane.b32.xlu0 %v2111_v44, %s3192_s25  ;;  %v1967_v53 = vrot.slane %v1953_v27, 2  ;;  %v1968_v44 = vrot.slane %v4239_v3, 2  ;;  %v1503_v57 = vadd.f32 %v4180_v55, %v1481_v0  ;;  %v2178_v27 = vrot.slane %v2171_v8, 2  ;;  %v4299_v0 = vpop.permute.xlu1 %1495 }
 0x20d   : > { %v4285_v3 = vstv %s3520_s7  ;;  %s4940_s7 = sld [smem:[#allocation43_spill]] }
 0x20e   : > { %v1969_v47 = vsel %vm729_vm1, %v1967_v53, %v1968_v44  ;;  %v2193_v38 = vmul.f32 %v4285_v3, %v3544_v5  ;;  %v2195_v45 = vmul.f32 %v4285_v3, %v3553_v13  ;;  %v1421_v53 = vadd.f32 %v4207_v17, %v1402_v36 }
 0x20f   : > { %v4327_v8 = vmul.f32 %v4285_v3, %v3557_v15  ;;  %v2191_v32 = vmul.f32 %v4285_v3, %v3542_v4  ;;  %v4343_v15 = vmul.f32 %v4195_v49, %v3544_v5 }
 0x210   : > { %v2204_v58 = vrot.slane %v2193_v38, 2  ;;  %v4336_v33 = vadd.f32 %v4215_v6, %v1421_v53 }
 0x211   : > { %v2207_v36 = vrot.slane %v4327_v8, 2 }
 0x212   : > { %1943 = vrot.lane.b32.xlu2 %v1940_v22, %s3193_s27  ;;  %v1957_v22 = vmul.f32 %v1951_v37, %v3571_v30 }
 0x213   : > { %v1136_v54 = vld [vmem:[%s4940_s7 + $0x8] sm:$0xff] }
 0x214   : > { %1941 = vrot.lane.b32.xlu1 %v1938_v41, %s3193_s27  ;;  %v4250_v56 = vpop.permute.xlu2 %1532  ;;  %2125 = vrot.lane.b32.xlu0 %v2118_v1, %s3192_s25  ;;  %v2176_v1 = vrot.slane %v2170_v40, 2  ;;  %v1972_v48 = vrot.slane %v1957_v22, 2  ;;  %v2192_v40 = vmul.f32 %v4285_v3, %v3551_v11  ;;  %v1442_v11 = vsel %vm610_vm2, %v4215_v6, %v4247_v9  ;;  %v1135_v9 = vld [vmem:[%s4940_s7] sm:$0xff] }
 0x215   : > { %v1544_v41 = vadd.f32 %v4250_v56, %v1503_v57  ;;  %v1453_v57 = vmul.f32 %v4195_v49, %v3683_v23 }
 0x216   : > { %v2179_v24 = vsel %vm729_vm1, %v2176_v1, %v2178_v27  ;;  %v2177_v10 = vsel %vm729_vm1, %v2175_v19, %v2176_v1  ;;  %v2206_v25 = vrot.slane %v2192_v40, 2  ;;  %v4362_v1 = vld [vmem:[#allocation2 + $0x8] sm:$0xff] }
 0x217   : > { %v1575_v51 = vadd.f32 %v1566_v46, %v1544_v41  ;;  %v2203_v41 = vrot.slane %v2191_v32, 2  ;;  %vm566_vm4 = vcmp.gt.f32.partialorder %v4362_v1, 0.0  ;;  %v1151_v46 = vrot.slane %v1136_v54, 7 }
 0x21a   : > { %1978 = vrot.lane.b32.xlu2 %v1971_v63, %s3192_s25  ;;  %v1973_v63 = vsel %vm729_vm1, %v1968_v44, %v1972_v48  ;;  %v2209_v44 = vrot.slane %v2195_v45, 2  ;;  %v2855_v45 = vpop.eup %2854 }
 0x21c   : > { %1976 = vrot.lane.b32.xlu1 %v1969_v47, %s3192_s25  ;;  %v4291_v37 = vpop.permute.xlu2 %1591  ;;  %1974 = vrot.lane.b32.xlu0 %v1966_v42, %s3192_s25  ;;  %v4352_v47 = vmul.f32 %v4195_v49, %v3542_v4  ;;  %v1465_v42 = vrot.slane %v1453_v57, 1  ;;  %v1150_v49 = vrot.slane %v1135_v9, 7  ;;  %v2210_v48 = vsel %vm729_vm1, %v2204_v58, %v2209_v44 }
 0x21d   : > { %v1597_v17 = vadd.f32 %v4291_v37, %v1575_v51  ;;  %v4370_v51 = vld [vmem:[#allocation2 + $0x20] sm:$0xff] }
 0x21e   : > { %v1121_v34 = vpop.permute.xlu0 %1120  ;;  %vm567_vm6 = vcmp.gt.f32.partialorder %v4370_v51, 0.0  ;;  %v1152_v32 = vsel %vm1141_vm5, %v1150_v49, %v1151_v46 }
 0x222   : > { %2182 = vrot.lane.b32.xlu2 %v2179_v24, %s3193_s27  ;;  %v4373_v24 = vld [vmem:[#allocation2 + $0x38] sm:$0xff] }
 0x223   : > { %vm568_vm7 = vcmp.gt.f32.partialorder %v4373_v24, 0.0 }
 0x224   : > { %2180 = vrot.lane.b32.xlu1 %v2177_v10, %s3193_s27  ;;  %v4355_v22 = vpop.permute.xlu2 %1626  ;;  %1980 = vrot.lane.b32.xlu0 %v1973_v63, %s3192_s25  ;;  %v2196_v63 = vmul.f32 %v4285_v3, %v3571_v30  ;;  %s4945_s27 = sld [smem:[#allocation55_spill]] }
 0x225   : > { %v1638_v6 = vadd.f32 %v4355_v22, %v1597_v17  ;;  %v4386_v17 = vstv %s4941_s18 }
 0x226   : > { %v1123_v27 = vpop.permute.xlu1 %1122  ;;  %v1127_v19 = vpop.permute.xlu0 %1126 }
 0x227   : > { %v1658_v61 = vmax.f32 %v1638_v6, 0.0  ;;  %v1129_v28 = vsel %vm1128_vm3, %v1121_v34, %v1123_v27  ;;  %v1130_v38 = vsel %vm1128_vm3, %v4218_v18, %v1127_v19  ;;  %v2208_v34 = vsel %vm729_vm1, %v2206_v25, %v2207_v36 }
 0x228   : > { %1133 = vst [vmem:[%s3538_s19] sm:$0xff] %v1129_v28  ;;  %v1137_v53 = vsub.f32 %v1135_v9, %v1129_v28  ;;  %v1138_v57 = vsub.f32 %v1136_v54, %v1130_v38  ;;  %v2205_v18 = vsel %vm729_vm1, %v2203_v41, %v2204_v58  ;;  %v1469_v6 = vrot.slane %v4343_v15, 1 }
 0x229   : > { %v1662_v10 = vsub.f32 0.0, %v1658_v61  ;;  %1134 = vst [vmem:[%s3538_s19 + $0x8] sm:$0xff] %v1130_v38  ;;  %v1468_v9 = vrot.slane %v4352_v47, 1  ;;  %v1467_v58 = vsel %vm634_vm0, %v1465_v42, %v1466_v29  ;;  %v1756_v29 = vmul.f32 %v4386_v17, %v3699_v35 }
 0x22a   : > { %v1142_v40 = vrot.slane %v1137_v53, 7  ;;  %v1143_v44 = vrot.slane %v1138_v57, 7  ;;  %2217 = vrot.lane.b32.xlu2 %v2210_v48, %s3192_s25  ;;  %v2211_v15 = vrot.slane %v2196_v63, 2  ;;  %v1397_v47 = vadd.f32 %v4082_v43, %v4295_v7 }
 0x22b   : > { %v1668_v54 = vmul.f32 1.442695, %v1662_v10  ;;  %v1398_v42 = vadd.f32 %v4313_v14, %v4306_v62  ;;  %v1674_v19 = vsub.f32 1.0, %v2855_v45  ;;  %v1424_v48 = vadd.f32 %v4134_v2, %v4317_v31 }
 0x22c   : > { %v1156_v30 = vsel %vm566_vm4, %v1142_v40, %v1150_v49  ;;  %v1144_v3 = vsel %vm1141_vm5, %v1142_v40, %v1143_v44  ;;  %v1158_v25 = vsel %vm568_vm7, %v1143_v44, %v1151_v46  ;;  %v4398_v41 = vpop.permute.xlu2 %1769  ;;  %2215 = vrot.lane.b32.xlu1 %v2208_v34, %s3192_s25  ;;  %2213 = vrot.lane.b32.xlu0 %v2205_v18, %s3192_s25  ;;  %v1473_v61 = vrot.slane %v4348_v39, 1 }
 0x22d   : > { %2856 = vpow2.f32 %v1668_v54  ;;  %1159 = vst [vmem:[%s3535_s15 - $0x1] sm:$0xfe] %v1156_v30  ;;  %v1157_v20 = vsel %vm567_vm6, %v1144_v3, %v1152_v32  ;;  %v1449_v49 = vadd.f32 %v1442_v11, %v4332_v59  ;;  %v1470_v28 = vsel %vm634_vm0, %v1468_v9, %v1469_v6 }
 0x22e   : > { %1160 = vst [vmem:[%s3535_s15 + $0x7] sm:$0xff] %v1157_v20  ;;  %v1531_v27 = vpop.permute.xlu1 %1530  ;;  %v1529_v46 = vpop.permute.xlu0 %1528  ;;  %v1443_v43 = vsel %vm610_vm2, %v4153_v50, %v4267_v26  ;;  %v1479_v7 = vadd.f32 %v1467_v58, %v4336_v33  ;;  %v1548_v62 = vmul.f32 %v4242_v12, %v3542_v4  ;;  %v1547_v14 = vmul.f32 %v4242_v12, %v3683_v23 }
 0x22f   : > { %1161 = vst [vmem:[%s3535_s15 + $0xf] sm:$0x1] %v1158_v25  ;;  %v1775_v59 = vadd.f32 %v4398_v41, %v1756_v29  ;;  %v2212_v2 = vsel %vm729_vm1, %v2207_v36, %v2211_v15  ;;  %v1550_v31 = vmul.f32 %v4242_v12, %v3544_v5  ;;  %v4433_v11 = vstv %s3530_s9  ;;  %s4942_s9 = sld [smem:[#allocation52_spill]] }
 0x230   : > { %v4436_v50 = vstv %s3524_s16  ;;  %v1480_v26 = vadd.f32 %v1470_v28, %v1449_v49  ;;  %v1640_v39 = vmax.f32 %v1397_v47, 0.0  ;;  %v1641_v38 = vmax.f32 %v1398_v42, 0.0  ;;  %s4943_s16 = sld [smem:[#allocation73_spill]] }
 0x231   : > { %v1679_v45 = vmul.f32 %v4436_v50, %v1674_v19  ;;  %v1474_v53 = vsel %vm634_vm0, %v1469_v6, %v1473_v61  ;;  %v1451_v57 = vadd.f32 %v1443_v43, %v1424_v48  ;;  %v1501_v8 = vadd.f32 %v4299_v0, %v1479_v7 }
 0x232   : > { %v1559_v36 = vrot.slane %v1547_v14, 2  ;;  %v1536_v18 = vsel %vm610_vm2, %v1529_v46, %v1531_v27  ;;  %v1562_v40 = vrot.slane %v1548_v62, 2  ;;  %v1563_v32 = vrot.slane %v1550_v31, 2 }
 0x233   : > { %v2857_v33 = vpop.eup %2856  ;;  %v1502_v44 = vadd.f32 %v4299_v0, %v1480_v26  ;;  %v1644_v54 = vsub.f32 0.0, %v1640_v39  ;;  %v1645_v30 = vsub.f32 0.0, %v1641_v38  ;;  %v1542_v3 = vadd.f32 %v1529_v46, %v1501_v8 }
 0x234   : > { %v4441_v10 = vpop.permute.xlu2 %1790  ;;  %2219 = vrot.lane.b32.xlu0 %v2212_v2, %s3192_s25  ;;  %v1684_v34 = vmul.f32 %v2857_v33, %v4433_v11  ;;  %v1552_v25 = vmul.f32 %v4242_v12, %v3553_v13  ;;  %v1482_v20 = vadd.f32 %v1474_v53, %v1451_v57  ;;  %v1561_v15 = vsel %vm729_vm1, %v1559_v36, %v1560_v60  ;;  %s4944_s25 = sld [smem:[#allocation70_spill]] }
 0x235   : > { %v4447_v63 = vadd.f32 %v4441_v10, %v1775_v59  ;;  %v1543_v29 = vadd.f32 %v1536_v18, %v1502_v44  ;;  %v1564_v42 = vsel %vm729_vm1, %v1562_v40, %v1563_v32  ;;  %v1648_v0 = vmul.f32 1.442695, %v1644_v54 }
 0x236   : > { %v1590_v6 = vpop.permute.xlu1 %1589  ;;  %v1535_v9 = vpop.permute.xlu0 %1534  ;;  %v1688_v58 = vadd.f32 %v1684_v34, %v1679_v45  ;;  %v1573_v49 = vadd.f32 %v1561_v15, %v1542_v3  ;;  %v1567_v27 = vrot.slane %v1552_v25, 2  ;;  %v1650_v46 = vmul.f32 1.442695, %v1645_v30 }
 0x237   : > { %v1537_v19 = vsel %vm610_vm2, %v4250_v56, %v1535_v9  ;;  %v1574_v48 = vadd.f32 %v1564_v42, %v1543_v29  ;;  %v1504_v12 = vadd.f32 %v4180_v55, %v1482_v20  ;;  %v1647_v33 = vsub.f32 0.0, %v1643_v52 }
 0x238   : > { %v1692_v47 = vmul.f32 0.5, %v1688_v58  ;;  %v1595_v28 = vadd.f32 %v1590_v6, %v1573_v49  ;;  %v1568_v14 = vsel %vm729_vm1, %v1563_v32, %v1567_v27  ;;  %v1754_v3 = vmul.f32 %v4386_v17, %v3683_v23 }
 0x239   : > { %v1596_v60 = vadd.f32 %v1590_v6, %v1574_v48  ;;  %v1545_v43 = vadd.f32 %v1537_v19, %v1504_v12  ;;  %v1654_v18 = vmul.f32 1.442695, %v1647_v33  ;;  %v1755_v25 = vmul.f32 %v4386_v17, %v3542_v4 }
 0x23a   : > { %2858 = vtanh.f32 %v1692_v47  ;;  %v4479_v19 = vstv %s4942_s9 }
 0x23b   : > { %2860 = vpow2.f32 %v1648_v0  ;;  %v1576_v39 = vadd.f32 %v1568_v14, %v1545_v43 }
 0x23c   : > { %v4459_v61 = vpop.permute.xlu2 %2008  ;;  %2862 = vpow2.f32 %v1650_v46 }
 0x23d   : > { %v1598_v44 = vadd.f32 %v4291_v37, %v1576_v39 }
 0x23e   : > { %v1625_v7 = vpop.permute.xlu1 %1624  ;;  %v1623_v62 = vpop.permute.xlu0 %1622 }
 0x23f   : > { %v1630_v59 = vsel %vm610_vm2, %v1623_v62, %v1625_v7  ;;  %v1636_v2 = vadd.f32 %v1623_v62, %v1595_v28 }
 0x240   : > { %v2859_v56 = vpop.eup %2858  ;;  %v1637_v31 = vadd.f32 %v1630_v59, %v1596_v60  ;;  %v1810_v60 = vmul.f32 %v4479_v19, %v3553_v13  ;;  %v4492_v59 = vmul.f32 %v4479_v19, %v3544_v5 }
 0x241   : > { %v1656_v26 = vmax.f32 %v1636_v2, 0.0  ;;  %v1700_v55 = vadd.f32 1.0, %v2859_v56  ;;  %v2861_v8 = vpop.eup %2860  ;;  %v1757_v56 = vmul.f32 %v4386_v17, %v3544_v5 }
 0x242   : > { %v1657_v38 = vmax.f32 %v1637_v31, 0.0  ;;  %v2863_v34 = vpop.eup %2862  ;;  %v1672_v54 = vsub.f32 1.0, %v2861_v8 }
 0x243   : > { %v1660_v45 = vsub.f32 0.0, %v1656_v26  ;;  %v1704_v21 = vmul.f32 0.5, %v1700_v55  ;;  %v1673_v30 = vsub.f32 1.0, %v2863_v34  ;;  %v1825_v55 = vrot.slane %v1810_v60, 1 }
 0x244   : > { %v1661_v53 = vsub.f32 0.0, %v1657_v38  ;;  %v4464_v57 = vpop.permute.xlu2 %2029  ;;  %v1677_v47 = vmul.f32 %v4436_v50, %v1672_v54  ;;  %v1821_v38 = vrot.slane %v4492_v59, 1  ;;  %v4544_v60 = vstv %s4945_s27 }
 0x245   : > { %v1664_v36 = vmul.f32 1.442695, %v1660_v45  ;;  %1714 = vrot.lane.b32.xlu0 %v1704_v21, %s3194_s3  ;;  %v1776_v21 = vadd.f32 %v4398_v41, %v1757_v56 }
 0x246   : > { %v1666_v40 = vmul.f32 1.442695, %v1661_v53  ;;  %v1768_v32 = vpop.permute.xlu1 %1767  ;;  %v1629_v6 = vpop.permute.xlu0 %1628  ;;  %v1826_v17 = vsel %vm634_vm0, %v1821_v38, %v1825_v55 }
 0x247   : > { %2864 = vpow2.f32 %v1664_v36  ;;  %v1631_v9 = vsel %vm610_vm2, %v4355_v22, %v1629_v6  ;;  %v1678_v22 = vmul.f32 %v4436_v50, %v1673_v30  ;;  %v1773_v42 = vadd.f32 %v1768_v32, %v1754_v3 }
 0x248   : > { %2866 = vpow2.f32 %v1666_v40  ;;  %v1639_v58 = vadd.f32 %v1631_v9, %v1598_v44  ;;  %v1774_v49 = vadd.f32 %v1768_v32, %v1755_v25  ;;  %v4521_v25 = vstv %s4943_s16 }
 0x249   : > { %2868 = vpow2.f32 %v1654_v18 }
 0x24a   : > { %v1659_v20 = vmax.f32 %v1639_v58, 0.0 }
 0x24c   : > { %v1663_v29 = vsub.f32 0.0, %v1659_v20  ;;  %v4474_v37 = vpop.permute.xlu2 %1849 }
 0x24d   : > { %v2865_v15 = vpop.eup %2864 }
 0x24e   : > { %v2867_v0 = vpop.eup %2866  ;;  %v1670_v27 = vmul.f32 1.442695, %v1663_v29  ;;  %v1789_v46 = vpop.permute.xlu1 %1788  ;;  %v1682_v12 = vmul.f32 %v2865_v15, %v4433_v11 }
 0x24f   : > { %v1787_v48 = vpop.permute.xlu0 %1786  ;;  %v1683_v43 = vmul.f32 %v2867_v0, %v4433_v11  ;;  %v2869_v7 = vpop.eup %2868 }
 0x250   : > { %v1794_v28 = vsel %vm610_vm2, %v1787_v48, %v1789_v46  ;;  %v4483_v52 = vadd.f32 %v1787_v48, %v1773_v42  ;;  %2870 = vpow2.f32 %v1670_v27  ;;  %v1686_v14 = vadd.f32 %v1682_v12, %v1677_v47 }
 0x251   : > { %v4488_v62 = vadd.f32 %v1794_v28, %v1774_v49  ;;  %v1687_v2 = vadd.f32 %v1683_v43, %v1678_v22  ;;  %v1675_v26 = vsub.f32 1.0, %v2869_v7  ;;  %v4528_v47 = vstv %s4944_s25 }
 0x252   : > { %v1690_v31 = vmul.f32 0.5, %v1686_v14  ;;  %v2049_v22 = vmul.f32 %v4521_v25, %v3553_v13  ;;  %v4536_v42 = vmul.f32 %v4521_v25, %v3544_v5  ;;  %v1996_v0 = vmul.f32 %v4528_v47, %v3544_v5 }
 0x253   : > { %v1691_v33 = vmul.f32 0.5, %v1687_v2  ;;  %v1680_v36 = vmul.f32 %v4436_v50, %v1675_v26 }
 0x254   : > { %v4496_v39 = vpop.permute.xlu2 %1884  ;;  %2872 = vtanh.f32 %v1690_v31  ;;  %v2064_v48 = vrot.slane %v2049_v22, 1  ;;  %v2060_v43 = vrot.slane %v4536_v42, 1  ;;  %v2015_v7 = vadd.f32 %v4459_v61, %v1996_v0 }
 0x255   : > { %2874 = vtanh.f32 %v1691_v33  ;;  %v4560_v33 = vmul.f32 %v4544_v60, %v3699_v35 }
 0x256   : > { %v2871_v45 = vpop.eup %2870  ;;  %v4500_v53 = vpop.permute.xlu1 %2006  ;;  %v2065_v26 = vsel %vm634_vm0, %v2060_v43, %v2064_v48 }
 0x257   : > { %v1793_v8 = vpop.permute.xlu0 %1792  ;;  %v1685_v18 = vmul.f32 %v2871_v45, %v4433_v11  ;;  %v1809_v11 = vmul.f32 %v4479_v19, %v3828_v16 }
 0x258   : > { %v1795_v34 = vsel %vm610_vm2, %v4441_v10, %v1793_v8  ;;  %v4516_v10 = vmul.f32 %v4479_v19, %v3699_v35 }
 0x259   : > { %v1803_v40 = vadd.f32 %v1795_v34, %v1776_v21  ;;  %v1689_v32 = vadd.f32 %v1685_v18, %v1680_v36  ;;  %v1823_v27 = vrot.slane %v1809_v11, 1  ;;  %v1903_v21 = vmul.f32 %v4544_v60, %v3828_v16 }
 0x25a   : > { %v2873_v44 = vpop.eup %2872  ;;  %v1818_v49 = vrot.slane %v4516_v10, 1  ;;  %v1912_v34 = vrot.slane %v4560_v33, 2  ;;  %v4571_v18 = vmul.f32 %v4521_v25, %v3699_v35  ;;  %v2044_v10 = vmul.f32 %v4521_v25, %v3683_v23 }
 0x25b   : > { %v1834_v41 = vadd.f32 %v1826_v17, %v1803_v40  ;;  %v2875_v6 = vpop.eup %2874  ;;  %v1698_v9 = vadd.f32 1.0, %v2873_v44  ;;  %v1693_v58 = vmul.f32 0.5, %v1689_v32  ;;  %v1995_v17 = vmul.f32 %v4528_v47, %v3699_v35 }
 0x25c   : > { %v4509_v54 = vpop.permute.xlu2 %2088  ;;  %v1699_v50 = vadd.f32 1.0, %v2875_v6  ;;  %v1824_v14 = vsel %vm634_vm0, %v1818_v49, %v1823_v27  ;;  %v2048_v40 = vmul.f32 %v4521_v25, %v3828_v16  ;;  %v1917_v32 = vrot.slane %v1903_v21, 2 }
 0x25d   : > { %v4512_v30 = vadd.f32 %v4474_v37, %v1834_v41  ;;  %v1702_v3 = vmul.f32 0.5, %v1698_v9  ;;  %2876 = vtanh.f32 %v1693_v58  ;;  %v1833_v8 = vadd.f32 %v1824_v14, %v4447_v63 }
 0x25e   : > { %v4523_v20 = vpop.permute.xlu1 %2027  ;;  %v1703_v15 = vmul.f32 0.5, %v1699_v50  ;;  %v2014_v58 = vadd.f32 %v4459_v61, %v1995_v17  ;;  %v2062_v11 = vrot.slane %v2048_v40, 1  ;;  %v4589_v27 = vstv %s3516_s2  ;;  %s4947_s2 = sld [smem:[#allocation42_spill]] }
 0x25f   : > { %v4525_v29 = vpop.permute.xlu0 %2025  ;;  %1710 = vrot.lane.b32.xlu1 %v1702_v3, %s3194_s3  ;;  %v1855_v63 = vadd.f32 %v4474_v37, %v1833_v8  ;;  %v2057_v3 = vrot.slane %v4571_v18, 1 }
 0x260   : > { %1712 = vrot.lane.b32.xlu2 %v1703_v15, %s3194_s3  ;;  %v1918_v15 = vsel %vm729_vm1, %v1912_v34, %v1917_v32  ;;  %v2041_v22 = vadd.f32 %v4464_v57, %v2014_v58 }
 0x261   : > { %v1896_v50 = vadd.f32 %v4496_v39, %v1855_v63  ;;  %v2063_v37 = vsel %vm634_vm0, %v2057_v3, %v2062_v11  ;;  %v1900_v11 = vmul.f32 %v4544_v60, %v3542_v4 }
 0x262   : > { %v2072_v14 = vadd.f32 %v2063_v37, %v2041_v22 }
 0x263   : > { %v2877_v46 = vpop.eup %2876  ;;  %v1927_v0 = vadd.f32 %v1918_v15, %v1896_v50  ;;  %v1902_v50 = vmul.f32 %v4544_v60, %v3544_v5  ;;  %v1899_v15 = vmul.f32 %v4544_v60, %v3683_v23 }
 0x264   : > { %v4541_v12 = vpop.permute.xlu2 %2123  ;;  %v1701_v28 = vadd.f32 1.0, %v2877_v46  ;;  %s2350_s10 = scalar_lea.sflag [#allocation19], %s4947_s2 }
 0x265   : > { %v1915_v59 = vrot.slane %v1902_v50, 2 }
 0x266   : > { %v4551_v2 = vpop.permute.xlu1 %1847  ;;  %v1705_v31 = vmul.f32 0.5, %v1701_v28 }
 0x267   : > { %v2032_v56 = vpop.permute.xlu0 %2031 }
 0x268   : > { %v2034_v55 = vsel %vm610_vm2, %v4464_v57, %v2032_v56  ;;  %1716 = vrot.lane.b32.xlu1 %v1705_v31, %s3194_s3  ;;  %v2142_v57 = vmul.f32 %v4589_v27, %v3828_v16  ;;  %v1806_v16 = vmul.f32 %v4479_v19, %v3542_v4 }
 0x269   : > { %v2042_v45 = vadd.f32 %v2034_v55, %v2015_v7  ;;  %v4601_v7 = vmul.f32 %v4589_v27, %v3699_v35  ;;  %v1805_v55 = vmul.f32 %v4479_v19, %v3683_v23  ;;  %v2094_v35 = vadd.f32 %v4509_v54, %v2072_v14 }
 0x26a   : > { %v2156_v21 = vrot.slane %v2142_v57, 2  ;;  %v1820_v63 = vrot.slane %v1806_v16, 1 }
 0x26b   : > { %v2073_v36 = vadd.f32 %v2065_v26, %v2042_v45  ;;  %v2151_v45 = vrot.slane %v4601_v7, 2  ;;  %v2135_v17 = vadd.f32 %v4541_v12, %v2094_v35 }
 0x26c   : > { %v4575_v44 = vpop.permute.xlu2 %1943  ;;  %v1822_v22 = vsel %vm634_vm0, %v1820_v63, %v1821_v38 }
 0x26d   : > { %v4578_v41 = vadd.f32 %v4509_v54, %v2073_v36  ;;  %v1949_v61 = vadd.f32 %v4575_v44, %v1927_v0  ;;  %v1832_v14 = vadd.f32 %v1822_v22, %v4488_v62  ;;  %v1904_v62 = vmul.f32 %v4544_v60, %v3553_v13 }
 0x26e   : > { %v1883_v6 = vpop.permute.xlu1 %1882 }
 0x26f   : > { %v1881_v9 = vpop.permute.xlu0 %1880  ;;  %v1919_v50 = vrot.slane %v1904_v62, 2 }
 0x270   : > { %v1888_v35 = vsel %vm610_vm2, %v1881_v9, %v1883_v6 }
 0x274   : > { %v4594_v46 = vpop.permute.xlu2 %1978 }
 0x275   : > { %v1990_v56 = vadd.f32 %v4594_v46, %v1949_v61 }
 0x276   : > { %v4597_v48 = vpop.permute.xlu1 %2086 }
 0x277   : > { %v1887_v28 = vpop.permute.xlu0 %1886  ;;  %v2233_v8 = vmax.f32 %v1990_v56, 0.0  ;;  %v1914_v56 = vrot.slane %v1900_v11, 2 }
 0x278   : > { %v1889_v31 = vsel %vm610_vm2, %v4496_v39, %v1887_v28  ;;  %v1817_v39 = vrot.slane %v1805_v55, 1  ;;  %v2045_v28 = vmul.f32 %v4521_v25, %v3542_v4  ;;  %v1854_v25 = vadd.f32 %v4551_v2, %v1832_v14 }
 0x279   : > { %v4609_v26 = vadd.f32 %v1889_v31, %v4512_v30  ;;  %v2157_v30 = vsel %vm729_vm1, %v2151_v45, %v2156_v21  ;;  %v2237_v58 = vsub.f32 0.0, %v2233_v8  ;;  %v1911_v31 = vrot.slane %v1899_v15, 2 }
 0x27a   : > { %v2166_v54 = vadd.f32 %v2157_v30, %v2135_v17  ;;  %v1819_v19 = vsel %vm634_vm0, %v1817_v39, %v1818_v49  ;;  %v2056_v8 = vrot.slane %v2044_v10, 1  ;;  %v1994_v30 = vmul.f32 %v4528_v47, %v3542_v4 }
 0x27b   : > { %v2243_v0 = vmul.f32 1.442695, %v2237_v58  ;;  %v1831_v61 = vadd.f32 %v1819_v19, %v4483_v52  ;;  %v1993_v52 = vmul.f32 %v4528_v47, %v3683_v23  ;;  %v1895_v63 = vadd.f32 %v1888_v35, %v1854_v25 }
 0x27c   : > { %v4617_v36 = vpop.permute.xlu2 %2182  ;;  %v2059_v58 = vrot.slane %v2045_v28, 1  ;;  %v1913_v6 = vsel %vm729_vm1, %v1911_v31, %v1912_v34  ;;  %v1916_v19 = vsel %vm729_vm1, %v1914_v56, %v1915_v59  ;;  %v2033_v47 = vsel %vm610_vm2, %v4525_v29, %v4523_v20 }
 0x27d   : > { %v2188_v37 = vadd.f32 %v4617_v36, %v2166_v54  ;;  %v1853_v21 = vadd.f32 %v4551_v2, %v1831_v61  ;;  %2878 = vpow2.f32 %v2243_v0  ;;  %v2012_v2 = vadd.f32 %v4500_v53, %v1993_v52 }
 0x27e   : > { %v4623_v40 = vpop.permute.xlu1 %2121  ;;  %v2013_v34 = vadd.f32 %v4500_v53, %v1994_v30  ;;  %v2061_v11 = vsel %vm634_vm0, %v2059_v58, %v2060_v43  ;;  %v1926_v15 = vadd.f32 %v1916_v19, %v1895_v63  ;;  %v2141_v20 = vmul.f32 %v4589_v27, %v3544_v5 }
 0x27f   : > { %v4625_v32 = vpop.permute.xlu0 %2119  ;;  %v1894_v17 = vadd.f32 %v1881_v9, %v1853_v21  ;;  %v2058_v9 = vsel %vm634_vm0, %v2056_v8, %v2057_v3  ;;  %v2138_v3 = vmul.f32 %v4589_v27, %v3683_v23  ;;  %v2039_v0 = vadd.f32 %v4525_v29, %v2012_v2 }
 0x280   : > { %v2040_v53 = vadd.f32 %v2033_v47, %v2013_v34  ;;  %v4682_v61 = vstv %s3526_s1  ;;  %v1920_v28 = vsel %vm729_vm1, %v1915_v59, %v1919_v50  ;;  %v2139_v14 = vmul.f32 %v4589_v27, %v3542_v4  ;;  %s4946_s1 = sld [smem:[#allocation35_spill]] }
 0x281   : > { %v1925_v33 = vadd.f32 %v1913_v6, %v1894_v17  ;;  %v4688_v23 = vstv %s3532_s11  ;;  %v2070_v31 = vadd.f32 %v2058_v9, %v2039_v0  ;;  %v2154_v21 = vrot.slane %v2141_v20, 2 }
 0x282   : > { %v2150_v5 = vrot.slane %v2138_v3, 2  ;;  %v1928_v52 = vadd.f32 %v1920_v28, %v4609_v26  ;;  %v2127_v4 = vsel %vm610_vm2, %v4625_v32, %v4623_v40  ;;  %v2153_v8 = vrot.slane %v2139_v14, 2 }
 0x283   : > { %v2879_v60 = vpop.eup %2878  ;;  %v2092_v59 = vadd.f32 %v4597_v48, %v2070_v31  ;;  %v2143_v26 = vmul.f32 %v4589_v27, %v3553_v13 }
 0x284   : > { %v4642_v49 = vpop.permute.xlu2 %2217  ;;  %v2265_v42 = vsub.f32 1.0, %v2879_v60  ;;  %v2152_v40 = vsel %vm729_vm1, %v2150_v5, %v2151_v45  ;;  %v1950_v19 = vadd.f32 %v4575_v44, %v1928_v52  ;;  %v2155_v9 = vsel %vm729_vm1, %v2153_v8, %v2154_v21 }
 0x285   : > { %v2229_v57 = vadd.f32 %v4642_v49, %v2188_v37  ;;  %v2133_v58 = vadd.f32 %v4625_v32, %v2092_v59  ;;  %v2158_v32 = vrot.slane %v2143_v26, 2 }
 0x286   : > { %v1942_v38 = vpop.permute.xlu1 %1941  ;;  %v2270_v35 = vmul.f32 %v4682_v61, %v2265_v42  ;;  %s2692_s11 = smul.u32 48, %s4946_s1 }
 0x287   : > { %v4649_v55 = vpop.permute.xlu0 %2125  ;;  %v2249_v16 = vmax.f32 %v2229_v57, 0.0  ;;  %v1947_v37 = vadd.f32 %v1942_v38, %v1925_v33  ;;  %v1948_v43 = vadd.f32 %v1942_v38, %v1926_v15  ;;  %v2164_v27 = vadd.f32 %v2152_v40, %v2133_v58 }
 0x288   : > { %v2128_v13 = vsel %vm610_vm2, %v4541_v12, %v4649_v55  ;;  %s4758_s5 = scalar_lea.hbm %s4949_s22, %s2692_s11 }
 0x289   : > { %v2253_v39 = vsub.f32 0.0, %v2249_v16  ;;  %v2071_v16 = vadd.f32 %v2061_v11, %v2040_v53  ;;  %v2136_v45 = vadd.f32 %v2128_v13, %v4578_v41  ;;  %s2366_s30 = sshll.u32 %s4758_s5, 4  ;;  %s2367_s30 = int_to_ptr.hbm [resolvable:$true] %s2366_s30 }
 0x28b   : > { %v2259_v54 = vmul.f32 1.442695, %v2253_v39  ;;  %v2093_v17 = vadd.f32 %v4597_v48, %v2071_v16 }
 0x28d   : > { %2880 = vpow2.f32 %v2259_v54  ;;  %v2134_v54 = vadd.f32 %v2127_v4, %v2093_v17 }
 0x28e   : > { %v1977_v18 = vpop.permute.xlu1 %1976 }
 0x28f   : > { %v1975_v22 = vpop.permute.xlu0 %1974 }
 0x290   : > { %v1982_v10 = vsel %vm610_vm2, %v1975_v22, %v1977_v18  ;;  %v1988_v57 = vadd.f32 %v1975_v22, %v1947_v37  ;;  %v2159_v18 = vsel %vm729_vm1, %v2154_v21, %v2158_v32 }
 0x291   : > { %v1989_v29 = vadd.f32 %v1982_v10, %v1948_v43  ;;  %v2167_v20 = vadd.f32 %v2159_v18, %v2136_v45  ;;  %v2671_v18 = vld [vmem:[%s4940_s7 + $0x18] sm:$0xff] }
 0x292   : > { %v2231_v25 = vmax.f32 %v1988_v57, 0.0 }
 0x293   : > { %v2881_v56 = vpop.eup %2880  ;;  %v2232_v62 = vmax.f32 %v1989_v29, 0.0  ;;  %v2189_v29 = vadd.f32 %v4617_v36, %v2167_v20 }
 0x294   : > { %v2275_v38 = vmul.f32 %v2881_v56, %v4688_v23  ;;  %v2235_v2 = vsub.f32 0.0, %v2231_v25 }
 0x295   : > { %v2236_v60 = vsub.f32 0.0, %v2232_v62 }
 0x296   : > { %v2181_v39 = vpop.permute.xlu1 %2180  ;;  %v2279_v63 = vadd.f32 %v2275_v38, %v2270_v35  ;;  %v2239_v50 = vmul.f32 1.442695, %v2235_v2 }
 0x297   : > { %v1981_v30 = vpop.permute.xlu0 %1980  ;;  %v2186_v7 = vadd.f32 %v2181_v39, %v2164_v27  ;;  %v2241_v33 = vmul.f32 1.442695, %v2236_v60 }
 0x298   : > { %v1983_v6 = vsel %vm610_vm2, %v4594_v46, %v1981_v30  ;;  %v2283_v48 = vmul.f32 0.5, %v2279_v63  ;;  %v2165_v46 = vadd.f32 %v2155_v9, %v2134_v54 }
 0x299   : > { %v1991_v47 = vadd.f32 %v1983_v6, %v1950_v19 }
 0x29a   : > { %2882 = vtanh.f32 %v2283_v48  ;;  %v2187_v44 = vadd.f32 %v2181_v39, %v2165_v46 }
 0x29b   : > { %v2234_v34 = vmax.f32 %v1991_v47, 0.0  ;;  %2884 = vpow2.f32 %v2239_v50  ;;  %v2670_v50 = vld [vmem:[%s4940_s7 + $0x10] sm:$0xff] }
 0x29c   : > { %2886 = vpow2.f32 %v2241_v33 }
 0x29d   : > { %v2238_v10 = vsub.f32 0.0, %v2234_v34 }
 0x29e   : > { %v2216_v11 = vpop.permute.xlu1 %2215 }
 0x29f   : > { %v2214_v15 = vpop.permute.xlu0 %2213  ;;  %v2245_v57 = vmul.f32 1.442695, %v2238_v10 }
 0x2a0   : > { %v2221_v22 = vsel %vm610_vm2, %v2214_v15, %v2216_v11  ;;  %v2227_v3 = vadd.f32 %v2214_v15, %v2186_v7  ;;  %v2883_v0 = vpop.eup %2882 }
 0x2a1   : > { %v2228_v37 = vadd.f32 %v2221_v22, %v2187_v44  ;;  %v2291_v55 = vadd.f32 1.0, %v2883_v0  ;;  %v2885_v31 = vpop.eup %2884  ;;  %v1740_v44 = vrot.slane %v2670_v50, 7 }
 0x2a2   : > { %v2247_v12 = vmax.f32 %v2227_v3, 0.0  ;;  %v2887_v5 = vpop.eup %2886  ;;  %v2263_v16 = vsub.f32 1.0, %v2885_v31  ;;  %v1741_v3 = vrot.slane %v2671_v18, 7 }
 0x2a3   : > { %v2248_v53 = vmax.f32 %v2228_v37, 0.0  ;;  %v2295_v42 = vmul.f32 0.5, %v2291_v55  ;;  %v2264_v38 = vsub.f32 1.0, %v2887_v5  ;;  %v2677_v5 = vld [vmem:[%s4940_s7 + $0x20] sm:$0xff] }
 0x2a4   : > { %v2251_v41 = vsub.f32 0.0, %v2247_v12  ;;  %v2268_v8 = vmul.f32 %v4682_v61, %v2263_v16  ;;  %v1742_v55 = vsel %vm1141_vm5, %v1740_v44, %v1741_v3  ;;  %v2331_v24 = vrot.slane %v2677_v5, 7 }
 0x2a5   : > { %v2252_v43 = vsub.f32 0.0, %v2248_v53  ;;  %2305 = vrot.lane.b32.xlu1 %v2295_v42, %s3194_s3  ;;  %v2269_v62 = vmul.f32 %v4682_v61, %v2264_v38 }
 0x2a6   : > { %v2255_v28 = vmul.f32 1.442695, %v2251_v41 }
 0x2a7   : > { %v2257_v14 = vmul.f32 1.442695, %v2252_v43  ;;  %v2220_v56 = vpop.permute.xlu0 %2219  ;;  %v2678_v43 = vld [vmem:[%s4940_s7 + $0x28] sm:$0xff] }
 0x2a8   : > { %2888 = vpow2.f32 %v2255_v28  ;;  %v2222_v21 = vsel %vm610_vm2, %v4642_v49, %v2220_v56 }
 0x2a9   : > { %2890 = vpow2.f32 %v2257_v14  ;;  %v2230_v35 = vadd.f32 %v2222_v21, %v2189_v29  ;;  %v2332_v29 = vrot.slane %v2678_v43, 7 }
 0x2aa   : > { %2892 = vpow2.f32 %v2245_v57 }
 0x2ab   : > { %v2250_v52 = vmax.f32 %v2230_v35, 0.0 }
 0x2ad   : > { %v2254_v59 = vsub.f32 0.0, %v2250_v52 }
 0x2ae   : > { %v2889_v4 = vpop.eup %2888 }
 0x2af   : > { %v2891_v25 = vpop.eup %2890  ;;  %v2261_v17 = vmul.f32 1.442695, %v2254_v59  ;;  %v2273_v36 = vmul.f32 %v2889_v4, %v4688_v23 }
 0x2b0   : > { %v2274_v39 = vmul.f32 %v2891_v25, %v4688_v23  ;;  %v2893_v49 = vpop.eup %2892 }
 0x2b1   : > { %2894 = vpow2.f32 %v2261_v17  ;;  %v2277_v30 = vadd.f32 %v2273_v36, %v2268_v8  ;;  %v2266_v26 = vsub.f32 1.0, %v2893_v49 }
 0x2b2   : > { %v2278_v63 = vadd.f32 %v2274_v39, %v2269_v62 }
 0x2b3   : > { %v2281_v58 = vmul.f32 0.5, %v2277_v30  ;;  %v2271_v40 = vmul.f32 %v4682_v61, %v2266_v26 }
 0x2b4   : > { %v2282_v6 = vmul.f32 0.5, %v2278_v63 }
 0x2b5   : > { %2896 = vtanh.f32 %v2281_v58 }
 0x2b6   : > { %2898 = vtanh.f32 %v2282_v6 }
 0x2b7   : > { %v2895_v54 = vpop.eup %2894  ;;  %v1715_v22 = vpop.permute.xlu0 %1714 }
 0x2b8   : > { %v2276_v19 = vmul.f32 %v2895_v54, %v4688_v23 }
 0x2ba   : > { %v2280_v48 = vadd.f32 %v2276_v19, %v2271_v40  ;;  %v1713_v7 = vpop.permute.xlu2 %1712 }
 0x2bb   : > { %v2897_v2 = vpop.eup %2896 }
 0x2bc   : > { %v2899_v9 = vpop.eup %2898  ;;  %v2289_v60 = vadd.f32 1.0, %v2897_v2  ;;  %v2284_v47 = vmul.f32 0.5, %v2280_v48 }
 0x2bd   : > { %v2290_v32 = vadd.f32 1.0, %v2899_v9 }
 0x2be   : > { %v2293_v13 = vmul.f32 0.5, %v2289_v60  ;;  %2900 = vtanh.f32 %v2284_v47 }
 0x2bf   : > { %v2294_v27 = vmul.f32 0.5, %v2290_v32 }
 0x2c0   : > { %2301 = vrot.lane.b32.xlu2 %v2293_v13, %s3194_s3 }
 0x2c1   : > { %2303 = vrot.lane.b32.xlu0 %v2294_v27, %s3194_s3 }
 0x2c4   : > { %v2901_v61 = vpop.eup %2900 }
 0x2c5   : > { %v2292_v46 = vadd.f32 1.0, %v2901_v61 }
 0x2c7   : > { %v2296_v23 = vmul.f32 0.5, %v2292_v46 }
 0x2c9   : > { %2307 = vrot.lane.b32.xlu2 %v2296_v23, %s3194_s3  ;;  %s2382_s3 = scalar_lea.hbm %s4948_s23, %s2692_s11 }
 0x2ca   : > { %s2385_s28 = sshll.u32 %s2382_s3, 4  ;;  %s2386_s28 = int_to_ptr.hbm [resolvable:$true] %s2385_s28 }
 0x2cb   : > { %s3063_s12 = sshra.s32 %s2386_s28, 4  ;;  %s3064_s12 = int_to_ptr.hbm [resolvable:$true] %s3063_s12 }
 0x2cc   : > { %s3065_s13 = scalar_lea.hbm %s3064_s12, 48  ;;  %p3070_p5 = scmp.lt.s32.totalorder %s3064_s12, %s4948_s23 }
 0x2cd   : > { %p3066_p12 = scmp.ne.s32.totalorder %s3064_s12, %s3065_s13  ;;  %p3071_p7 = scmp.lt.s32.totalorder %s3069_s29, %s3065_s13 }
 0x2cf   : > { %p3067_p13 = pnand %p3066_p12, %p3353_p2  ;;  %p3072_p8 = por %p3071_p7, %p3070_p5 }
 0x2d1   : > { %v1711_v45 = vpop.permute.xlu1 %1710  ;;  %p3068_p0 = pneg %p3067_p13 }
 0x2d2   : > { %v1718_v33 = vsel %vm1128_vm3, %v1711_v45, %v1713_v7 }
 0x2d3   : > { %2668 = vst [vmem:[%s3538_s19 + $0x10] sm:$0xff] %v1718_v33  ;;  %v1728_v34 = vsub.f32 %v2670_v50, %v1718_v33  ;;  %p3073_p1 = pnand %p3072_p8, %p3068_p0 }
 0x2d5   : > { %v1732_v11 = vrot.slane %v1728_v34, 7 }
 0x2d7   : > { %v1746_v15 = vsel %vm566_vm4, %v1732_v11, %v1740_v44 }
 0x2d8   : > { %2672 = vst [vmem:[%s3535_s15 + $0xf] sm:$0xfe] %v1746_v15 }
 0x2da   : > { %v1717_v0 = vpop.permute.xlu1 %1716 }
 0x2db   : > { %v1719_v37 = vsel %vm1128_vm3, %v1715_v22, %v1717_v0 }
 0x2dc   : > { %2669 = vst [vmem:[%s3538_s19 + $0x18] sm:$0xff] %v1719_v37  ;;  %v1729_v12 = vsub.f32 %v2671_v18, %v1719_v37 }
 0x2de   : > { %v1733_v20 = vrot.slane %v1729_v12, 7 }
 0x2e0   : > { %v1734_v10 = vsel %vm1141_vm5, %v1732_v11, %v1733_v20  ;;  %v1748_v53 = vsel %vm568_vm7, %v1733_v20, %v1741_v3 }
 0x2e1   : > { %v1747_v41 = vsel %vm567_vm6, %v1734_v10, %v1742_v55  ;;  %2674 = vst [vmem:[%s3535_s15 + $0x1f] sm:$0x1] %v1748_v53 }
 0x2e2   : > { %2673 = vst [vmem:[%s3535_s15 + $0x17] sm:$0xff] %v1747_v41 }
 0x317   : > { %v2306_v28 = vpop.permute.xlu1 %2305 }
 0x31a   : > { %v2302_v42 = vpop.permute.xlu2 %2301 }
 0x323   : > { %v2308_v57 = vpop.permute.xlu2 %2307 }
 0x324   : > { %v2310_v14 = vsel %vm1128_vm3, %v2306_v28, %v2308_v57 }
 0x325   : > { %2676 = vst [vmem:[%s3538_s19 + $0x28] sm:$0xff] %v2310_v14  ;;  %v2320_v56 = vsub.f32 %v2678_v43, %v2310_v14 }
 0x327   : > { %v2324_v31 = vrot.slane %v2320_v56, 7 }
 0x329   : > { %v2339_v21 = vsel %vm568_vm7, %v2324_v31, %v2332_v29 }
 0x32a   : > { %2681 = vst [vmem:[%s3535_s15 + $0x2f] sm:$0x1] %v2339_v21 }
 0x333   : > { %v2304_v35 = vpop.permute.xlu0 %2303 }
 0x334   : > { %v2309_v16 = vsel %vm1128_vm3, %v2302_v42, %v2304_v35 }
 0x335   : > { %2675 = vst [vmem:[%s3538_s19 + $0x20] sm:$0xff] %v2309_v16  ;;  %v2319_v52 = vsub.f32 %v2677_v5, %v2309_v16 }
 0x336   : > { %3076 = shalt.err (!%p3073_p1)
}
 0x337   : > { %s3195_s19 = smov 128   ;;  %s3196_s18 = smov 8   ;;  %v2333_v38 = vsel %vm1141_vm5, %v2331_v24, %v2332_v29  ;;  %v2323_v59 = vrot.slane %v2319_v52, 7 }
 0x338   : > { %2721 = dma.vmem_to_hbm [thread:$0]  (%p3353_p2), %s2384_s20, 768, %s2386_s28, %s2350_s10, %s3195_s19, %s3195_s19, %s3196_s18  }
 0x339   : > { %v2325_v4 = vsel %vm1141_vm5, %v2323_v59, %v2324_v31  ;;  %v2337_v25 = vsel %vm566_vm4, %v2323_v59, %v2331_v24  ;;  %s2345_s9 = scalar_lea.sflag [#allocation6], %s4947_s2  ;;  %s3091_s16 = sshra.s32 %s2367_s30, 4  ;;  %s3092_s16 = int_to_ptr.hbm [resolvable:$true] %s3091_s16 }
 0x33a   : > { %v2338_v8 = vsel %vm567_vm6, %v2325_v4, %v2333_v38  ;;  %2679 = vst [vmem:[%s3535_s15 + $0x1f] sm:$0xfe] %v2337_v25  ;;  %s3093_s25 = scalar_lea.hbm %s3092_s16, 48  ;;  %s3097_s11 = scalar_lea.hbm %s4949_s22, 96 }
 0x33b   : > { %2680 = vst [vmem:[%s3535_s15 + $0x27] sm:$0xff] %v2338_v8  ;;  %p3094_p3 = scmp.ne.s32.totalorder %s3092_s16, %s3093_s25  ;;  %p3098_p11 = scmp.lt.s32.totalorder %s3092_s16, %s4949_s22 }
 0x33c   : > { %p3099_p12 = scmp.lt.s32.totalorder %s3097_s11, %s3093_s25 }
 0x33d   : > { %p3095_p9 = pnand %p3094_p3, %p3353_p2 }
 0x33e   : > { %p3100_p13 = por %p3099_p12, %p3098_p11 }
 0x33f   : > { %p3096_p10 = pneg %p3095_p9 }
 0x341   : > { %p3101_p0 = pnand %p3100_p13, %p3096_p10 }
 0x343   : > { %3104 = shalt.err (!%p3101_p0)
}
 0x344   : > { %2720 = dma.vmem_to_hbm [thread:$0]  (%p3353_p2), %s2365_s4, 768, %s2367_s30, %s2345_s9, %s3195_s19, %s3195_s19, %s3196_s18  }
 0x345 PF: > { %s4951_s15 = sld [smem:[#allocation32_spill]]  ;;  %p2748_p5 = pnand %p2602_p4, %p3360_p6 }
 0x346   : > { %s4953_s3 = sld [smem:[#allocation37_spill]] }
 0x347   : > { %p2749_p7 = pneg %p2748_p5 }
 0x34b   : > { %s2400_s20 = sand.u32 1, %s4951_s15  }
 0x34c   : > { %s2401_s28 = scalar_lea.sflag [#allocation6], %s2400_s20 }
 0x34d   : > { %3152 = dma.done.wait (%p2749_p7), %s2401_s28, 768  }
 0x34e   : > { %3154 = vsyncadd (%p2749_p7), %s2401_s28, 4294966528  ;;  %s2411_s24 = scalar_lea.sflag [#allocation19], %s2400_s20 }
 0x34f   : > { %3156 = dma.done.wait (%p2749_p7), %s2411_s24, 768  }
 0x350   : > { %3158 = vsyncadd (%p2749_p7), %s2411_s24, 4294966528  ;;  %s33_s14 = sadd.s32 1, %s4953_s3   ;;  %s4954_s30 = sld [smem:[#allocation33_spill]] }
 0x351   : > { %p30_p8 = scmp.ge.s32.totalorder %s33_s14, 4   ;;  %s4955_s10 = sld [smem:[#allocation34_spill]] }
 0x352   : > { %s4956_s11 = sld [smem:[#allocation40_spill]] }
 0x353   : > { %s4957_s12 = sld [smem:[#allocation36_spill]]  ;;  %32 = sbr.rel (!%p30_p8) target bundleno = 23 (0x17), region = 155 }
 0x354   : > { %s4958_s13 = sld [smem:[#allocation38_spill]] }
 0x358   :  { %2417 = vsyncpa [#allocation5], 1 }
 0x359   :  { %2419 = vsyncpa [#allocation5 + $0x1], 1 }
 0x35a   :  { %2420 = vsyncpa [#allocation6], 1 }
 0x35b   :  { %2422 = vsyncpa [#allocation6 + $0x1], 1 }
 0x35c   :  { %2423 = vsyncpa [#allocation19], 1 }
 0x35d   :  { %2425 = vsyncpa [#allocation19 + $0x1], 1 }
 0x35e   :  { %2426 = vsyncpa [#allocation7], 1 }
 0x35f   :  { %2428 = vsyncpa [#allocation7 + $0x1], 1 }
 0x360   :  { %2429 = vsyncpa [#allocation10], 1 }
 0x361   :  { %2430 = vsyncpa [#allocation13], 1 }
 0x362   :  { %2431 = vsyncpa [#allocation16], 1 }
 0x363   :  { %2432 = vsyncmov [#allocation3] }
 0x366   :  { %s2433_s0 = vpop.sfrf %2432 }
 0x367   :  { %p2686_p4 = scmp.ne.s32.totalorder %s2433_s0, 0 }
 0x369   :  { %2437 = shalt.err (%p2686_p4)  }
 0x36a   :  { %2439 = vsyncmov [#allocation3 + $0x1] }
 0x36d   :  { %s2440_s5 = vpop.sfrf %2439 }
 0x36e   :  { %p2687_p2 = scmp.ne.s32.totalorder %s2440_s5, 0 }
 0x370   :  { %2444 = shalt.err (%p2687_p2)  }

</bundles_post_ra>
